<compile_context>
chip_gen: v7x
topology: tpu7x:2x2x1
jax: 0.10.0
libtpu: 0.0.40
codegen_flags: <defaults>
</compile_context>

<pallas_src>
import functools

import jax
import jax.numpy as jnp
import numpy as np
from jax.experimental import pallas as pl
from jax.experimental.pallas import tpu as pltpu


# ----------------------------------------------------------------------------
# Tiled matmul + bias (+ReLU) kernel — used for all three convolutions
# ----------------------------------------------------------------------------
def _matmul_bias_act_kernel(x_ref, w_ref, b_ref, o_ref, *, relu):
    acc = jnp.dot(x_ref[...], w_ref[...], preferred_element_type=jnp.float32)
    y = acc + b_ref[...]                      # bias / ReLU epilogue in f32
    if relu:
        y = jnp.maximum(y, 0.0)
    o_ref[...] = y.astype(o_ref.dtype)


def matmul_bias_act(x, w, b, *, relu, out_dtype, block_m=512):
    """y = act(x @ w + b), tiled over rows.  x:(M,K) bf16, w:(K,N) bf16, b:(1,N) f32."""
    M, K = x.shape
    N = w.shape[1]
    bm = min(block_m, M)
    cost = pl.CostEstimate(
        flops=2 * M * K * N,
        transcendentals=0,
        bytes_accessed=(M * K + K * N) * x.dtype.itemsize
        + M * N * jnp.dtype(out_dtype).itemsize + N * 4,
    )
    return pl.pallas_call(
        functools.partial(_matmul_bias_act_kernel, relu=relu),
        out_shape=jax.ShapeDtypeStruct((M, N), out_dtype),
        grid=(pl.cdiv(M, bm),),
        in_specs=[
            pl.BlockSpec((bm, K), lambda i: (i, 0)),
            pl.BlockSpec((K, N), lambda i: (0, 0)),
            pl.BlockSpec((1, N), lambda i: (0, 0)),
        ],
        out_specs=pl.BlockSpec((bm, N), lambda i: (i, 0)),
        compiler_params=pltpu.CompilerParams(
            dimension_semantics=("parallel",)),
        cost_estimate=cost,
    )(x, w, b)


# ----------------------------------------------------------------------------
# 2x2 / stride-2 max pool — single kernel, lane-packed window
# ----------------------------------------------------------------------------
def _maxpool_kernel(x_ref, o_ref):
    C = o_ref.shape[-1]
    x = x_ref[...].astype(jnp.float32)            # (M, 2, OW, 2*C)
    m = jnp.maximum(x[:, 0], x[:, 1])             # reduce the H pair (leading axis)
    out = jnp.maximum(m[:, :, :C], m[:, :, C:])   # reduce the W pair (lane halves)
    o_ref[...] = out.astype(o_ref.dtype)


def maxpool2x2_pallas(x):
    """2x2/stride-2 max pool of an NHWC tensor (H, W even); reduction in-kernel."""
    B, H, W, C = x.shape
    OH, OW = H // 2, W // 2
    xg = x.reshape(B * OH, 2, OW, 2 * C)          # free row-major regroup
    M = B * OH
    y = pl.pallas_call(
        _maxpool_kernel,
        out_shape=jax.ShapeDtypeStruct((M, OW, C), x.dtype),
        grid=(1,),
        in_specs=[pl.BlockSpec((M, 2, OW, 2 * C), lambda i: (0, 0, 0, 0))],
        out_specs=pl.BlockSpec((M, OW, C), lambda i: (0, 0, 0)),
        compiler_params=pltpu.CompilerParams(
            dimension_semantics=("arbitrary",)),
    )(xg)
    return y.reshape(B, OH, OW, C)


# ----------------------------------------------------------------------------
# Fused FC tail: sensor net (with folded sensor extraction) + classification
# ----------------------------------------------------------------------------
def _fc_tail_kernel(crops_ref, conv_ref,
                    ws1_ref, bs1_ref, ws2_ref, bs2_ref,
                    wf1s_ref, wf1c_ref, bf1_ref,
                    wf2_ref, bf2_ref, wf3_ref, bf3_ref,
                    wf4_ref, bf4_ref, o_ref):
    bf16 = jnp.bfloat16
    f32 = jnp.float32

    def dense(a, w_ref, b_ref, relu):
        y = jnp.dot(a.astype(bf16), w_ref[...], preferred_element_type=f32)
        y = y + b_ref[...]
        return jnp.maximum(y, 0.0) if relu else y

    # sensor branch: the (98 -> 7) crop reduction/scaling is folded into ws1.
    s = dense(crops_ref[...], ws1_ref, bs1_ref, relu=True)          # (B, 128)
    s = dense(s, ws2_ref, bs2_ref, relu=False)                      # (B, 128)

    # classification head; f1 is split (sensor rows / conv rows) so no
    # in-kernel concatenate is needed.
    z = (jnp.dot(s.astype(bf16), wf1s_ref[...], preferred_element_type=f32)
         + jnp.dot(conv_ref[...].astype(bf16), wf1c_ref[...],
                   preferred_element_type=f32)
         + bf1_ref[...])
    z = jnp.maximum(z, 0.0)                                         # (B, 512)
    z = dense(z, wf2_ref, bf2_ref, relu=True)                       # (B, 256)
    z = dense(z, wf3_ref, bf3_ref, relu=True)                       # (B, 64)
    q = dense(z, wf4_ref, bf4_ref, relu=False)                      # (B, A)
    o_ref[...] = q.astype(o_ref.dtype)


def fc_tail_pallas(crops, conv_flat, pp):
    # TODO(synk): tile the batch axis for very large B; a single batch block is
    # plenty up to a few thousand rows (weights ~1 MB bf16 resident in VMEM).
    B = crops.shape[0]
    A = pp["bf4"].shape[1]

    def full_spec(arr):
        n = arr.ndim
        return pl.BlockSpec(arr.shape, lambda i, n=n: (0,) * n)

    args = [crops, conv_flat,
            pp["ws1"], pp["bs1"], pp["ws2"], pp["bs2"],
            pp["wf1s"], pp["wf1c"], pp["bf1"],
            pp["wf2"], pp["bf2"], pp["wf3"], pp["bf3"],
            pp["wf4"], pp["bf4"]]
    return pl.pallas_call(
        _fc_tail_kernel,
        out_shape=jax.ShapeDtypeStruct((B, A), jnp.float32),
        grid=(1,),
        in_specs=[full_spec(a) for a in args],
        out_specs=pl.BlockSpec((B, A), lambda i: (0, 0)),
        compiler_params=pltpu.CompilerParams(
            dimension_semantics=("arbitrary",)),
    )(*args)


# ----------------------------------------------------------------------------
# im2col glue (XLA) feeding the conv matmul kernels
# ----------------------------------------------------------------------------
# TODO(synk): generate these patches in-kernel from a VMEM-resident input tile
# (strided ref reads per (kh,kw)) to remove the HBM patch round-trip entirely.
def _im2col(x, k, stride, pad):
    """(B,H,W,C) -> (B*OH*OW, k*k*C) patches in (kh, kw, ci) order."""
    B, H, W, C = x.shape
    xp = jnp.pad(x, ((0, 0), (pad, pad), (pad, pad), (0, 0)))
    OH = (H + 2 * pad - k) // stride + 1
    OW = (W + 2 * pad - k) // stride + 1
    cols = []
    for kh in range(k):
        for kw in range(k):
            cols.append(xp[:, kh:kh + stride * OH:stride,
                           kw:kw + stride * OW:stride, :])
    p = jnp.stack(cols, axis=3)                      # (B, OH, OW, k*k, C)
    return p.reshape(B * OH * OW, k * k * C), (B, OH, OW)


# ----------------------------------------------------------------------------
# Full DQN forward
# ----------------------------------------------------------------------------
def dqn_forward(obs, pp):
    B = obs.shape[0]
    bf16 = jnp.bfloat16

    # sensor crops (tiny XLA slices; the reductions are folded into ws1)
    crops = jnp.concatenate([
        obs[:, 84:94, 12, 0],                         # speed      (B, 10)
        obs[:, 84:94, 18:25:2, 2].reshape(B, 40),     # abs, 10x4 interleaved
        obs[:, 88, 38:58, 1],                         # steering   (B, 20)
        obs[:, 88, 58:86, 0],                         # gyroscope  (B, 28)
    ], axis=1)                                        # (B, 98) f32

    # conv trunk: im2col + tiled MXU matmuls (bf16 operands, f32 accumulation)
    p1, _ = _im2col(obs.astype(bf16), 5, 3, 2)                     # (B*1024, 75)
    h1 = matmul_bias_act(p1, pp["c1w"], pp["c1b"], relu=True,
                         out_dtype=bf16)                           # (B*1024, 12)
    p2, _ = _im2col(h1.reshape(B, 32, 32, 12), 5, 2, 2)            # (B*256, 300)
    h2 = matmul_bias_act(p2, pp["c2w"], pp["c2b"], relu=True,
                         out_dtype=bf16)                           # (B*256, 24)
    pooled = maxpool2x2_pallas(h2.reshape(B, 16, 16, 24))          # (B, 8, 8, 24)
    p3, _ = _im2col(pooled, 5, 2, 2)                               # (B*16, 600)
    h3 = matmul_bias_act(p3, pp["c3w"], pp["c3b"], relu=True,
                         out_dtype=jnp.float32)                    # (B*16, 32)
    # NHWC flatten (f1's conv rows are pre-permuted to match -> no transpose)
    conv_flat = h3.reshape(B, 32 * 4 * 4)                          # (B, 512)

    return fc_tail_pallas(crops, conv_flat, pp)                    # (B, A)


# ----------------------------------------------------------------------------
# One-time weight re-layout (outside the per-step path)
# ----------------------------------------------------------------------------
def prepare_params(p):
    bf16 = jnp.bfloat16
    f32 = jnp.float32

    def conv_w(w):  # (Co, Ci, K, K) -> (K*K*Ci, Co), (kh, kw, ci) row order
        Co, Ci, K, _ = w.shape
        return jnp.transpose(w, (2, 3, 1, 0)).reshape(K * K * Ci, Co).astype(bf16)

    # constant selection/scale matrix implementing extract_sensor_values on the
    # (B,98) crop vector: [speed(10) | abs 10x4 interleaved (40) | steer(20) | gyro(28)]
    sel = np.zeros((98, 7), np.float32)
    sel[0:10, 0] = 1.0 / 255.0
    for i in range(10):
        for j in range(4):
            sel[10 + 4 * i + j, 1 + j] = 1.0 / 255.0
    sel[50:70, 5] = 1.0
    sel[70:98, 6] = 1.0
    ws1 = (jnp.asarray(sel) @ p["s1w"].T).astype(bf16)             # (98, 128)

    f1wT = p["f1w"].T                                              # (640, 512)
    wf1s = f1wT[:128].astype(bf16)                                 # sensor rows
    # conv rows are stored for NCHW flatten (c*16 + hw); reorder to NHWC (hw*32 + c)
    wf1c = (f1wT[128:].reshape(32, 16, 512)
            .transpose(1, 0, 2).reshape(512, 512).astype(bf16))

    row = lambda b: b.reshape(1, -1).astype(f32)
    return {
        "c1w": conv_w(p["c1w"]), "c1b": row(p["c1b"]),
        "c2w": conv_w(p["c2w"]), "c2b": row(p["c2b"]),
        "c3w": conv_w(p["c3w"]), "c3b": row(p["c3b"]),
        "ws1": ws1, "bs1": row(p["s1b"]),
        "ws2": p["s2w"].T.astype(bf16), "bs2": row(p["s2b"]),
        "wf1s": wf1s, "wf1c": wf1c, "bf1": row(p["f1b"]),
        "wf2": p["f2w"].T.astype(bf16), "bf2": row(p["f2b"]),
        "wf3": p["f3w"].T.astype(bf16), "bf3": row(p["f3b"]),
        "wf4": p["f4w"].T.astype(bf16), "bf4": row(p["f4b"]),
    }


# ----------------------------------------------------------------------------
# Pure-JAX f32 reference (matches the PyTorch module semantics)
# ----------------------------------------------------------------------------
def dqn_reference(obs, p):
    B = obs.shape[0]
    speed = obs[:, 84:94, 12, 0].reshape(B, -1).sum(1, keepdims=True) / 255.0
    abs_s = obs[:, 84:94, 18:25:2, 2].reshape(B, 10, 4).sum(1) / 255.0
    steer = obs[:, 88, 38:58, 1].reshape(B, -1).sum(1, keepdims=True)
    gyro = obs[:, 88, 58:86, 0].reshape(B, -1).sum(1, keepdims=True)
    sensor_in = jnp.concatenate([speed, abs_s, steer, gyro], axis=1)

    def conv(x, w, b, stride, pad):
        w_hwio = jnp.transpose(w, (2, 3, 1, 0))
        y = jax.lax.conv_general_dilated(
            x, w_hwio, (stride, stride), [(pad, pad), (pad, pad)],
            dimension_numbers=("NHWC", "HWIO", "NHWC"))
        return y + b

    h = jax.nn.relu(conv(obs, p["c1w"], p["c1b"], 3, 2))
    h = jax.nn.relu(conv(h, p["c2w"], p["c2b"], 2, 2))
    h = jax.lax.reduce_window(h, -jnp.inf, jax.lax.max,
                              (1, 2, 2, 1), (1, 2, 2, 1), "VALID")
    h = jax.nn.relu(conv(h, p["c3w"], p["c3b"], 2, 2))
    conv_flat = jnp.transpose(h, (0, 3, 1, 2)).reshape(B, -1)

    s = jax.nn.relu(sensor_in @ p["s1w"].T + p["s1b"])
    s = s @ p["s2w"].T + p["s2b"]
    z = jnp.concatenate([s, conv_flat], axis=1)
    z = jax.nn.relu(z @ p["f1w"].T + p["f1b"])
    z = jax.nn.relu(z @ p["f2w"].T + p["f2b"])
    z = jax.nn.relu(z @ p["f3w"].T + p["f3b"])
    return z @ p["f4w"].T + p["f4b"]


# ----------------------------------------------------------------------------
# Deterministic parameter init (PyTorch-layout shapes)
# ----------------------------------------------------------------------------
def init_params(key, action_size):
    shapes = {
        "c1w": (12, 3, 5, 5), "c1b": (12,),
        "c2w": (24, 12, 5, 5), "c2b": (24,),
        "c3w": (32, 24, 5, 5), "c3b": (32,),
        "s1w": (128, 7), "s1b": (128,),
        "s2w": (128, 128), "s2b": (128,),
        "f1w": (512, 32 * 4 * 4 + 128), "f1b": (512,),
        "f2w": (256, 512), "f2b": (256,),
        "f3w": (64, 256), "f3b": (64,),
        "f4w": (action_size, 64), "f4b": (action_size,),
    }
    params = {}
    keys = jax.random.split(key, len(shapes))
    for (name, shape), k in zip(shapes.items(), keys):
        if len(shape) == 4:
            fan_in = shape[1] * shape[2] * shape[3]
        elif len(shape) == 2:
            fan_in = shape[1]
        else:
            fan_in = shape[0]
        scale = 1.0 / float(np.sqrt(fan_in))
        params[name] = jax.random.normal(k, shape, dtype=jnp.float32) * scale
    return params


if __name__ == "__main__":
    ACTION_SIZE = 5
    BATCH = 2

    key = jax.random.PRNGKey(0)
    k_obs, k_par = jax.random.split(key)
    # Pixel-like observation in [0, 255], (B, 96, 96, 3) as the module implies
    # (hard-coded sensor crops + the 32*4*4 flatten size require 96x96x3).
    obs = jax.random.uniform(k_obs, (BATCH, 96, 96, 3),
                             minval=0.0, maxval=255.0, dtype=jnp.float32)
    params = init_params(k_par, ACTION_SIZE)
    prepped = prepare_params(params)          # one-time weight re-layout

    q_pallas = jax.block_until_ready(jax.jit(dqn_forward)(obs, prepped))
    q_ref = jax.block_until_ready(jax.jit(dqn_reference)(obs, params))

    # loose sanity check: Pallas path uses bf16 matmul operands (f32 accumulate)
    np.testing.assert_allclose(np.asarray(q_pallas), np.asarray(q_ref),
                               rtol=5e-2, atol=2.0)
    assert q_pallas.shape == (BATCH, ACTION_SIZE)

    print("KERNEL_OK")
</pallas_src>

<mosaic_0001>
module attributes {stable_mosaic.version = 11 : i64} {
  func.func @_matmul_bias_act_kernel(%arg0: i32, %arg1: memref<512x75xbf16, #tpu.memory_space<vmem>>, %arg2: memref<75x12xbf16, #tpu.memory_space<vmem>>, %arg3: memref<1x12xf32, #tpu.memory_space<vmem>>, %arg4: memref<512x12xbf16, #tpu.memory_space<vmem>>) attributes {dimension_semantics = [#tpu.dimension_semantics<parallel>], iteration_bounds = array<i64: 4>, scalar_prefetch = 0 : i64, scratch_operands = 0 : i64, tpu.core_type = #tpu.core_type<tc>, window_params = [{transform_indices = @transform_0, window_bounds = array<i64: 512, 75>}, {pipeline_mode = #tpu.pipeline_mode<synchronous>, transform_indices = @transform_1, window_bounds = array<i64: 75, 12>}, {pipeline_mode = #tpu.pipeline_mode<synchronous>, transform_indices = @transform_2, window_bounds = array<i64: 1, 12>}, {transform_indices = @transform_3, window_bounds = array<i64: 512, 12>}]} {
    %c0 = arith.constant 0 : index
    %c0_0 = arith.constant 0 : index
    %0 = vector.load %arg1[%c0, %c0_0] : memref<512x75xbf16, #tpu.memory_space<vmem>>, vector<512x75xbf16>
    %c0_1 = arith.constant 0 : index
    %c0_2 = arith.constant 0 : index
    %1 = vector.load %arg2[%c0_1, %c0_2] : memref<75x12xbf16, #tpu.memory_space<vmem>>, vector<75x12xbf16>
    %cst = arith.constant dense<0.000000e+00> : vector<512x12xf32>
    %2 = tpu.matmul %0, %1, %cst {dimension_numbers = #tpu.dot_dimension_numbers<[1], [0], [0], [1], [0, 0, 1, 1], [], []>} : vector<512x75xbf16>, vector<75x12xbf16>, vector<512x12xf32> -> vector<512x12xf32>
    %c0_3 = arith.constant 0 : index
    %c0_4 = arith.constant 0 : index
    %3 = vector.load %arg3[%c0_3, %c0_4] : memref<1x12xf32, #tpu.memory_space<vmem>>, vector<1x12xf32>
    %4 = vector.broadcast %3 : vector<1x12xf32> to vector<512x12xf32>
    %5 = arith.addf %2, %4 : vector<512x12xf32>
    %cst_5 = arith.constant 0.000000e+00 : f32
    %6 = vector.broadcast %cst_5 : f32 to vector<512x12xf32>
    %7 = arith.maximumf %5, %6 : vector<512x12xf32>
    %8 = arith.truncf %7 : vector<512x12xf32> to vector<512x12xbf16>
    %c0_6 = arith.constant 0 : index
    %c0_7 = arith.constant 0 : index
    %9 = vector.load %arg4[%c0_6, %c0_7] : memref<512x12xbf16, #tpu.memory_space<vmem>>, vector<512x12xbf16>
    tpu.vector_store %arg4[%c0_6, %c0_7], %8 {strides = array<i32>} : memref<512x12xbf16, #tpu.memory_space<vmem>>, vector<512x12xbf16>,
    return
  }
  func.func @transform_0(%arg0: i32) -> (i32, i32) {
    %c0_i32 = arith.constant 0 : i32
    %c0_i32_0 = arith.constant 0 : i32
    return %arg0, %c0_i32 : i32, i32
  }
  func.func @transform_1(%arg0: i32) -> (i32, i32) {
    %c0_i32 = arith.constant 0 : i32
    %c0_i32_0 = arith.constant 0 : i32
    %c0_i32_1 = arith.constant 0 : i32
    return %c0_i32, %c0_i32_0 : i32, i32
  }
  func.func @transform_2(%arg0: i32) -> (i32, i32) {
    %c0_i32 = arith.constant 0 : i32
    %c0_i32_0 = arith.constant 0 : i32
    %c0_i32_1 = arith.constant 0 : i32
    return %c0_i32, %c0_i32_0 : i32, i32
  }
  func.func @transform_3(%arg0: i32) -> (i32, i32) {
    %c0_i32 = arith.constant 0 : i32
    %c0_i32_0 = arith.constant 0 : i32
    return %arg0, %c0_i32 : i32, i32
  }
}

module attributes {stable_mosaic.version = 11 : i64} {
  func.func @_matmul_bias_act_kernel(%arg0: i32, %arg1: memref<512x300xbf16, #tpu.memory_space<vmem>>, %arg2: memref<300x24xbf16, #tpu.memory_space<vmem>>, %arg3: memref<1x24xf32, #tpu.memory_space<vmem>>, %arg4: memref<512x24xbf16, #tpu.memory_space<vmem>>) attributes {dimension_semantics = [#tpu.dimension_semantics<parallel>], iteration_bounds = array<i64: 1>, scalar_prefetch = 0 : i64, scratch_operands = 0 : i64, tpu.core_type = #tpu.core_type<tc>, window_params = [{transform_indices = @transform_0, window_bounds = array<i64: 512, 300>}, {pipeline_mode = #tpu.pipeline_mode<synchronous>, transform_indices = @transform_1, window_bounds = array<i64: 300, 24>}, {pipeline_mode = #tpu.pipeline_mode<synchronous>, transform_indices = @transform_2, window_bounds = array<i64: 1, 24>}, {transform_indices = @transform_3, window_bounds = array<i64: 512, 24>}]} {
    %c0 = arith.constant 0 : index
    %c0_0 = arith.constant 0 : index
    %0 = vector.load %arg1[%c0, %c0_0] : memref<512x300xbf16, #tpu.memory_space<vmem>>, vector<512x300xbf16>
    %c0_1 = arith.constant 0 : index
    %c0_2 = arith.constant 0 : index
    %1 = vector.load %arg2[%c0_1, %c0_2] : memref<300x24xbf16, #tpu.memory_space<vmem>>, vector<300x24xbf16>
    %cst = arith.constant dense<0.000000e+00> : vector<512x24xf32>
    %2 = tpu.matmul %0, %1, %cst {dimension_numbers = #tpu.dot_dimension_numbers<[1], [0], [0], [1], [0, 0, 1, 1], [], []>} : vector<512x300xbf16>, vector<300x24xbf16>, vector<512x24xf32> -> vector<512x24xf32>
    %c0_3 = arith.constant 0 : index
    %c0_4 = arith.constant 0 : index
    %3 = vector.load %arg3[%c0_3, %c0_4] : memref<1x24xf32, #tpu.memory_space<vmem>>, vector<1x24xf32>
    %4 = vector.broadcast %3 : vector<1x24xf32> to vector<512x24xf32>
    %5 = arith.addf %2, %4 : vector<512x24xf32>
    %cst_5 = arith.constant 0.000000e+00 : f32
    %6 = vector.broadcast %cst_5 : f32 to vector<512x24xf32>
    %7 = arith.maximumf %5, %6 : vector<512x24xf32>
    %8 = arith.truncf %7 : vector<512x24xf32> to vector<512x24xbf16>
    %c0_6 = arith.constant 0 : index
    %c0_7 = arith.constant 0 : index
    %9 = vector.load %arg4[%c0_6, %c0_7] : memref<512x24xbf16, #tpu.memory_space<vmem>>, vector<512x24xbf16>
    tpu.vector_store %arg4[%c0_6, %c0_7], %8 {strides = array<i32>} : memref<512x24xbf16, #tpu.memory_space<vmem>>, vector<512x24xbf16>,
    return
  }
  func.func @transform_0(%arg0: i32) -> (i32, i32) {
    %c0_i32 = arith.constant 0 : i32
    %c0_i32_0 = arith.constant 0 : i32
    return %arg0, %c0_i32 : i32, i32
  }
  func.func @transform_1(%arg0: i32) -> (i32, i32) {
    %c0_i32 = arith.constant 0 : i32
    %c0_i32_0 = arith.constant 0 : i32
    %c0_i32_1 = arith.constant 0 : i32
    return %c0_i32, %c0_i32_0 : i32, i32
  }
  func.func @transform_2(%arg0: i32) -> (i32, i32) {
    %c0_i32 = arith.constant 0 : i32
    %c0_i32_0 = arith.constant 0 : i32
    %c0_i32_1 = arith.constant 0 : i32
    return %c0_i32, %c0_i32_0 : i32, i32
  }
  func.func @transform_3(%arg0: i32) -> (i32, i32) {
    %c0_i32 = arith.constant 0 : i32
    %c0_i32_0 = arith.constant 0 : i32
    return %arg0, %c0_i32 : i32, i32
  }
}

module attributes {stable_mosaic.version = 11 : i64} {
  func.func @_maxpool_kernel(%arg0: i32, %arg1: memref<16x2x8x48xbf16, #tpu.memory_space<vmem>>, %arg2: memref<16x8x24xbf16, #tpu.memory_space<vmem>>) attributes {dimension_semantics = [#tpu.dimension_semantics<arbitrary>], iteration_bounds = array<i64: 1>, scalar_prefetch = 0 : i64, scratch_operands = 0 : i64, tpu.core_type = #tpu.core_type<tc>, window_params = [{pipeline_mode = #tpu.pipeline_mode<synchronous>, transform_indices = @transform_0, window_bounds = array<i64: 16, 2, 8, 48>}, {pipeline_mode = #tpu.pipeline_mode<synchronous>, transform_indices = @transform_1, window_bounds = array<i64: 16, 8, 24>}]} {
    %c0 = arith.constant 0 : index
    %c0_0 = arith.constant 0 : index
    %c0_1 = arith.constant 0 : index
    %c0_2 = arith.constant 0 : index
    %0 = vector.load %arg1[%c0, %c0_0, %c0_1, %c0_2] : memref<16x2x8x48xbf16, #tpu.memory_space<vmem>>, vector<16x2x8x48xbf16>
    %1 = arith.extf %0 : vector<16x2x8x48xbf16> to vector<16x2x8x48xf32>
    %2 = vector.extract_strided_slice %1 {offsets = [0, 0, 0, 0], sizes = [16, 1, 8, 48], strides = [1, 1, 1, 1]} : vector<16x2x8x48xf32> to vector<16x1x8x48xf32>
    %3 = vector.shape_cast %2 : vector<16x1x8x48xf32> to vector<16x8x48xf32>
    %4 = vector.extract_strided_slice %1 {offsets = [0, 1, 0, 0], sizes = [16, 1, 8, 48], strides = [1, 1, 1, 1]} : vector<16x2x8x48xf32> to vector<16x1x8x48xf32>
    %5 = vector.shape_cast %4 : vector<16x1x8x48xf32> to vector<16x8x48xf32>
    %6 = arith.maximumf %3, %5 : vector<16x8x48xf32>
    %7 = vector.extract_strided_slice %6 {offsets = [0, 0, 0], sizes = [16, 8, 24], strides = [1, 1, 1]} : vector<16x8x48xf32> to vector<16x8x24xf32>
    %8 = vector.extract_strided_slice %6 {offsets = [0, 0, 24], sizes = [16, 8, 24], strides = [1, 1, 1]} : vector<16x8x48xf32> to vector<16x8x24xf32>
    %9 = arith.maximumf %7, %8 : vector<16x8x24xf32>
    %10 = arith.truncf %9 : vector<16x8x24xf32> to vector<16x8x24xbf16>
    %c0_3 = arith.constant 0 : index
    %c0_4 = arith.constant 0 : index
    %c0_5 = arith.constant 0 : index
    %11 = vector.load %arg2[%c0_3, %c0_4, %c0_5] : memref<16x8x24xbf16, #tpu.memory_space<vmem>>, vector<16x8x24xbf16>
    tpu.vector_store %arg2[%c0_3, %c0_4, %c0_5], %10 {strides = array<i32>} : memref<16x8x24xbf16, #tpu.memory_space<vmem>>, vector<16x8x24xbf16>,
    return
  }
  func.func @transform_0(%arg0: i32) -> (i32, i32, i32, i32) {
    %c0_i32 = arith.constant 0 : i32
    %c0_i32_0 = arith.constant 0 : i32
    %c0_i32_1 = arith.constant 0 : i32
    %c0_i32_2 = arith.constant 0 : i32
    %c0_i32_3 = arith.constant 0 : i32
    return %c0_i32, %c0_i32_0, %c0_i32_1, %c0_i32_2 : i32, i32, i32, i32
  }
  func.func @transform_1(%arg0: i32) -> (i32, i32, i32) {
    %c0_i32 = arith.constant 0 : i32
    %c0_i32_0 = arith.constant 0 : i32
    %c0_i32_1 = arith.constant 0 : i32
    %c0_i32_2 = arith.constant 0 : i32
    return %c0_i32, %c0_i32_0, %c0_i32_1 : i32, i32, i32
  }
}

module attributes {stable_mosaic.version = 11 : i64} {
  func.func @_matmul_bias_act_kernel(%arg0: i32, %arg1: memref<32x600xbf16, #tpu.memory_space<vmem>>, %arg2: memref<600x32xbf16, #tpu.memory_space<vmem>>, %arg3: memref<1x32xf32, #tpu.memory_space<vmem>>, %arg4: memref<32x32xf32, #tpu.memory_space<vmem>>) attributes {dimension_semantics = [#tpu.dimension_semantics<parallel>], iteration_bounds = array<i64: 1>, scalar_prefetch = 0 : i64, scratch_operands = 0 : i64, tpu.core_type = #tpu.core_type<tc>, window_params = [{transform_indices = @transform_0, window_bounds = array<i64: 32, 600>}, {pipeline_mode = #tpu.pipeline_mode<synchronous>, transform_indices = @transform_1, window_bounds = array<i64: 600, 32>}, {pipeline_mode = #tpu.pipeline_mode<synchronous>, transform_indices = @transform_2, window_bounds = array<i64: 1, 32>}, {transform_indices = @transform_3, window_bounds = array<i64: 32, 32>}]} {
    %c0 = arith.constant 0 : index
    %c0_0 = arith.constant 0 : index
    %0 = vector.load %arg1[%c0, %c0_0] : memref<32x600xbf16, #tpu.memory_space<vmem>>, vector<32x600xbf16>
    %c0_1 = arith.constant 0 : index
    %c0_2 = arith.constant 0 : index
    %1 = vector.load %arg2[%c0_1, %c0_2] : memref<600x32xbf16, #tpu.memory_space<vmem>>, vector<600x32xbf16>
    %cst = arith.constant dense<0.000000e+00> : vector<32x32xf32>
    %2 = tpu.matmul %0, %1, %cst {dimension_numbers = #tpu.dot_dimension_numbers<[1], [0], [0], [1], [0, 0, 1, 1], [], []>} : vector<32x600xbf16>, vector<600x32xbf16>, vector<32x32xf32> -> vector<32x32xf32>
    %c0_3 = arith.constant 0 : index
    %c0_4 = arith.constant 0 : index
    %3 = vector.load %arg3[%c0_3, %c0_4] : memref<1x32xf32, #tpu.memory_space<vmem>>, vector<1x32xf32>
    %4 = vector.broadcast %3 : vector<1x32xf32> to vector<32x32xf32>
    %5 = arith.addf %2, %4 : vector<32x32xf32>
    %cst_5 = arith.constant 0.000000e+00 : f32
    %6 = vector.broadcast %cst_5 : f32 to vector<32x32xf32>
    %7 = arith.maximumf %5, %6 : vector<32x32xf32>
    %c0_6 = arith.constant 0 : index
    %c0_7 = arith.constant 0 : index
    %8 = vector.load %arg4[%c0_6, %c0_7] : memref<32x32xf32, #tpu.memory_space<vmem>>, vector<32x32xf32>
    tpu.vector_store %arg4[%c0_6, %c0_7], %7 {strides = array<i32>} : memref<32x32xf32, #tpu.memory_space<vmem>>, vector<32x32xf32>,
    return
  }
  func.func @transform_0(%arg0: i32) -> (i32, i32) {
    %c0_i32 = arith.constant 0 : i32
    %c0_i32_0 = arith.constant 0 : i32
    return %arg0, %c0_i32 : i32, i32
  }
  func.func @transform_1(%arg0: i32) -> (i32, i32) {
    %c0_i32 = arith.constant 0 : i32
    %c0_i32_0 = arith.constant 0 : i32
    %c0_i32_1 = arith.constant 0 : i32
    return %c0_i32, %c0_i32_0 : i32, i32
  }
  func.func @transform_2(%arg0: i32) -> (i32, i32) {
    %c0_i32 = arith.constant 0 : i32
    %c0_i32_0 = arith.constant 0 : i32
    %c0_i32_1 = arith.constant 0 : i32
    return %c0_i32, %c0_i32_0 : i32, i32
  }
  func.func @transform_3(%arg0: i32) -> (i32, i32) {
    %c0_i32 = arith.constant 0 : i32
    %c0_i32_0 = arith.constant 0 : i32
    return %arg0, %c0_i32 : i32, i32
  }
}

module attributes {stable_mosaic.version = 11 : i64} {
  func.func @_fc_tail_kernel(%arg0: i32, %arg1: memref<2x98xf32, #tpu.memory_space<vmem>>, %arg2: memref<2x512xf32, #tpu.memory_space<vmem>>, %arg3: memref<98x128xbf16, #tpu.memory_space<vmem>>, %arg4: memref<1x128xf32, #tpu.memory_space<vmem>>, %arg5: memref<128x128xbf16, #tpu.memory_space<vmem>>, %arg6: memref<1x128xf32, #tpu.memory_space<vmem>>, %arg7: memref<128x512xbf16, #tpu.memory_space<vmem>>, %arg8: memref<512x512xbf16, #tpu.memory_space<vmem>>, %arg9: memref<1x512xf32, #tpu.memory_space<vmem>>, %arg10: memref<512x256xbf16, #tpu.memory_space<vmem>>, %arg11: memref<1x256xf32, #tpu.memory_space<vmem>>, %arg12: memref<256x64xbf16, #tpu.memory_space<vmem>>, %arg13: memref<1x64xf32, #tpu.memory_space<vmem>>, %arg14: memref<64x5xbf16, #tpu.memory_space<vmem>>, %arg15: memref<1x5xf32, #tpu.memory_space<vmem>>, %arg16: memref<2x5xf32, #tpu.memory_space<vmem>>) attributes {dimension_semantics = [#tpu.dimension_semantics<arbitrary>], iteration_bounds = array<i64: 1>, scalar_prefetch = 0 : i64, scratch_operands = 0 : i64, tpu.core_type = #tpu.core_type<tc>, window_params = [{pipeline_mode = #tpu.pipeline_mode<synchronous>, transform_indices = @transform_0, window_bounds = array<i64: 2, 98>}, {pipeline_mode = #tpu.pipeline_mode<synchronous>, transform_indices = @transform_1, window_bounds = array<i64: 2, 512>}, {pipeline_mode = #tpu.pipeline_mode<synchronous>, transform_indices = @transform_2, window_bounds = array<i64: 98, 128>}, {pipeline_mode = #tpu.pipeline_mode<synchronous>, transform_indices = @transform_3, window_bounds = array<i64: 1, 128>}, {pipeline_mode = #tpu.pipeline_mode<synchronous>, transform_indices = @transform_4, window_bounds = array<i64: 128, 128>}, {pipeline_mode = #tpu.pipeline_mode<synchronous>, transform_indices = @transform_5, window_bounds = array<i64: 1, 128>}, {pipeline_mode = #tpu.pipeline_mode<synchronous>, transform_indices = @transform_6, window_bounds = array<i64: 128, 512>}, {pipeline_mode = #tpu.pipeline_mode<synchronous>, transform_indices = @transform_7, window_bounds = array<i64: 512, 512>}, {pipeline_mode = #tpu.pipeline_mode<synchronous>, transform_indices = @transform_8, window_bounds = array<i64: 1, 512>}, {pipeline_mode = #tpu.pipeline_mode<synchronous>, transform_indices = @transform_9, window_bounds = array<i64: 512, 256>}, {pipeline_mode = #tpu.pipeline_mode<synchronous>, transform_indices = @transform_10, window_bounds = array<i64: 1, 256>}, {pipeline_mode = #tpu.pipeline_mode<synchronous>, transform_indices = @transform_11, window_bounds = array<i64: 256, 64>}, {pipeline_mode = #tpu.pipeline_mode<synchronous>, transform_indices = @transform_12, window_bounds = array<i64: 1, 64>}, {pipeline_mode = #tpu.pipeline_mode<synchronous>, transform_indices = @transform_13, window_bounds = array<i64: 64, 5>}, {pipeline_mode = #tpu.pipeline_mode<synchronous>, transform_indices = @transform_14, window_bounds = array<i64: 1, 5>}, {pipeline_mode = #tpu.pipeline_mode<synchronous>, transform_indices = @transform_15, window_bounds = array<i64: 2, 5>}]} {
    %c0 = arith.constant 0 : index
    %c0_0 = arith.constant 0 : index
    %0 = vector.load %arg1[%c0, %c0_0] : memref<2x98xf32, #tpu.memory_space<vmem>>, vector<2x98xf32>
    %1 = arith.truncf %0 : vector<2x98xf32> to vector<2x98xbf16>
    %c0_1 = arith.constant 0 : index
    %c0_2 = arith.constant 0 : index
    %2 = vector.load %arg3[%c0_1, %c0_2] : memref<98x128xbf16, #tpu.memory_space<vmem>>, vector<98x128xbf16>
    %cst = arith.constant dense<0.000000e+00> : vector<2x128xf32>
    %3 = tpu.matmul %1, %2, %cst {dimension_numbers = #tpu.dot_dimension_numbers<[1], [0], [0], [1], [0, 0, 1, 1], [], []>} : vector<2x98xbf16>, vector<98x128xbf16>, vector<2x128xf32> -> vector<2x128xf32>
    %c0_3 = arith.constant 0 : index
    %c0_4 = arith.constant 0 : index
    %4 = vector.load %arg4[%c0_3, %c0_4] : memref<1x128xf32, #tpu.memory_space<vmem>>, vector<1x128xf32>
    %5 = vector.broadcast %4 : vector<1x128xf32> to vector<2x128xf32>
    %6 = arith.addf %3, %5 : vector<2x128xf32>
    %cst_5 = arith.constant 0.000000e+00 : f32
    %7 = vector.broadcast %cst_5 : f32 to vector<2x128xf32>
    %8 = arith.maximumf %6, %7 : vector<2x128xf32>
    %9 = arith.truncf %8 : vector<2x128xf32> to vector<2x128xbf16>
    %c0_6 = arith.constant 0 : index
    %c0_7 = arith.constant 0 : index
    %10 = vector.load %arg5[%c0_6, %c0_7] : memref<128x128xbf16, #tpu.memory_space<vmem>>, vector<128x128xbf16>
    %cst_8 = arith.constant dense<0.000000e+00> : vector<2x128xf32>
    %11 = tpu.matmul %9, %10, %cst_8 {dimension_numbers = #tpu.dot_dimension_numbers<[1], [0], [0], [1], [0, 0, 1, 1], [], []>} : vector<2x128xbf16>, vector<128x128xbf16>, vector<2x128xf32> -> vector<2x128xf32>
    %c0_9 = arith.constant 0 : index
    %c0_10 = arith.constant 0 : index
    %12 = vector.load %arg6[%c0_9, %c0_10] : memref<1x128xf32, #tpu.memory_space<vmem>>, vector<1x128xf32>
    %13 = vector.broadcast %12 : vector<1x128xf32> to vector<2x128xf32>
    %14 = arith.addf %11, %13 : vector<2x128xf32>
    %15 = arith.truncf %14 : vector<2x128xf32> to vector<2x128xbf16>
    %c0_11 = arith.constant 0 : index
    %c0_12 = arith.constant 0 : index
    %16 = vector.load %arg7[%c0_11, %c0_12] : memref<128x512xbf16, #tpu.memory_space<vmem>>, vector<128x512xbf16>
    %cst_13 = arith.constant dense<0.000000e+00> : vector<2x512xf32>
    %17 = tpu.matmul %15, %16, %cst_13 {dimension_numbers = #tpu.dot_dimension_numbers<[1], [0], [0], [1], [0, 0, 1, 1], [], []>} : vector<2x128xbf16>, vector<128x512xbf16>, vector<2x512xf32> -> vector<2x512xf32>
    %c0_14 = arith.constant 0 : index
    %c0_15 = arith.constant 0 : index
    %18 = vector.load %arg2[%c0_14, %c0_15] : memref<2x512xf32, #tpu.memory_space<vmem>>, vector<2x512xf32>
    %19 = arith.truncf %18 : vector<2x512xf32> to vector<2x512xbf16>
    %c0_16 = arith.constant 0 : index
    %c0_17 = arith.constant 0 : index
    %20 = vector.load %arg8[%c0_16, %c0_17] : memref<512x512xbf16, #tpu.memory_space<vmem>>, vector<512x512xbf16>
    %cst_18 = arith.constant dense<0.000000e+00> : vector<2x512xf32>
    %21 = tpu.matmul %19, %20, %cst_18 {dimension_numbers = #tpu.dot_dimension_numbers<[1], [0], [0], [1], [0, 0, 1, 1], [], []>} : vector<2x512xbf16>, vector<512x512xbf16>, vector<2x512xf32> -> vector<2x512xf32>
    %22 = arith.addf %17, %21 : vector<2x512xf32>
    %c0_19 = arith.constant 0 : index
    %c0_20 = arith.constant 0 : index
    %23 = vector.load %arg9[%c0_19, %c0_20] : memref<1x512xf32, #tpu.memory_space<vmem>>, vector<1x512xf32>
    %24 = vector.broadcast %23 : vector<1x512xf32> to vector<2x512xf32>
    %25 = arith.addf %22, %24 : vector<2x512xf32>
    %cst_21 = arith.constant 0.000000e+00 : f32
    %26 = vector.broadcast %cst_21 : f32 to vector<2x512xf32>
    %27 = arith.maximumf %25, %26 : vector<2x512xf32>
    %28 = arith.truncf %27 : vector<2x512xf32> to vector<2x512xbf16>
    %c0_22 = arith.constant 0 : index
    %c0_23 = arith.constant 0 : index
    %29 = vector.load %arg10[%c0_22, %c0_23] : memref<512x256xbf16, #tpu.memory_space<vmem>>, vector<512x256xbf16>
    %cst_24 = arith.constant dense<0.000000e+00> : vector<2x256xf32>
    %30 = tpu.matmul %28, %29, %cst_24 {dimension_numbers = #tpu.dot_dimension_numbers<[1], [0], [0], [1], [0, 0, 1, 1], [], []>} : vector<2x512xbf16>, vector<512x256xbf16>, vector<2x256xf32> -> vector<2x256xf32>
    %c0_25 = arith.constant 0 : index
    %c0_26 = arith.constant 0 : index
    %31 = vector.load %arg11[%c0_25, %c0_26] : memref<1x256xf32, #tpu.memory_space<vmem>>, vector<1x256xf32>
    %32 = vector.broadcast %31 : vector<1x256xf32> to vector<2x256xf32>
    %33 = arith.addf %30, %32 : vector<2x256xf32>
    %cst_27 = arith.constant 0.000000e+00 : f32
    %34 = vector.broadcast %cst_27 : f32 to vector<2x256xf32>
    %35 = arith.maximumf %33, %34 : vector<2x256xf32>
    %36 = arith.truncf %35 : vector<2x256xf32> to vector<2x256xbf16>
    %c0_28 = arith.constant 0 : index
    %c0_29 = arith.constant 0 : index
    %37 = vector.load %arg12[%c0_28, %c0_29] : memref<256x64xbf16, #tpu.memory_space<vmem>>, vector<256x64xbf16>
    %cst_30 = arith.constant dense<0.000000e+00> : vector<2x64xf32>
    %38 = tpu.matmul %36, %37, %cst_30 {dimension_numbers = #tpu.dot_dimension_numbers<[1], [0], [0], [1], [0, 0, 1, 1], [], []>} : vector<2x256xbf16>, vector<256x64xbf16>, vector<2x64xf32> -> vector<2x64xf32>
    %c0_31 = arith.constant 0 : index
    %c0_32 = arith.constant 0 : index
    %39 = vector.load %arg13[%c0_31, %c0_32] : memref<1x64xf32, #tpu.memory_space<vmem>>, vector<1x64xf32>
    %40 = vector.broadcast %39 : vector<1x64xf32> to vector<2x64xf32>
    %41 = arith.addf %38, %40 : vector<2x64xf32>
    %cst_33 = arith.constant 0.000000e+00 : f32
    %42 = vector.broadcast %cst_33 : f32 to vector<2x64xf32>
    %43 = arith.maximumf %41, %42 : vector<2x64xf32>
    %44 = arith.truncf %43 : vector<2x64xf32> to vector<2x64xbf16>
    %c0_34 = arith.constant 0 : index
    %c0_35 = arith.constant 0 : index
    %45 = vector.load %arg14[%c0_34, %c0_35] : memref<64x5xbf16, #tpu.memory_space<vmem>>, vector<64x5xbf16>
    %cst_36 = arith.constant dense<0.000000e+00> : vector<2x5xf32>
    %46 = tpu.matmul %44, %45, %cst_36 {dimension_numbers = #tpu.dot_dimension_numbers<[1], [0], [0], [1], [0, 0, 1, 1], [], []>} : vector<2x64xbf16>, vector<64x5xbf16>, vector<2x5xf32> -> vector<2x5xf32>
    %c0_37 = arith.constant 0 : index
    %c0_38 = arith.constant 0 : index
    %47 = vector.load %arg15[%c0_37, %c0_38] : memref<1x5xf32, #tpu.memory_space<vmem>>, vector<1x5xf32>
    %48 = vector.broadcast %47 : vector<1x5xf32> to vector<2x5xf32>
    %49 = arith.addf %46, %48 : vector<2x5xf32>
    %c0_39 = arith.constant 0 : index
    %c0_40 = arith.constant 0 : index
    %50 = vector.load %arg16[%c0_39, %c0_40] : memref<2x5xf32, #tpu.memory_space<vmem>>, vector<2x5xf32>
    tpu.vector_store %arg16[%c0_39, %c0_40], %49 {strides = array<i32>} : memref<2x5xf32, #tpu.memory_space<vmem>>, vector<2x5xf32>,
    return
  }
  func.func @transform_0(%arg0: i32) -> (i32, i32) {
    %c0_i32 = arith.constant 0 : i32
    %c0_i32_0 = arith.constant 0 : i32
    %c0_i32_1 = arith.constant 0 : i32
    return %c0_i32, %c0_i32_0 : i32, i32
  }
  func.func @transform_1(%arg0: i32) -> (i32, i32) {
    %c0_i32 = arith.constant 0 : i32
    %c0_i32_0 = arith.constant 0 : i32
    %c0_i32_1 = arith.constant 0 : i32
    return %c0_i32, %c0_i32_0 : i32, i32
  }
  func.func @transform_2(%arg0: i32) -> (i32, i32) {
    %c0_i32 = arith.constant 0 : i32
    %c0_i32_0 = arith.constant 0 : i32
    %c0_i32_1 = arith.constant 0 : i32
    return %c0_i32, %c0_i32_0 : i32, i32
  }
  func.func @transform_3(%arg0: i32) -> (i32, i32) {
    %c0_i32 = arith.constant 0 : i32
    %c0_i32_0 = arith.constant 0 : i32
    %c0_i32_1 = arith.constant 0 : i32
    return %c0_i32, %c0_i32_0 : i32, i32
  }
  func.func @transform_4(%arg0: i32) -> (i32, i32) {
    %c0_i32 = arith.constant 0 : i32
    %c0_i32_0 = arith.constant 0 : i32
    %c0_i32_1 = arith.constant 0 : i32
    return %c0_i32, %c0_i32_0 : i32, i32
  }
  func.func @transform_5(%arg0: i32) -> (i32, i32) {
    %c0_i32 = arith.constant 0 : i32
    %c0_i32_0 = arith.constant 0 : i32
    %c0_i32_1 = arith.constant 0 : i32
    return %c0_i32, %c0_i32_0 : i32, i32
  }
  func.func @transform_6(%arg0: i32) -> (i32, i32) {
    %c0_i32 = arith.constant 0 : i32
    %c0_i32_0 = arith.constant 0 : i32
    %c0_i32_1 = arith.constant 0 : i32
    return %c0_i32, %c0_i32_0 : i32, i32
  }
  func.func @transform_7(%arg0: i32) -> (i32, i32) {
    %c0_i32 = arith.constant 0 : i32
    %c0_i32_0 = arith.constant 0 : i32
    %c0_i32_1 = arith.constant 0 : i32
    return %c0_i32, %c0_i32_0 : i32, i32
  }
  func.func @transform_8(%arg0: i32) -> (i32, i32) {
    %c0_i32 = arith.constant 0 : i32
    %c0_i32_0 = arith.constant 0 : i32
    %c0_i32_1 = arith.constant 0 : i32
    return %c0_i32, %c0_i32_0 : i32, i32
  }
  func.func @transform_9(%arg0: i32) -> (i32, i32) {
    %c0_i32 = arith.constant 0 : i32
    %c0_i32_0 = arith.constant 0 : i32
    %c0_i32_1 = arith.constant 0 : i32
    return %c0_i32, %c0_i32_0 : i32, i32
  }
  func.func @transform_10(%arg0: i32) -> (i32, i32) {
    %c0_i32 = arith.constant 0 : i32
    %c0_i32_0 = arith.constant 0 : i32
    %c0_i32_1 = arith.constant 0 : i32
    return %c0_i32, %c0_i32_0 : i32, i32
  }
  func.func @transform_11(%arg0: i32) -> (i32, i32) {
    %c0_i32 = arith.constant 0 : i32
    %c0_i32_0 = arith.constant 0 : i32
    %c0_i32_1 = arith.constant 0 : i32
    return %c0_i32, %c0_i32_0 : i32, i32
  }
  func.func @transform_12(%arg0: i32) -> (i32, i32) {
    %c0_i32 = arith.constant 0 : i32
    %c0_i32_0 = arith.constant 0 : i32
    %c0_i32_1 = arith.constant 0 : i32
    return %c0_i32, %c0_i32_0 : i32, i32
  }
  func.func @transform_13(%arg0: i32) -> (i32, i32) {
    %c0_i32 = arith.constant 0 : i32
    %c0_i32_0 = arith.constant 0 : i32
    %c0_i32_1 = arith.constant 0 : i32
    return %c0_i32, %c0_i32_0 : i32, i32
  }
  func.func @transform_14(%arg0: i32) -> (i32, i32) {
    %c0_i32 = arith.constant 0 : i32
    %c0_i32_0 = arith.constant 0 : i32
    %c0_i32_1 = arith.constant 0 : i32
    return %c0_i32, %c0_i32_0 : i32, i32
  }
  func.func @transform_15(%arg0: i32) -> (i32, i32) {
    %c0_i32 = arith.constant 0 : i32
    %c0_i32_0 = arith.constant 0 : i32
    %c0_i32_1 = arith.constant 0 : i32
    return %c0_i32, %c0_i32_0 : i32, i32
  }
}

</mosaic_0001>

<bundles_post_ra>
// kernel: dqn_forward.5
= control target key start
LH: loop header
LB: loop body
LE: loop exit
PB: predicated region body
PF: predicated region fallthrough
CT: control target
= control target key end

     0   :  { %s1684_s12 = smov 0   ;;  %s1988_s0 = inlined_call_operand.vmem [shape: bf16[2048,75], index: 0, kind: input, shape index: {}]   ;;  %s1989_s1 = inlined_call_operand.vmem [shape: bf16[75,12], index: 1, kind: input, shape index: {}]   ;;  %s1990_s2 = inlined_call_operand.vmem [shape: f32[1,12], index: 2, kind: input, shape index: {}]   ;;  %s1991_s3 = inlined_call_operand.vmem [shape: bf16[2048,12], index: 3, kind: output, shape index: {}]  }
   0x1 LB: > { %s1279_s13 = sadd.s32 4294967295, %s1661_s12   ;;  %p1283_p0 = scmp.ge.s32.totalorder %s1661_s12, 1  ;;  %s1661_s12 = sphi %s1684_s12, %s13_s12  }
   0x2   : > { %p138_p1 = scmp.lt.s32.totalorder %s1661_s12, 5 }
   0x4   : > { %p139_p2 = pnand %p1283_p0, %p138_p1 }
   0x5   : > { %v1618_v0 = vld [vmem:[%s1989_s1] sm:$0xff] (!%p139_p2)   ;;  %v1619_v1 = vld [vmem:[%s1989_s1 + $0x8] sm:$0xff] (!%p139_p2)   ;;  %vm542_vm0 = vcmask (!%p139_p2), 1044480   ;;  %v1620_v2 = vld [vmem:[%s1989_s1 + $0x10] sm:$0xff] (!%p139_p2)   ;;  %s1284_s20 = sshll.u32 (!%p139_p2), %s1279_s13, 6  ;;  %vm543_vm1 = vcmask (!%p139_p2), 1045504  }
   0x6   : > { %142 = sbr.rel (%p139_p2) target bundleno = 304 (0x130), region = 32  ;;  %1525 = vmatprep.subr.bf16.mxu0 (!%p139_p2), %v1618_v0  ;;  %1599 = vmatprep.subr.bf16.mxu1 (!%p139_p2), %v1618_v0  ;;  %v1663_v3 = vmov (!%p139_p2), 65535   ;;  %p163_p3 = scmp.lt.s32.totalorder (!%p139_p2), %s1284_s20, 255  ;;  %v1621_v5 = vld [vmem:[%s1989_s1 + $0x18] sm:$0xff] (!%p139_p2)   ;;  %v1622_v6 = vld [vmem:[%s1989_s1 + $0x20] sm:$0x3f] (!%p139_p2)  }
   0x7   : > { %1526 = vmatpush3.bf16.msra.mxu0 (!%p139_p2), %v1618_v0  ;;  %1604 = vmatpush3.bf16.msra.mxu1 (!%p139_p2), %v1618_v0  ;;  %v544_v4 = vsel (!%p139_p2), %vm542_vm0, 4294967295, %v1663_v3  ;;  %vm445_vm2 = vcmask (!%p139_p2), 613376   ;;  %v1784_v41 = vld [vmem:[%s1990_s2] ss:$0 sm:$0xff] (!%p139_p2)  ;;  %vm1158_vm3 = vcmask (!%p139_p2), 93184  }
   0x8   : > { %1527 = vmatprep.subr.bf16.mxu0 (!%p139_p2), %v1619_v1  ;;  %1600 = vmatprep.subr.bf16.mxu1 (!%p139_p2), %v1619_v1  ;;  %v545_v7 = vsel (!%p139_p2), %vm543_vm1, %v544_v4, 0 }
   0x9   : > { %v547_v8 = vand.u32 (!%p139_p2), %v1622_v6, %v545_v7 }
   0xb   : > { %1528 = vmatpush3.bf16.msra.mxu0 (!%p139_p2), %v1619_v1  ;;  %1605 = vmatpush3.bf16.msra.mxu1 (!%p139_p2), %v1619_v1 }
   0xc   : > { %1529 = vmatprep.subr.bf16.mxu0 (!%p139_p2), %v1620_v2  ;;  %1601 = vmatprep.subr.bf16.mxu1 (!%p139_p2), %v1620_v2 }
   0xd   : > { %s1993_s20 = smov (!%p163_p3, %s1284_s20), 255 }
   0xe   : > { %s1285_s25 = sshll.u32 %s1993_s20, 2 }
   0xf   : > { %1530 = vmatpush3.bf16.msra.mxu0 %v1620_v2  ;;  %1606 = vmatpush3.bf16.msra.mxu1 %v1620_v2  ;;  %s1715_s28 = scalar_lea.vmem %s1988_s0, %s1285_s25  ;;  %s1797_s6 = scalar_lea.vmem %s1991_s3, %s1285_s25 }
  0x10   : > { %1531 = vmatprep.subr.bf16.mxu0 %v1621_v5  ;;  %1602 = vmatprep.subr.bf16.mxu1 %v1621_v5  ;;  %v1623_v9 = vld [vmem:[%s1715_s28] sm:$0xff]   ;;  %v1625_v11 = vld [vmem:[%s1715_s28 + $0x8] sm:$0xff]   ;;  %v1627_v13 = vld [vmem:[%s1715_s28 + $0x10] sm:$0xff]  }
  0x11   : > { %v1624_v10 = vld [vmem:[%s1715_s28 + $0x80] sm:$0xff]   ;;  %1535 = vmatprep.mubr.msk.bf16.mxu0 %vm445_vm2, %v1623_v9  ;;  %v1626_v12 = vld [vmem:[%s1715_s28 + $0x88] sm:$0xff]   ;;  %v1628_v14 = vld [vmem:[%s1715_s28 + $0x90] sm:$0xff]  }
  0x12   : > { %1567 = vmatprep.mubr.msk.bf16.mxu1 %vm445_vm2, %v1624_v10  ;;  %v1629_v15 = vld [vmem:[%s1715_s28 + $0x18] sm:$0xff]   ;;  %v1631_v17 = vld [vmem:[%s1715_s28 + $0x20] sm:$0xff]   ;;  %v1633_v19 = vld [vmem:[%s1715_s28 + $0x28] sm:$0xff]  }
  0x13   : > { %1532 = vmatpush3.bf16.msra.mxu0 %v1621_v5  ;;  %1607 = vmatpush3.bf16.msra.mxu1 %v1621_v5  ;;  %v1630_v16 = vld [vmem:[%s1715_s28 + $0x98] sm:$0xff]   ;;  %v1632_v18 = vld [vmem:[%s1715_s28 + $0xa0] sm:$0xff]   ;;  %v1634_v20 = vld [vmem:[%s1715_s28 + $0xa8] sm:$0xff]  }
  0x14   : > { %1533 = vmatprep.subr.bf16.mxu0 %v547_v8  ;;  %1603 = vmatprep.subr.bf16.mxu1 %v547_v8  ;;  %v1635_v21 = vld [vmem:[%s1715_s28 + $0x30] sm:$0xff]   ;;  %v1637_v23 = vld [vmem:[%s1715_s28 + $0x38] sm:$0xff]   ;;  %v1639_v25 = vld [vmem:[%s1715_s28 + $0x40] sm:$0xff]  }
  0x15   : > { %v1636_v22 = vld [vmem:[%s1715_s28 + $0xb0] sm:$0xff]   ;;  %v1638_v24 = vld [vmem:[%s1715_s28 + $0xb8] sm:$0xff]   ;;  %v1640_v26 = vld [vmem:[%s1715_s28 + $0xc0] sm:$0xff]  }
  0x16   : > { %v1641_v27 = vld [vmem:[%s1715_s28 + $0x48] sm:$0xff]   ;;  %v1643_v29 = vld [vmem:[%s1715_s28 + $0x50] sm:$0xff]   ;;  %v1645_v31 = vld [vmem:[%s1715_s28 + $0x58] sm:$0xff]  }
  0x17   : > { %1534 = vmatpush3.bf16.msra.mxu0 %v547_v8  ;;  %1608 = vmatpush3.bf16.msra.mxu1 %v547_v8  ;;  %v1642_v28 = vld [vmem:[%s1715_s28 + $0xc8] sm:$0xff]   ;;  %v1644_v30 = vld [vmem:[%s1715_s28 + $0xd0] sm:$0xff]   ;;  %v1646_v32 = vld [vmem:[%s1715_s28 + $0xd8] sm:$0xff]  }
  0x18   : > { %v1647_v33 = vld [vmem:[%s1715_s28 + $0x60] sm:$0xff]   ;;  %v1649_v35 = vld [vmem:[%s1715_s28 + $0x68] sm:$0xff]   ;;  %v1651_v37 = vld [vmem:[%s1715_s28 + $0x70] sm:$0xff]  }
  0x19   : > { %v1648_v34 = vld [vmem:[%s1715_s28 + $0xe0] sm:$0xff]   ;;  %v1650_v36 = vld [vmem:[%s1715_s28 + $0xe8] sm:$0xff]   ;;  %v1652_v38 = vld [vmem:[%s1715_s28 + $0xf0] sm:$0xff]  }
  0x1a   : > { %1536 = vmatmul.mubr.msk.bf16.vlgmr.msra.gmra.mrb[0].mxu0 %vm445_vm2, %v1625_v11  ;;  %1568 = vmatmul.mubr.msk.bf16.vlgmr.msra.gmra.mrb[0].mxu1 %vm445_vm2, %v1626_v12  ;;  %v1653_v39 = vld [vmem:[%s1715_s28 + $0x78] sm:$0xff]  }
  0x1b   : > { %1539 = vmatprep.mubr.msk.bf16.mxu0 %vm445_vm2, %v1627_v13  ;;  %1571 = vmatprep.mubr.msk.bf16.mxu1 %vm445_vm2, %v1628_v14  ;;  %v1654_v40 = vld [vmem:[%s1715_s28 + $0xf8] sm:$0xff]  }
  0x22   : > { %1540 = vmatmul.mubr.msk.bf16.gmra.mrb[4].mxu0 %vm445_vm2, %v1629_v15  ;;  %1572 = vmatmul.mubr.msk.bf16.gmra.mrb[4].mxu1 %vm445_vm2, %v1630_v16 }
  0x23   : > { %1543 = vmatprep.mubr.msk.bf16.mxu0 %vm445_vm2, %v1631_v17  ;;  %1575 = vmatprep.mubr.msk.bf16.mxu1 %vm445_vm2, %v1632_v18 }
  0x2a   : > { %1544 = vmatmul.mubr.msk.bf16.gmra.mrb[8].mxu0 %vm445_vm2, %v1633_v19  ;;  %1576 = vmatmul.mubr.msk.bf16.gmra.mrb[8].mxu1 %vm445_vm2, %v1634_v20 }
  0x2b   : > { %1547 = vmatprep.mubr.msk.bf16.mxu0 %vm445_vm2, %v1635_v21  ;;  %1579 = vmatprep.mubr.msk.bf16.mxu1 %vm445_vm2, %v1636_v22 }
  0x32   : > { %1548 = vmatmul.mubr.msk.bf16.gmra.mrb[12].mxu0 %vm445_vm2, %v1637_v23  ;;  %1580 = vmatmul.mubr.msk.bf16.gmra.mrb[12].mxu1 %vm445_vm2, %v1638_v24 }
  0x33   : > { %1551 = vmatprep.mubr.msk.bf16.mxu0 %vm445_vm2, %v1639_v25  ;;  %1583 = vmatprep.mubr.msk.bf16.mxu1 %vm445_vm2, %v1640_v26 }
  0x3a   : > { %1552 = vmatmul.mubr.msk.bf16.gmra.mrb[16].mxu0 %vm445_vm2, %v1641_v27  ;;  %1584 = vmatmul.mubr.msk.bf16.gmra.mrb[16].mxu1 %vm445_vm2, %v1642_v28 }
  0x3b   : > { %1555 = vmatprep.mubr.msk.bf16.mxu0 %vm445_vm2, %v1643_v29  ;;  %1587 = vmatprep.mubr.msk.bf16.mxu1 %vm445_vm2, %v1644_v30 }
  0x42   : > { %1556 = vmatmul.mubr.msk.bf16.gmra.mrb[20].mxu0 %vm445_vm2, %v1645_v31  ;;  %1588 = vmatmul.mubr.msk.bf16.gmra.mrb[20].mxu1 %vm445_vm2, %v1646_v32 }
  0x43   : > { %1559 = vmatprep.mubr.msk.bf16.mxu0 %vm445_vm2, %v1647_v33  ;;  %1591 = vmatprep.mubr.msk.bf16.mxu1 %vm445_vm2, %v1648_v34 }
  0x4a   : > { %1560 = vmatmul.mubr.msk.bf16.gmra.mrb[24].mxu0 %vm445_vm2, %v1649_v35  ;;  %1592 = vmatmul.mubr.msk.bf16.gmra.mrb[24].mxu1 %vm445_vm2, %v1650_v36 }
  0x4b   : > { %1563 = vmatprep.mubr.msk.bf16.mxu0 %vm445_vm2, %v1651_v37  ;;  %1595 = vmatprep.mubr.msk.bf16.mxu1 %vm445_vm2, %v1652_v38 }
  0x52   : > { %1564 = vmatmul.mubr.msk.bf16.gmra.mrb[28].mxu0 %vm445_vm2, %v1653_v39  ;;  %1596 = vmatmul.mubr.msk.bf16.gmra.mrb[28].mxu1 %vm445_vm2, %v1654_v40 }
  0xed   : > { %v1537_v42 = vpop.f32.mrb[0].mxu0  ;;  %v1569_v43 = vpop.f32.mrb[0].mxu1 }
  0xee   : > { %v592_v44 = vadd.f32 %v1537_v42, %v1784_v41  ;;  %v720_v45 = vadd.f32 %v1569_v43, %v1784_v41  ;;  %v583_v46 = vpop.f32.mrb[1].mxu0  ;;  %v711_v47 = vpop.f32.mrb[1].mxu1 }
  0xef   : > { %v584_v48 = vadd.f32 %v1784_v41, %v583_v46  ;;  %v712_v49 = vadd.f32 %v1784_v41, %v711_v47  ;;  %v1538_v50 = vpop.f32.mrb[2].mxu0  ;;  %v1570_v51 = vpop.f32.mrb[2].mxu1 }
  0xf0   : > { %v840_v52 = vmax.f32 %v592_v44, 0.0  ;;  %v872_v53 = vmax.f32 %v720_v45, 0.0  ;;  %v595_v54 = vadd.f32 %v1538_v50, %v1784_v41  ;;  %v723_v55 = vadd.f32 %v1570_v51, %v1784_v41  ;;  %v586_v56 = vpop.f32.mrb[3].mxu0  ;;  %v714_v57 = vpop.f32.mrb[3].mxu1 }
  0xf1   : > { %v838_v58 = vmax.f32 %v584_v48, 0.0  ;;  %v870_v59 = vmax.f32 %v712_v49, 0.0  ;;  %v587_v60 = vadd.f32 %v1784_v41, %v586_v56  ;;  %v715_v61 = vadd.f32 %v1784_v41, %v714_v57 }
  0xf2   : > { %v1426_v62 = vpack.c.bf16 %v840_v52, %v840_v52  ;;  %v1458_v63 = vpack.c.bf16 %v872_v53, %v872_v53  ;;  %v841_v0 = vmax.f32 %v595_v54, 0.0  ;;  %v873_v1 = vmax.f32 %v723_v55, 0.0 }
  0xf3   : > { %v1424_v2 = vpack.c.bf16 %v838_v58, %v838_v58  ;;  %v1456_v3 = vpack.c.bf16 %v870_v59, %v870_v59  ;;  %v839_v4 = vmax.f32 %v587_v60, 0.0  ;;  %v871_v5 = vmax.f32 %v715_v61, 0.0 }
  0xf4   : > { %1161 = vst.msk [vmem:[%s1797_s6 + $0x8] sm:$0xf] %vm1158_vm3, %v1426_v62  ;;  %1193 = vst.msk [vmem:[%s1797_s6 + $0x88] sm:$0xf] %vm1158_vm3, %v1458_v63  ;;  %v1427_v6 = vpack.c.bf16 %v841_v0, %v841_v0  ;;  %v1459_v7 = vpack.c.bf16 %v873_v1, %v873_v1 }
  0xf5   : > { %1159 = vst.msk [vmem:[%s1797_s6] sm:$0xf] %vm1158_vm3, %v1424_v2  ;;  %1191 = vst.msk [vmem:[%s1797_s6 + $0x80] sm:$0xf] %vm1158_vm3, %v1456_v3  ;;  %v1425_v8 = vpack.c.bf16 %v839_v4, %v839_v4  ;;  %v1457_v9 = vpack.c.bf16 %v871_v5, %v871_v5  ;;  %v1541_v10 = vpop.f32.mrb[4].mxu0  ;;  %v1573_v11 = vpop.f32.mrb[4].mxu1 }
  0xf6   : > { %1162 = vst.msk [vmem:[%s1797_s6 + $0xc] sm:$0xf] %vm1158_vm3, %v1427_v6  ;;  %1194 = vst.msk [vmem:[%s1797_s6 + $0x8c] sm:$0xf] %vm1158_vm3, %v1459_v7  ;;  %v608_v12 = vadd.f32 %v1541_v10, %v1784_v41  ;;  %v736_v13 = vadd.f32 %v1573_v11, %v1784_v41  ;;  %v599_v14 = vpop.f32.mrb[5].mxu0  ;;  %v727_v15 = vpop.f32.mrb[5].mxu1 }
  0xf7   : > { %1160 = vst.msk [vmem:[%s1797_s6 + $0x4] sm:$0xf] %vm1158_vm3, %v1425_v8  ;;  %1192 = vst.msk [vmem:[%s1797_s6 + $0x84] sm:$0xf] %vm1158_vm3, %v1457_v9  ;;  %v600_v16 = vadd.f32 %v1784_v41, %v599_v14  ;;  %v728_v17 = vadd.f32 %v1784_v41, %v727_v15  ;;  %v1542_v18 = vpop.f32.mrb[6].mxu0  ;;  %v1574_v19 = vpop.f32.mrb[6].mxu1 }
  0xf8   : > { %v844_v20 = vmax.f32 %v608_v12, 0.0  ;;  %v876_v21 = vmax.f32 %v736_v13, 0.0  ;;  %v611_v22 = vadd.f32 %v1542_v18, %v1784_v41  ;;  %v739_v23 = vadd.f32 %v1574_v19, %v1784_v41  ;;  %v602_v24 = vpop.f32.mrb[7].mxu0  ;;  %v730_v25 = vpop.f32.mrb[7].mxu1 }
  0xf9   : > { %v842_v26 = vmax.f32 %v600_v16, 0.0  ;;  %v874_v27 = vmax.f32 %v728_v17, 0.0  ;;  %v603_v28 = vadd.f32 %v1784_v41, %v602_v24  ;;  %v731_v29 = vadd.f32 %v1784_v41, %v730_v25 }
  0xfa   : > { %v1430_v30 = vpack.c.bf16 %v844_v20, %v844_v20  ;;  %v1462_v31 = vpack.c.bf16 %v876_v21, %v876_v21  ;;  %v845_v32 = vmax.f32 %v611_v22, 0.0  ;;  %v877_v33 = vmax.f32 %v739_v23, 0.0 }
  0xfb   : > { %v1428_v34 = vpack.c.bf16 %v842_v26, %v842_v26  ;;  %v1460_v35 = vpack.c.bf16 %v874_v27, %v874_v27  ;;  %v843_v36 = vmax.f32 %v603_v28, 0.0  ;;  %v875_v37 = vmax.f32 %v731_v29, 0.0 }
  0xfc   : > { %1165 = vst.msk [vmem:[%s1797_s6 + $0x18] sm:$0xf] %vm1158_vm3, %v1430_v30  ;;  %1197 = vst.msk [vmem:[%s1797_s6 + $0x98] sm:$0xf] %vm1158_vm3, %v1462_v31  ;;  %v1431_v38 = vpack.c.bf16 %v845_v32, %v845_v32  ;;  %v1463_v39 = vpack.c.bf16 %v877_v33, %v877_v33 }
  0xfd   : > { %1163 = vst.msk [vmem:[%s1797_s6 + $0x10] sm:$0xf] %vm1158_vm3, %v1428_v34  ;;  %1195 = vst.msk [vmem:[%s1797_s6 + $0x90] sm:$0xf] %vm1158_vm3, %v1460_v35  ;;  %v1429_v40 = vpack.c.bf16 %v843_v36, %v843_v36  ;;  %v1461_v42 = vpack.c.bf16 %v875_v37, %v875_v37  ;;  %v1545_v43 = vpop.f32.mrb[8].mxu0  ;;  %v1577_v44 = vpop.f32.mrb[8].mxu1 }
  0xfe   : > { %1166 = vst.msk [vmem:[%s1797_s6 + $0x1c] sm:$0xf] %vm1158_vm3, %v1431_v38  ;;  %1198 = vst.msk [vmem:[%s1797_s6 + $0x9c] sm:$0xf] %vm1158_vm3, %v1463_v39  ;;  %v624_v45 = vadd.f32 %v1545_v43, %v1784_v41  ;;  %v752_v46 = vadd.f32 %v1577_v44, %v1784_v41  ;;  %v615_v47 = vpop.f32.mrb[9].mxu0  ;;  %v743_v48 = vpop.f32.mrb[9].mxu1 }
  0xff   : > { %1164 = vst.msk [vmem:[%s1797_s6 + $0x14] sm:$0xf] %vm1158_vm3, %v1429_v40  ;;  %1196 = vst.msk [vmem:[%s1797_s6 + $0x94] sm:$0xf] %vm1158_vm3, %v1461_v42  ;;  %v616_v49 = vadd.f32 %v1784_v41, %v615_v47  ;;  %v744_v50 = vadd.f32 %v1784_v41, %v743_v48  ;;  %v1546_v51 = vpop.f32.mrb[10].mxu0  ;;  %v1578_v52 = vpop.f32.mrb[10].mxu1 }
 0x100   : > { %v848_v53 = vmax.f32 %v624_v45, 0.0  ;;  %v880_v54 = vmax.f32 %v752_v46, 0.0  ;;  %v627_v55 = vadd.f32 %v1546_v51, %v1784_v41  ;;  %v755_v56 = vadd.f32 %v1578_v52, %v1784_v41  ;;  %v618_v57 = vpop.f32.mrb[11].mxu0  ;;  %v746_v58 = vpop.f32.mrb[11].mxu1 }
 0x101   : > { %v846_v59 = vmax.f32 %v616_v49, 0.0  ;;  %v878_v60 = vmax.f32 %v744_v50, 0.0  ;;  %v619_v61 = vadd.f32 %v1784_v41, %v618_v57  ;;  %v747_v62 = vadd.f32 %v1784_v41, %v746_v58 }
 0x102   : > { %v1434_v63 = vpack.c.bf16 %v848_v53, %v848_v53  ;;  %v1466_v0 = vpack.c.bf16 %v880_v54, %v880_v54  ;;  %v849_v1 = vmax.f32 %v627_v55, 0.0  ;;  %v881_v2 = vmax.f32 %v755_v56, 0.0 }
 0x103   : > { %v1432_v3 = vpack.c.bf16 %v846_v59, %v846_v59  ;;  %v1464_v4 = vpack.c.bf16 %v878_v60, %v878_v60  ;;  %v847_v5 = vmax.f32 %v619_v61, 0.0  ;;  %v879_v6 = vmax.f32 %v747_v62, 0.0 }
 0x104   : > { %1169 = vst.msk [vmem:[%s1797_s6 + $0x28] sm:$0xf] %vm1158_vm3, %v1434_v63  ;;  %1201 = vst.msk [vmem:[%s1797_s6 + $0xa8] sm:$0xf] %vm1158_vm3, %v1466_v0  ;;  %v1435_v7 = vpack.c.bf16 %v849_v1, %v849_v1  ;;  %v1467_v8 = vpack.c.bf16 %v881_v2, %v881_v2 }
 0x105   : > { %1167 = vst.msk [vmem:[%s1797_s6 + $0x20] sm:$0xf] %vm1158_vm3, %v1432_v3  ;;  %1199 = vst.msk [vmem:[%s1797_s6 + $0xa0] sm:$0xf] %vm1158_vm3, %v1464_v4  ;;  %v1433_v9 = vpack.c.bf16 %v847_v5, %v847_v5  ;;  %v1465_v10 = vpack.c.bf16 %v879_v6, %v879_v6  ;;  %v1549_v11 = vpop.f32.mrb[12].mxu0  ;;  %v1581_v12 = vpop.f32.mrb[12].mxu1 }
 0x106   : > { %1170 = vst.msk [vmem:[%s1797_s6 + $0x2c] sm:$0xf] %vm1158_vm3, %v1435_v7  ;;  %1202 = vst.msk [vmem:[%s1797_s6 + $0xac] sm:$0xf] %vm1158_vm3, %v1467_v8  ;;  %v640_v13 = vadd.f32 %v1549_v11, %v1784_v41  ;;  %v768_v14 = vadd.f32 %v1581_v12, %v1784_v41  ;;  %v631_v15 = vpop.f32.mrb[13].mxu0  ;;  %v759_v16 = vpop.f32.mrb[13].mxu1 }
 0x107   : > { %1168 = vst.msk [vmem:[%s1797_s6 + $0x24] sm:$0xf] %vm1158_vm3, %v1433_v9  ;;  %1200 = vst.msk [vmem:[%s1797_s6 + $0xa4] sm:$0xf] %vm1158_vm3, %v1465_v10  ;;  %v632_v17 = vadd.f32 %v1784_v41, %v631_v15  ;;  %v760_v18 = vadd.f32 %v1784_v41, %v759_v16  ;;  %v1550_v19 = vpop.f32.mrb[14].mxu0  ;;  %v1582_v20 = vpop.f32.mrb[14].mxu1 }
 0x108   : > { %v852_v21 = vmax.f32 %v640_v13, 0.0  ;;  %v884_v22 = vmax.f32 %v768_v14, 0.0  ;;  %v643_v23 = vadd.f32 %v1550_v19, %v1784_v41  ;;  %v771_v24 = vadd.f32 %v1582_v20, %v1784_v41  ;;  %v634_v25 = vpop.f32.mrb[15].mxu0  ;;  %v762_v26 = vpop.f32.mrb[15].mxu1 }
 0x109   : > { %v850_v27 = vmax.f32 %v632_v17, 0.0  ;;  %v882_v28 = vmax.f32 %v760_v18, 0.0  ;;  %v635_v29 = vadd.f32 %v1784_v41, %v634_v25  ;;  %v763_v30 = vadd.f32 %v1784_v41, %v762_v26 }
 0x10a   : > { %v1438_v31 = vpack.c.bf16 %v852_v21, %v852_v21  ;;  %v1470_v32 = vpack.c.bf16 %v884_v22, %v884_v22  ;;  %v853_v33 = vmax.f32 %v643_v23, 0.0  ;;  %v885_v34 = vmax.f32 %v771_v24, 0.0 }
 0x10b   : > { %v1436_v35 = vpack.c.bf16 %v850_v27, %v850_v27  ;;  %v1468_v36 = vpack.c.bf16 %v882_v28, %v882_v28  ;;  %v851_v37 = vmax.f32 %v635_v29, 0.0  ;;  %v883_v38 = vmax.f32 %v763_v30, 0.0 }
 0x10c   : > { %1173 = vst.msk [vmem:[%s1797_s6 + $0x38] sm:$0xf] %vm1158_vm3, %v1438_v31  ;;  %1205 = vst.msk [vmem:[%s1797_s6 + $0xb8] sm:$0xf] %vm1158_vm3, %v1470_v32  ;;  %v1439_v39 = vpack.c.bf16 %v853_v33, %v853_v33  ;;  %v1471_v40 = vpack.c.bf16 %v885_v34, %v885_v34 }
 0x10d   : > { %1171 = vst.msk [vmem:[%s1797_s6 + $0x30] sm:$0xf] %vm1158_vm3, %v1436_v35  ;;  %1203 = vst.msk [vmem:[%s1797_s6 + $0xb0] sm:$0xf] %vm1158_vm3, %v1468_v36  ;;  %v1437_v42 = vpack.c.bf16 %v851_v37, %v851_v37  ;;  %v1469_v43 = vpack.c.bf16 %v883_v38, %v883_v38  ;;  %v1553_v44 = vpop.f32.mrb[16].mxu0  ;;  %v1585_v45 = vpop.f32.mrb[16].mxu1 }
 0x10e   : > { %1174 = vst.msk [vmem:[%s1797_s6 + $0x3c] sm:$0xf] %vm1158_vm3, %v1439_v39  ;;  %1206 = vst.msk [vmem:[%s1797_s6 + $0xbc] sm:$0xf] %vm1158_vm3, %v1471_v40  ;;  %v656_v46 = vadd.f32 %v1553_v44, %v1784_v41  ;;  %v784_v47 = vadd.f32 %v1585_v45, %v1784_v41  ;;  %v647_v48 = vpop.f32.mrb[17].mxu0  ;;  %v775_v49 = vpop.f32.mrb[17].mxu1 }
 0x10f   : > { %1172 = vst.msk [vmem:[%s1797_s6 + $0x34] sm:$0xf] %vm1158_vm3, %v1437_v42  ;;  %1204 = vst.msk [vmem:[%s1797_s6 + $0xb4] sm:$0xf] %vm1158_vm3, %v1469_v43  ;;  %v648_v50 = vadd.f32 %v1784_v41, %v647_v48  ;;  %v776_v51 = vadd.f32 %v1784_v41, %v775_v49  ;;  %v1554_v52 = vpop.f32.mrb[18].mxu0  ;;  %v1586_v53 = vpop.f32.mrb[18].mxu1 }
 0x110   : > { %v856_v54 = vmax.f32 %v656_v46, 0.0  ;;  %v888_v55 = vmax.f32 %v784_v47, 0.0  ;;  %v659_v56 = vadd.f32 %v1554_v52, %v1784_v41  ;;  %v787_v57 = vadd.f32 %v1586_v53, %v1784_v41  ;;  %v650_v58 = vpop.f32.mrb[19].mxu0  ;;  %v778_v59 = vpop.f32.mrb[19].mxu1 }
 0x111   : > { %v854_v60 = vmax.f32 %v648_v50, 0.0  ;;  %v886_v61 = vmax.f32 %v776_v51, 0.0  ;;  %v651_v62 = vadd.f32 %v1784_v41, %v650_v58  ;;  %v779_v63 = vadd.f32 %v1784_v41, %v778_v59 }
 0x112   : > { %v1442_v0 = vpack.c.bf16 %v856_v54, %v856_v54  ;;  %v1474_v1 = vpack.c.bf16 %v888_v55, %v888_v55  ;;  %v857_v2 = vmax.f32 %v659_v56, 0.0  ;;  %v889_v3 = vmax.f32 %v787_v57, 0.0 }
 0x113   : > { %v1440_v4 = vpack.c.bf16 %v854_v60, %v854_v60  ;;  %v1472_v5 = vpack.c.bf16 %v886_v61, %v886_v61  ;;  %v855_v6 = vmax.f32 %v651_v62, 0.0  ;;  %v887_v7 = vmax.f32 %v779_v63, 0.0 }
 0x114   : > { %1177 = vst.msk [vmem:[%s1797_s6 + $0x48] sm:$0xf] %vm1158_vm3, %v1442_v0  ;;  %1209 = vst.msk [vmem:[%s1797_s6 + $0xc8] sm:$0xf] %vm1158_vm3, %v1474_v1  ;;  %v1443_v8 = vpack.c.bf16 %v857_v2, %v857_v2  ;;  %v1475_v9 = vpack.c.bf16 %v889_v3, %v889_v3 }
 0x115   : > { %1175 = vst.msk [vmem:[%s1797_s6 + $0x40] sm:$0xf] %vm1158_vm3, %v1440_v4  ;;  %1207 = vst.msk [vmem:[%s1797_s6 + $0xc0] sm:$0xf] %vm1158_vm3, %v1472_v5  ;;  %v1441_v10 = vpack.c.bf16 %v855_v6, %v855_v6  ;;  %v1473_v11 = vpack.c.bf16 %v887_v7, %v887_v7  ;;  %v1557_v12 = vpop.f32.mrb[20].mxu0  ;;  %v1589_v13 = vpop.f32.mrb[20].mxu1 }
 0x116   : > { %1178 = vst.msk [vmem:[%s1797_s6 + $0x4c] sm:$0xf] %vm1158_vm3, %v1443_v8  ;;  %1210 = vst.msk [vmem:[%s1797_s6 + $0xcc] sm:$0xf] %vm1158_vm3, %v1475_v9  ;;  %v672_v14 = vadd.f32 %v1557_v12, %v1784_v41  ;;  %v800_v15 = vadd.f32 %v1589_v13, %v1784_v41  ;;  %v663_v16 = vpop.f32.mrb[21].mxu0  ;;  %v791_v17 = vpop.f32.mrb[21].mxu1 }
 0x117   : > { %1176 = vst.msk [vmem:[%s1797_s6 + $0x44] sm:$0xf] %vm1158_vm3, %v1441_v10  ;;  %1208 = vst.msk [vmem:[%s1797_s6 + $0xc4] sm:$0xf] %vm1158_vm3, %v1473_v11  ;;  %v664_v18 = vadd.f32 %v1784_v41, %v663_v16  ;;  %v792_v19 = vadd.f32 %v1784_v41, %v791_v17  ;;  %v1558_v20 = vpop.f32.mrb[22].mxu0  ;;  %v1590_v21 = vpop.f32.mrb[22].mxu1 }
 0x118   : > { %v860_v22 = vmax.f32 %v672_v14, 0.0  ;;  %v892_v23 = vmax.f32 %v800_v15, 0.0  ;;  %v675_v24 = vadd.f32 %v1558_v20, %v1784_v41  ;;  %v803_v25 = vadd.f32 %v1590_v21, %v1784_v41  ;;  %v666_v26 = vpop.f32.mrb[23].mxu0  ;;  %v794_v27 = vpop.f32.mrb[23].mxu1 }
 0x119   : > { %v858_v28 = vmax.f32 %v664_v18, 0.0  ;;  %v890_v29 = vmax.f32 %v792_v19, 0.0  ;;  %v667_v30 = vadd.f32 %v1784_v41, %v666_v26  ;;  %v795_v31 = vadd.f32 %v1784_v41, %v794_v27 }
 0x11a   : > { %v1446_v32 = vpack.c.bf16 %v860_v22, %v860_v22  ;;  %v1478_v33 = vpack.c.bf16 %v892_v23, %v892_v23  ;;  %v861_v34 = vmax.f32 %v675_v24, 0.0  ;;  %v893_v35 = vmax.f32 %v803_v25, 0.0 }
 0x11b   : > { %v1444_v36 = vpack.c.bf16 %v858_v28, %v858_v28  ;;  %v1476_v37 = vpack.c.bf16 %v890_v29, %v890_v29  ;;  %v859_v38 = vmax.f32 %v667_v30, 0.0  ;;  %v891_v39 = vmax.f32 %v795_v31, 0.0 }
 0x11c   : > { %1181 = vst.msk [vmem:[%s1797_s6 + $0x58] sm:$0xf] %vm1158_vm3, %v1446_v32  ;;  %1213 = vst.msk [vmem:[%s1797_s6 + $0xd8] sm:$0xf] %vm1158_vm3, %v1478_v33  ;;  %v1447_v40 = vpack.c.bf16 %v861_v34, %v861_v34  ;;  %v1479_v42 = vpack.c.bf16 %v893_v35, %v893_v35 }
 0x11d   : > { %1179 = vst.msk [vmem:[%s1797_s6 + $0x50] sm:$0xf] %vm1158_vm3, %v1444_v36  ;;  %1211 = vst.msk [vmem:[%s1797_s6 + $0xd0] sm:$0xf] %vm1158_vm3, %v1476_v37  ;;  %v1445_v43 = vpack.c.bf16 %v859_v38, %v859_v38  ;;  %v1477_v44 = vpack.c.bf16 %v891_v39, %v891_v39  ;;  %v1561_v45 = vpop.f32.mrb[24].mxu0  ;;  %v1593_v46 = vpop.f32.mrb[24].mxu1 }
 0x11e   : > { %1182 = vst.msk [vmem:[%s1797_s6 + $0x5c] sm:$0xf] %vm1158_vm3, %v1447_v40  ;;  %1214 = vst.msk [vmem:[%s1797_s6 + $0xdc] sm:$0xf] %vm1158_vm3, %v1479_v42  ;;  %v688_v47 = vadd.f32 %v1561_v45, %v1784_v41  ;;  %v816_v48 = vadd.f32 %v1593_v46, %v1784_v41  ;;  %v679_v49 = vpop.f32.mrb[25].mxu0  ;;  %v807_v50 = vpop.f32.mrb[25].mxu1 }
 0x11f   : > { %1180 = vst.msk [vmem:[%s1797_s6 + $0x54] sm:$0xf] %vm1158_vm3, %v1445_v43  ;;  %1212 = vst.msk [vmem:[%s1797_s6 + $0xd4] sm:$0xf] %vm1158_vm3, %v1477_v44  ;;  %v680_v51 = vadd.f32 %v1784_v41, %v679_v49  ;;  %v808_v52 = vadd.f32 %v1784_v41, %v807_v50  ;;  %v1562_v53 = vpop.f32.mrb[26].mxu0  ;;  %v1594_v54 = vpop.f32.mrb[26].mxu1 }
 0x120   : > { %v864_v55 = vmax.f32 %v688_v47, 0.0  ;;  %v896_v56 = vmax.f32 %v816_v48, 0.0  ;;  %v691_v57 = vadd.f32 %v1562_v53, %v1784_v41  ;;  %v819_v58 = vadd.f32 %v1594_v54, %v1784_v41  ;;  %v682_v59 = vpop.f32.mrb[27].mxu0  ;;  %v810_v60 = vpop.f32.mrb[27].mxu1 }
 0x121   : > { %v862_v61 = vmax.f32 %v680_v51, 0.0  ;;  %v894_v62 = vmax.f32 %v808_v52, 0.0  ;;  %v683_v63 = vadd.f32 %v1784_v41, %v682_v59  ;;  %v811_v0 = vadd.f32 %v1784_v41, %v810_v60 }
 0x122   : > { %v1450_v1 = vpack.c.bf16 %v864_v55, %v864_v55  ;;  %v1482_v2 = vpack.c.bf16 %v896_v56, %v896_v56  ;;  %v865_v3 = vmax.f32 %v691_v57, 0.0  ;;  %v897_v4 = vmax.f32 %v819_v58, 0.0 }
 0x123   : > { %v1448_v5 = vpack.c.bf16 %v862_v61, %v862_v61  ;;  %v1480_v6 = vpack.c.bf16 %v894_v62, %v894_v62  ;;  %v863_v7 = vmax.f32 %v683_v63, 0.0  ;;  %v895_v8 = vmax.f32 %v811_v0, 0.0 }
 0x124   : > { %1185 = vst.msk [vmem:[%s1797_s6 + $0x68] sm:$0xf] %vm1158_vm3, %v1450_v1  ;;  %1217 = vst.msk [vmem:[%s1797_s6 + $0xe8] sm:$0xf] %vm1158_vm3, %v1482_v2  ;;  %v1451_v9 = vpack.c.bf16 %v865_v3, %v865_v3  ;;  %v1483_v10 = vpack.c.bf16 %v897_v4, %v897_v4 }
 0x125   : > { %1183 = vst.msk [vmem:[%s1797_s6 + $0x60] sm:$0xf] %vm1158_vm3, %v1448_v5  ;;  %1215 = vst.msk [vmem:[%s1797_s6 + $0xe0] sm:$0xf] %vm1158_vm3, %v1480_v6  ;;  %v1449_v11 = vpack.c.bf16 %v863_v7, %v863_v7  ;;  %v1481_v12 = vpack.c.bf16 %v895_v8, %v895_v8  ;;  %v1565_v13 = vpop.f32.mrb[28].mxu0  ;;  %v1597_v14 = vpop.f32.mrb[28].mxu1 }
 0x126   : > { %1186 = vst.msk [vmem:[%s1797_s6 + $0x6c] sm:$0xf] %vm1158_vm3, %v1451_v9  ;;  %1218 = vst.msk [vmem:[%s1797_s6 + $0xec] sm:$0xf] %vm1158_vm3, %v1483_v10  ;;  %v704_v15 = vadd.f32 %v1565_v13, %v1784_v41  ;;  %v832_v16 = vadd.f32 %v1597_v14, %v1784_v41  ;;  %v695_v17 = vpop.f32.mrb[29].mxu0  ;;  %v823_v18 = vpop.f32.mrb[29].mxu1 }
 0x127   : > { %1184 = vst.msk [vmem:[%s1797_s6 + $0x64] sm:$0xf] %vm1158_vm3, %v1449_v11  ;;  %1216 = vst.msk [vmem:[%s1797_s6 + $0xe4] sm:$0xf] %vm1158_vm3, %v1481_v12  ;;  %v696_v19 = vadd.f32 %v1784_v41, %v695_v17  ;;  %v824_v20 = vadd.f32 %v1784_v41, %v823_v18  ;;  %v1566_v21 = vpop.f32.mrb[30].mxu0  ;;  %v1598_v22 = vpop.f32.mrb[30].mxu1 }
 0x128   : > { %v868_v23 = vmax.f32 %v704_v15, 0.0  ;;  %v900_v24 = vmax.f32 %v832_v16, 0.0  ;;  %v707_v25 = vadd.f32 %v1566_v21, %v1784_v41  ;;  %v835_v26 = vadd.f32 %v1598_v22, %v1784_v41  ;;  %v698_v27 = vpop.f32.mrb[31].mxu0  ;;  %v826_v28 = vpop.f32.mrb[31].mxu1 }
 0x129   : > { %v866_v29 = vmax.f32 %v696_v19, 0.0  ;;  %v898_v30 = vmax.f32 %v824_v20, 0.0  ;;  %v699_v31 = vadd.f32 %v1784_v41, %v698_v27  ;;  %v827_v32 = vadd.f32 %v1784_v41, %v826_v28 }
 0x12a   : > { %v1454_v33 = vpack.c.bf16 %v868_v23, %v868_v23  ;;  %v1486_v34 = vpack.c.bf16 %v900_v24, %v900_v24  ;;  %v869_v35 = vmax.f32 %v707_v25, 0.0  ;;  %v901_v36 = vmax.f32 %v835_v26, 0.0 }
 0x12b   : > { %v1452_v37 = vpack.c.bf16 %v866_v29, %v866_v29  ;;  %v1484_v38 = vpack.c.bf16 %v898_v30, %v898_v30  ;;  %v867_v39 = vmax.f32 %v699_v31, 0.0  ;;  %v899_v40 = vmax.f32 %v827_v32, 0.0 }
 0x12c   : > { %1189 = vst.msk [vmem:[%s1797_s6 + $0x78] sm:$0xf] %vm1158_vm3, %v1454_v33  ;;  %1221 = vst.msk [vmem:[%s1797_s6 + $0xf8] sm:$0xf] %vm1158_vm3, %v1486_v34  ;;  %v1455_v42 = vpack.c.bf16 %v869_v35, %v869_v35  ;;  %v1487_v43 = vpack.c.bf16 %v901_v36, %v901_v36 }
 0x12d   : > { %1187 = vst.msk [vmem:[%s1797_s6 + $0x70] sm:$0xf] %vm1158_vm3, %v1452_v37  ;;  %1219 = vst.msk [vmem:[%s1797_s6 + $0xf0] sm:$0xf] %vm1158_vm3, %v1484_v38  ;;  %v1453_v41 = vpack.c.bf16 %v867_v39, %v867_v39  ;;  %v1485_v44 = vpack.c.bf16 %v899_v40, %v899_v40 }
 0x12e   : > { %1190 = vst.msk [vmem:[%s1797_s6 + $0x7c] sm:$0xf] %vm1158_vm3, %v1455_v42  ;;  %1222 = vst.msk [vmem:[%s1797_s6 + $0xfc] sm:$0xf] %vm1158_vm3, %v1487_v43 }
 0x12f   : > { %1188 = vst.msk [vmem:[%s1797_s6 + $0x74] sm:$0xf] %vm1158_vm3, %v1453_v41  ;;  %1220 = vst.msk [vmem:[%s1797_s6 + $0xf4] sm:$0xf] %vm1158_vm3, %v1485_v44 }
 0x130 PF: > { %s13_s12 = sadd.s32 1, %s1661_s12  }
 0x131   : > { %p10_p4 = scmp.ge.s32.totalorder %s13_s12, 6  }
 0x133   :  { %12 = sbr.rel (!%p10_p4) target bundleno = 1 (0x1), region = 62 }

// kernel: dqn_forward.7
= control target key start
LH: loop header
LB: loop body
LE: loop exit
PB: predicated region body
PF: predicated region fallthrough
CT: control target
= control target key end

     0   :  { %s325_s30 = smov 104   ;;  %vm184_vm0 = vcmask 191488   ;;  %s520_s0 = inlined_call_operand.vmem [shape: bf16[16,2,8,48], index: 0, kind: input, shape index: {}]   ;;  %s521_s1 = inlined_call_operand.vmem [shape: bf16[16,8,24], index: 1, kind: output, shape index: {}]  }
   0x1   :  { %v272_v0 = vld [vmem:[%s520_s0 + $0x20] sm:$0xff]   ;;  %v273_v1 = vld [vmem:[%s520_s0 + $0x28] sm:$0xff]   ;;  %v274_v8 = vld [vmem:[%s520_s0 + $0x30] sm:$0xff]  }
   0x2   :  { %v206_v2 = vld [vmem:[%s520_s0] sm:$0xff]   ;;  %v223_v3 = vunpack.c.l.bf16 %v272_v0  ;;  %v224_v4 = vunpack.c.h.bf16 %v272_v0  ;;  %v227_v5 = vunpack.c.l.bf16 %v273_v1  ;;  %v228_v6 = vunpack.c.h.bf16 %v273_v1  ;;  %v269_v7 = vld [vmem:[%s520_s0 + $0x8] sm:$0xff]   ;;  %v275_v9 = vld [vmem:[%s520_s0 + $0x38] sm:$0xff]  }
   0x3   :  { %v207_v10 = vunpack.c.l.bf16 %v206_v2  ;;  %v208_v11 = vunpack.c.h.bf16 %v206_v2  ;;  %v211_v12 = vunpack.c.l.bf16 %v269_v7  ;;  %v212_v13 = vunpack.c.h.bf16 %v269_v7  ;;  %v270_v14 = vld [vmem:[%s520_s0 + $0x10] sm:$0xff]   ;;  %v271_v19 = vld [vmem:[%s520_s0 + $0x18] sm:$0xff]   ;;  %v276_v30 = vld [vmem:[%s520_s0 + $0x40] sm:$0xff]  }
   0x4   :  { %v357_v15 = vmax.f32 %v223_v3, %v224_v4  ;;  %v359_v16 = vmax.f32 %v227_v5, %v228_v6  ;;  %v231_v17 = vunpack.c.l.bf16 %v274_v8  ;;  %v232_v18 = vunpack.c.h.bf16 %v274_v8  ;;  %v278_v24 = vld [vmem:[%s520_s0 + $0x50] sm:$0xff]   ;;  %v279_v25 = vld [vmem:[%s520_s0 + $0x58] sm:$0xff]   ;;  %v277_v35 = vld [vmem:[%s520_s0 + $0x48] sm:$0xff]  }
   0x5   :  { %v364_v20 = vmax.f32 %v207_v10, %v208_v11  ;;  %v366_v21 = vmax.f32 %v211_v12, %v212_v13  ;;  %v235_v22 = vunpack.c.l.bf16 %v275_v9  ;;  %v236_v23 = vunpack.c.h.bf16 %v275_v9  ;;  %v282_v40 = vld [vmem:[%s520_s0 + $0x70] sm:$0xff]   ;;  %v283_v45 = vld [vmem:[%s520_s0 + $0x78] sm:$0xff]   ;;  %v280_v50 = vld [vmem:[%s520_s0 + $0x60] sm:$0xff]  }
   0x6   :  { %v295_v26 = vpack.i.bf16 %v359_v16, %v357_v15  ;;  %v376_v27 = vmax.f32 %v231_v17, %v232_v18  ;;  %v215_v28 = vunpack.c.l.bf16 %v270_v14  ;;  %v216_v29 = vunpack.c.h.bf16 %v270_v14  ;;  %v281_v55 = vld [vmem:[%s520_s0 + $0x68] sm:$0xff]  }
   0x7   :  { %v285_v31 = vpack.i.bf16 %v366_v21, %v364_v20  ;;  %v383_v32 = vmax.f32 %v235_v22, %v236_v23  ;;  %v219_v33 = vunpack.c.l.bf16 %v271_v19  ;;  %v220_v34 = vunpack.c.h.bf16 %v271_v19 }
   0x8   :  { %296 = vrot.lane.b32.xlu1 %v295_v26, %s325_s30  ;;  %v389_v36 = vmax.f32 %v215_v28, %v216_v29  ;;  %v247_v37 = vunpack.c.l.bf16 %v278_v24  ;;  %v248_v38 = vunpack.c.h.bf16 %v278_v24  ;;  %v251_v39 = vunpack.c.l.bf16 %v279_v25 }
   0x9   :  { %286 = vrot.lane.b32.xlu0 %v285_v31, %s325_s30  ;;  %v300_v41 = vpack.i.bf16 %v383_v32, %v376_v27  ;;  %v397_v42 = vmax.f32 %v219_v33, %v220_v34  ;;  %v252_v43 = vunpack.c.h.bf16 %v279_v25  ;;  %v239_v44 = vunpack.c.l.bf16 %v276_v30 }
   0xa   :  { %v402_v46 = vmax.f32 %v247_v37, %v248_v38  ;;  %v240_v47 = vunpack.c.h.bf16 %v276_v30  ;;  %v243_v48 = vunpack.c.l.bf16 %v277_v35  ;;  %v244_v49 = vunpack.c.h.bf16 %v277_v35 }
   0xb   :  { %v290_v51 = vpack.i.bf16 %v397_v42, %v389_v36  ;;  %v409_v52 = vmax.f32 %v251_v39, %v252_v43  ;;  %v263_v53 = vunpack.c.l.bf16 %v282_v40  ;;  %v264_v54 = vunpack.c.h.bf16 %v282_v40 }
   0xc   :  { %301 = vrot.lane.b32.xlu1 %v300_v41, %s325_s30  ;;  %v415_v56 = vmax.f32 %v239_v44, %v240_v47  ;;  %v417_v57 = vmax.f32 %v243_v48, %v244_v49  ;;  %v267_v58 = vunpack.c.l.bf16 %v283_v45  ;;  %v268_v59 = vunpack.c.h.bf16 %v283_v45 }
   0xd   :  { %291 = vrot.lane.b32.xlu0 %v290_v51, %s325_s30  ;;  %v310_v60 = vpack.i.bf16 %v409_v52, %v402_v46  ;;  %v422_v61 = vmax.f32 %v263_v53, %v264_v54  ;;  %v255_v62 = vunpack.c.l.bf16 %v280_v50  ;;  %v256_v63 = vunpack.c.h.bf16 %v280_v50 }
   0xe   :  { %v305_v0 = vpack.i.bf16 %v417_v57, %v415_v56  ;;  %v426_v1 = vmax.f32 %v267_v58, %v268_v59  ;;  %v259_v2 = vunpack.c.l.bf16 %v281_v55  ;;  %v260_v3 = vunpack.c.h.bf16 %v281_v55 }
   0xf   :  { %v428_v4 = vmax.f32 %v255_v62, %v256_v63 }
  0x10   :  { %311 = vrot.lane.b32.xlu1 %v310_v60, %s325_s30  ;;  %v320_v5 = vpack.i.bf16 %v426_v1, %v422_v61  ;;  %v433_v6 = vmax.f32 %v259_v2, %v260_v3 }
  0x11   :  { %306 = vrot.lane.b32.xlu0 %v305_v0, %s325_s30 }
  0x12   :  { %v315_v7 = vpack.i.bf16 %v433_v6, %v428_v4 }
  0x14   :  { %321 = vrot.lane.b32.xlu1 %v320_v5, %s325_s30 }
  0x15   :  { %316 = vrot.lane.b32.xlu0 %v315_v7, %s325_s30 }
  0x7a   :  { %v297_v8 = vpop.permute.xlu1 %296 }
  0x7b   :  { %v299_v9 = vunpack.i.h.bf16 %v297_v8  ;;  %v298_v10 = vunpack.i.l.bf16 %v297_v8  ;;  %v287_v11 = vpop.permute.xlu0 %286 }
  0x7c   :  { %v289_v12 = vunpack.i.h.bf16 %v287_v11  ;;  %v288_v13 = vunpack.i.l.bf16 %v287_v11 }
  0x7d   :  { %v157_v14 = vmax.f32 %v359_v16, %v299_v9  ;;  %v156_v17 = vmax.f32 %v357_v15, %v298_v10 }
  0x7e   :  { %v153_v18 = vmax.f32 %v366_v21, %v289_v12  ;;  %v152_v19 = vmax.f32 %v364_v20, %v288_v13  ;;  %v302_v22 = vpop.permute.xlu1 %301 }
  0x7f   :  { %v173_v23 = vpack.c.bf16 %v157_v14, %v157_v14  ;;  %v172_v24 = vpack.c.bf16 %v156_v17, %v156_v17  ;;  %v304_v25 = vunpack.i.h.bf16 %v302_v22  ;;  %v303_v26 = vunpack.i.l.bf16 %v302_v22  ;;  %v292_v28 = vpop.permute.xlu0 %291 }
  0x80   :  { %v169_v29 = vpack.c.bf16 %v153_v18, %v153_v18  ;;  %v168_v30 = vpack.c.bf16 %v152_v19, %v152_v19  ;;  %v294_v31 = vunpack.i.h.bf16 %v292_v28  ;;  %v293_v33 = vunpack.i.l.bf16 %v292_v28 }
  0x81   :  { %190 = vst.msk [vmem:[%s521_s1 + $0x14] sm:$0xf] %vm184_vm0, %v173_v23  ;;  %189 = vst.msk [vmem:[%s521_s1 + $0x10] sm:$0xf] %vm184_vm0, %v172_v24  ;;  %v159_v15 = vmax.f32 %v383_v32, %v304_v25  ;;  %v158_v16 = vmax.f32 %v376_v27, %v303_v26 }
  0x82   :  { %186 = vst.msk [vmem:[%s521_s1 + $0x4] sm:$0xf] %vm184_vm0, %v169_v29  ;;  %185 = vst.msk [vmem:[%s521_s1] sm:$0xf] %vm184_vm0, %v168_v30  ;;  %v155_v20 = vmax.f32 %v397_v42, %v294_v31  ;;  %v154_v21 = vmax.f32 %v389_v36, %v293_v33  ;;  %v312_v34 = vpop.permute.xlu1 %311 }
  0x83   :  { %v175_v35 = vpack.c.bf16 %v159_v15, %v159_v15  ;;  %v174_v37 = vpack.c.bf16 %v158_v16, %v158_v16  ;;  %v314_v32 = vunpack.i.h.bf16 %v312_v34  ;;  %v313_v38 = vunpack.i.l.bf16 %v312_v34  ;;  %v307_v27 = vpop.permute.xlu0 %306 }
  0x84   :  { %v171_v39 = vpack.c.bf16 %v155_v20, %v155_v20  ;;  %v170_v40 = vpack.c.bf16 %v154_v21, %v154_v21  ;;  %v309_v41 = vunpack.i.h.bf16 %v307_v27  ;;  %v308_v43 = vunpack.i.l.bf16 %v307_v27 }
  0x85   :  { %192 = vst.msk [vmem:[%s521_s1 + $0x1c] sm:$0xf] %vm184_vm0, %v175_v35  ;;  %191 = vst.msk [vmem:[%s521_s1 + $0x18] sm:$0xf] %vm184_vm0, %v174_v37  ;;  %v163_v36 = vmax.f32 %v409_v52, %v314_v32  ;;  %v162_v42 = vmax.f32 %v402_v46, %v313_v38 }
  0x86   :  { %188 = vst.msk [vmem:[%s521_s1 + $0xc] sm:$0xf] %vm184_vm0, %v171_v39  ;;  %187 = vst.msk [vmem:[%s521_s1 + $0x8] sm:$0xf] %vm184_vm0, %v170_v40  ;;  %v161_v44 = vmax.f32 %v417_v57, %v309_v41  ;;  %v160_v45 = vmax.f32 %v415_v56, %v308_v43  ;;  %v322_v47 = vpop.permute.xlu1 %321 }
  0x87   :  { %v179_v48 = vpack.c.bf16 %v163_v36, %v163_v36  ;;  %v178_v49 = vpack.c.bf16 %v162_v42, %v162_v42  ;;  %v324_v50 = vunpack.i.h.bf16 %v322_v47  ;;  %v323_v51 = vunpack.i.l.bf16 %v322_v47  ;;  %v317_v46 = vpop.permute.xlu0 %316 }
  0x88   :  { %v177_v52 = vpack.c.bf16 %v161_v44, %v161_v44  ;;  %v176_v53 = vpack.c.bf16 %v160_v45, %v160_v45  ;;  %v319_v54 = vunpack.i.h.bf16 %v317_v46  ;;  %v318_v55 = vunpack.i.l.bf16 %v317_v46 }
  0x89   :  { %196 = vst.msk [vmem:[%s521_s1 + $0x2c] sm:$0xf] %vm184_vm0, %v179_v48  ;;  %195 = vst.msk [vmem:[%s521_s1 + $0x28] sm:$0xf] %vm184_vm0, %v178_v49  ;;  %v167_v56 = vmax.f32 %v426_v1, %v324_v50  ;;  %v166_v57 = vmax.f32 %v422_v61, %v323_v51 }
  0x8a   :  { %194 = vst.msk [vmem:[%s521_s1 + $0x24] sm:$0xf] %vm184_vm0, %v177_v52  ;;  %193 = vst.msk [vmem:[%s521_s1 + $0x20] sm:$0xf] %vm184_vm0, %v176_v53  ;;  %v165_v58 = vmax.f32 %v433_v6, %v319_v54  ;;  %v164_v59 = vmax.f32 %v428_v4, %v318_v55 }
  0x8b   :  { %v183_v60 = vpack.c.bf16 %v167_v56, %v167_v56  ;;  %v182_v62 = vpack.c.bf16 %v166_v57, %v166_v57 }
  0x8c   :  { %v181_v63 = vpack.c.bf16 %v165_v58, %v165_v58  ;;  %v180_v0 = vpack.c.bf16 %v164_v59, %v164_v59 }
  0x8d   :  { %200 = vst.msk [vmem:[%s521_s1 + $0x3c] sm:$0xf] %vm184_vm0, %v183_v60  ;;  %199 = vst.msk [vmem:[%s521_s1 + $0x38] sm:$0xf] %vm184_vm0, %v182_v62 }
  0x8e   :  { %198 = vst.msk [vmem:[%s521_s1 + $0x34] sm:$0xf] %vm184_vm0, %v181_v63  ;;  %197 = vst.msk [vmem:[%s521_s1 + $0x30] sm:$0xf] %vm184_vm0, %v180_v0 }

// kernel: dqn_forward.6
= control target key start
LH: loop header
LB: loop body
LE: loop exit
PB: predicated region body
PF: predicated region fallthrough
CT: control target
= control target key end

     0   :  { %v2411_v0 = vmov 0   ;;  %vm878_vm0 = vcmask 1045504   ;;  %vm781_vm1 = vcmask 359424   ;;  %vm1780_vm2 = vcmask 191488   ;;  %s3292_s1 = inlined_call_operand.vmem [shape: bf16[300,24], index: 1, kind: input, shape index: {}]   ;;  %s3293_s0 = inlined_call_operand.vmem [shape: bf16[512,300], index: 0, kind: input, shape index: {}]   ;;  %s3294_s2 = inlined_call_operand.vmem [shape: f32[1,24], index: 2, kind: input, shape index: {}]   ;;  %s3295_s3 = inlined_call_operand.vmem [shape: bf16[512,24], index: 3, kind: output, shape index: {}]  }
   0x1   :  { %882 = vmatprep.subr.bf16.mxu0 %v2411_v0  ;;  %2230 = vmatprep.subr.bf16.mxu1 %v2411_v0  ;;  %v2264_v1 = vld [vmem:[%s3292_s1] sm:$0xff]   ;;  %v2265_v2 = vld [vmem:[%s3292_s1 + $0x8] sm:$0xff]   ;;  %v2266_v3 = vld [vmem:[%s3292_s1 + $0x10] sm:$0xff]  }
   0x2   :  { %883 = vmatpush1.bf16.msra.mxu0 %v2264_v1  ;;  %2246 = vmatpush1.bf16.msra.mxu1 %v2264_v1  ;;  %v2267_v4 = vld [vmem:[%s3292_s1 + $0x18] sm:$0xff]   ;;  %v2268_v5 = vld [vmem:[%s3292_s1 + $0x20] sm:$0xff]   ;;  %v2269_v7 = vld [vmem:[%s3292_s1 + $0x28] sm:$0xff]  }
   0x3   :  { %884 = vmatprep.subr.bf16.mxu0 %v2411_v0  ;;  %2231 = vmatprep.subr.bf16.mxu1 %v2411_v0  ;;  %v2282_v6 = vld [vmem:[%s3293_s0 + $0x4] ss:$12 sps:$4 sm:$0xff]   ;;  %v2271_v10 = vld [vmem:[%s3292_s1 + $0x38] sm:$0xff]   ;;  %v2273_v12 = vld [vmem:[%s3292_s1 + $0x48] sm:$0xff]  }
   0x4   :  { %v2285_v8 = vld [vmem:[%s3293_s0 + $0x244] ss:$12 sps:$4 sm:$0xff]   ;;  %914 = vmatprep.mubr.bf16.mxu0 %v2282_v6  ;;  %v2275_v14 = vld [vmem:[%s3292_s1 + $0x58] sm:$0xff]   ;;  %v2277_v16 = vld [vmem:[%s3292_s1 + $0x68] sm:$0xff]  }
   0x5   :  { %1106 = vmatprep.mubr.bf16.mxu1 %v2285_v8  ;;  %v2270_v9 = vld [vmem:[%s3292_s1 + $0x30] sm:$0xff]   ;;  %v2272_v11 = vld [vmem:[%s3292_s1 + $0x40] sm:$0xff]   ;;  %v2279_v18 = vld [vmem:[%s3292_s1 + $0x78] sm:$0xff]  }
   0x6   :  { %885 = vmatpush1.bf16.msra.mxu0 %v2265_v2  ;;  %2247 = vmatpush1.bf16.msra.mxu1 %v2265_v2  ;;  %v2274_v13 = vld [vmem:[%s3292_s1 + $0x50] sm:$0xff]   ;;  %v2276_v15 = vld [vmem:[%s3292_s1 + $0x60] sm:$0xff]   ;;  %v2287_v22 = vld [vmem:[%s3293_s0 + $0x1c] ss:$12 sps:$4 sm:$0xff]  }
   0x7   :  { %886 = vmatprep.subr.bf16.mxu0 %v2411_v0  ;;  %2232 = vmatprep.subr.bf16.mxu1 %v2411_v0  ;;  %v2278_v17 = vld [vmem:[%s3292_s1 + $0x70] sm:$0xff]   ;;  %v2286_v19 = vld [vmem:[%s3292_s1 + $0x80] sm:$0xff]   ;;  %v2289_v23 = vld [vmem:[%s3293_s0 + $0x25c] ss:$12 sps:$4 sm:$0xff]  }
   0x8   :  { %v2280_v20 = vld [vmem:[%s3293_s0] ss:$12 sps:$4 sm:$0xff]   ;;  %v2291_v25 = vld [vmem:[%s3293_s0 + $0x18] ss:$12 sps:$4 sm:$0xff]   ;;  %v2318_v26 = vld [vmem:[%s3292_s1 + $0x90] sm:$0x3f]  }
   0x9   :  { %v2283_v21 = vld [vmem:[%s3293_s0 + $0x240] ss:$12 sps:$4 sm:$0xff]   ;;  %v2292_v27 = vld [vmem:[%s3293_s0 + $0x258] ss:$12 sps:$4 sm:$0xff]   ;;  %v880_v30 = vsel %vm878_vm0, %v2318_v26, 0 }
   0xa   :  { %887 = vmatpush1.bf16.msra.mxu0 %v2266_v3  ;;  %2248 = vmatpush1.bf16.msra.mxu1 %v2266_v3  ;;  %v2299_v24 = vld [vmem:[%s3292_s1 + $0x88] sm:$0xff]   ;;  %v2293_v28 = vld [vmem:[%s3293_s0 + $0x34] ss:$12 sps:$4 sm:$0xff]   ;;  %v2297_v31 = vld [vmem:[%s3293_s0 + $0x30] ss:$12 sps:$4 sm:$0xff]  }
   0xb   :  { %888 = vmatprep.subr.bf16.mxu0 %v2411_v0  ;;  %2233 = vmatprep.subr.bf16.mxu1 %v2411_v0  ;;  %v2295_v29 = vld [vmem:[%s3293_s0 + $0x274] ss:$12 sps:$4 sm:$0xff]   ;;  %v2298_v32 = vld [vmem:[%s3293_s0 + $0x270] ss:$12 sps:$4 sm:$0xff]   ;;  %v2300_v33 = vld [vmem:[%s3293_s0 + $0x4c] ss:$12 sps:$4 sm:$0xff]  }
   0xc   :  { %v2302_v34 = vld [vmem:[%s3293_s0 + $0x28c] ss:$12 sps:$4 sm:$0xff]   ;;  %v2304_v35 = vld [vmem:[%s3293_s0 + $0x48] ss:$12 sps:$4 sm:$0xff]   ;;  %v2306_v37 = vld [vmem:[%s3293_s0 + $0x64] ss:$12 sps:$4 sm:$0xff]  }
   0xd   :  { %v2305_v36 = vld [vmem:[%s3293_s0 + $0x288] ss:$12 sps:$4 sm:$0xff]   ;;  %v2308_v38 = vld [vmem:[%s3293_s0 + $0x2a4] ss:$12 sps:$4 sm:$0xff]   ;;  %v2310_v39 = vld [vmem:[%s3293_s0 + $0x60] ss:$12 sps:$4 sm:$0xff]  }
   0xe   :  { %889 = vmatpush1.bf16.msra.mxu0 %v2267_v4  ;;  %2249 = vmatpush1.bf16.msra.mxu1 %v2267_v4  ;;  %v2311_v40 = vld [vmem:[%s3293_s0 + $0x2a0] ss:$12 sps:$4 sm:$0xff]   ;;  %v2312_v41 = vld [vmem:[%s3293_s0 + $0x7c] ss:$12 sps:$4 sm:$0xff]   ;;  %v2316_v43 = vld [vmem:[%s3293_s0 + $0x78] ss:$12 sps:$4 sm:$0xff]  }
   0xf   :  { %890 = vmatprep.subr.bf16.mxu0 %v2411_v0  ;;  %2234 = vmatprep.subr.bf16.mxu1 %v2411_v0  ;;  %v2314_v42 = vld [vmem:[%s3293_s0 + $0x2bc] ss:$12 sps:$4 sm:$0xff]   ;;  %v2317_v44 = vld [vmem:[%s3293_s0 + $0x2b8] ss:$12 sps:$4 sm:$0xff]   ;;  %v2319_v45 = vld [vmem:[%s3293_s0 + $0x94] ss:$12 sps:$4 sm:$0xff]  }
  0x10   :  { %v2321_v46 = vld [vmem:[%s3293_s0 + $0x2d4] ss:$12 sps:$4 sm:$0xff]   ;;  %v2323_v47 = vld [vmem:[%s3293_s0 + $0x90] ss:$12 sps:$4 sm:$0xff]   ;;  %v2325_v49 = vld [vmem:[%s3293_s0 + $0xac] ss:$12 sps:$4 sm:$0xff]  }
  0x11   :  { %v2324_v48 = vld [vmem:[%s3293_s0 + $0x2d0] ss:$12 sps:$4 sm:$0xff]   ;;  %v2327_v50 = vld [vmem:[%s3293_s0 + $0x2ec] ss:$12 sps:$4 sm:$0xff]   ;;  %v2329_v51 = vld [vmem:[%s3293_s0 + $0xa8] ss:$12 sps:$4 sm:$0xff]  }
  0x12   :  { %891 = vmatpush1.bf16.msra.mxu0 %v2268_v5  ;;  %2250 = vmatpush1.bf16.msra.mxu1 %v2268_v5  ;;  %v2330_v52 = vld [vmem:[%s3293_s0 + $0x2e8] ss:$12 sps:$4 sm:$0xff]   ;;  %v2331_v53 = vld [vmem:[%s3293_s0 + $0xc4] ss:$12 sps:$4 sm:$0xff]   ;;  %v2334_v55 = vld [vmem:[%s3293_s0 + $0xc0] ss:$12 sps:$4 sm:$0xff]  }
  0x13   :  { %892 = vmatprep.subr.bf16.mxu0 %v2411_v0  ;;  %2235 = vmatprep.subr.bf16.mxu1 %v2411_v0  ;;  %v2333_v54 = vld [vmem:[%s3293_s0 + $0x8] ss:$12 sps:$4 sm:$0xff]   ;;  %v2335_v56 = vld [vmem:[%s3293_s0 + $0x20] ss:$12 sps:$4 sm:$0xff]   ;;  %v2338_v58 = vld [vmem:[%s3293_s0 + $0x38] ss:$12 sps:$4 sm:$0xff]  }
  0x14   :  { %v2336_v57 = vld [vmem:[%s3293_s0 + $0xdc] ss:$12 sps:$4 sm:$0xff]   ;;  %v2339_v59 = vld [vmem:[%s3293_s0 + $0xd8] ss:$12 sps:$4 sm:$0xff]   ;;  %v2341_v61 = vld [vmem:[%s3293_s0 + $0xf4] ss:$12 sps:$4 sm:$0xff]  }
  0x15   :  { %v2340_v60 = vld [vmem:[%s3293_s0 + $0x50] ss:$12 sps:$4 sm:$0xff]   ;;  %v2343_v62 = vld [vmem:[%s3293_s0 + $0x68] ss:$12 sps:$4 sm:$0xff]   ;;  %v2346_v1 = vld [vmem:[%s3293_s0 + $0x10c] ss:$12 sps:$4 sm:$0xff]  }
  0x16   :  { %893 = vmatpush1.bf16.msra.mxu0 %v2269_v7  ;;  %2251 = vmatpush1.bf16.msra.mxu1 %v2269_v7  ;;  %v2344_v63 = vld [vmem:[%s3293_s0 + $0xf0] ss:$12 sps:$4 sm:$0xff]   ;;  %v2348_v2 = vld [vmem:[%s3293_s0 + $0x98] ss:$12 sps:$4 sm:$0xff]   ;;  %v2349_v3 = vld [vmem:[%s3293_s0 + $0x108] ss:$12 sps:$4 sm:$0xff]  }
  0x17   :  { %894 = vmatprep.subr.bf16.mxu0 %v2411_v0  ;;  %2236 = vmatprep.subr.bf16.mxu1 %v2411_v0  ;;  %v2350_v4 = vld [vmem:[%s3293_s0 + $0xb0] ss:$12 sps:$4 sm:$0xff]   ;;  %v2353_v6 = vld [vmem:[%s3293_s0 + $0xc8] ss:$12 sps:$4 sm:$0xff]   ;;  %v2354_v7 = vld [vmem:[%s3293_s0 + $0x120] ss:$12 sps:$4 sm:$0xff]  }
  0x18   :  { %v2351_v5 = vld [vmem:[%s3293_s0 + $0x124] ss:$12 sps:$4 sm:$0xff]   ;;  %v2355_v8 = vld [vmem:[%s3293_s0 + $0xe0] ss:$12 sps:$4 sm:$0xff]  }
  0x1a   :  { %895 = vmatpush1.bf16.msra.mxu0 %v2270_v9  ;;  %2252 = vmatpush1.bf16.msra.mxu1 %v2270_v9  ;;  %v2356_v9 = vld [vmem:[%s3293_s0 + $0x13c] ss:$12 sps:$4 sm:$0xff]  }
  0x1b   :  { %896 = vmatprep.subr.bf16.mxu0 %v2411_v0  ;;  %2237 = vmatprep.subr.bf16.mxu1 %v2411_v0 }
  0x1e   :  { %897 = vmatpush1.bf16.msra.mxu0 %v2271_v10  ;;  %2253 = vmatpush1.bf16.msra.mxu1 %v2271_v10  ;;  %v2358_v10 = vld [vmem:[%s3293_s0 + $0xf8] ss:$12 sps:$4 sm:$0xff]  }
  0x1f   :  { %898 = vmatprep.subr.bf16.mxu0 %v2411_v0  ;;  %2238 = vmatprep.subr.bf16.mxu1 %v2411_v0 }
  0x22   :  { %899 = vmatpush1.bf16.msra.mxu0 %v2272_v11  ;;  %2254 = vmatpush1.bf16.msra.mxu1 %v2272_v11  ;;  %v2359_v11 = vld [vmem:[%s3293_s0 + $0x138] ss:$12 sps:$4 sm:$0xff]  }
  0x23   :  { %900 = vmatprep.subr.bf16.mxu0 %v2411_v0  ;;  %2239 = vmatprep.subr.bf16.mxu1 %v2411_v0 }
  0x26   :  { %901 = vmatpush1.bf16.msra.mxu0 %v2273_v12  ;;  %2255 = vmatpush1.bf16.msra.mxu1 %v2273_v12  ;;  %v2360_v12 = vld [vmem:[%s3293_s0 + $0x110] ss:$12 sps:$4 sm:$0xff]  }
  0x27   :  { %902 = vmatprep.subr.bf16.mxu0 %v2411_v0  ;;  %2240 = vmatprep.subr.bf16.mxu1 %v2411_v0 }
  0x2a   :  { %903 = vmatpush1.bf16.msra.mxu0 %v2274_v13  ;;  %2256 = vmatpush1.bf16.msra.mxu1 %v2274_v13  ;;  %v2361_v13 = vld [vmem:[%s3293_s0 + $0x154] ss:$12 sps:$4 sm:$0xff]  }
  0x2b   :  { %904 = vmatprep.subr.bf16.mxu0 %v2411_v0  ;;  %2241 = vmatprep.subr.bf16.mxu1 %v2411_v0 }
  0x2e   :  { %905 = vmatpush1.bf16.msra.mxu0 %v2275_v14  ;;  %2257 = vmatpush1.bf16.msra.mxu1 %v2275_v14  ;;  %v2363_v14 = vld [vmem:[%s3293_s0 + $0x128] ss:$12 sps:$4 sm:$0xff]  }
  0x2f   :  { %906 = vmatprep.subr.bf16.mxu0 %v2411_v0  ;;  %2242 = vmatprep.subr.bf16.mxu1 %v2411_v0 }
  0x32   :  { %907 = vmatpush1.bf16.msra.mxu0 %v2276_v15  ;;  %2258 = vmatpush1.bf16.msra.mxu1 %v2276_v15  ;;  %v2364_v15 = vld [vmem:[%s3293_s0 + $0x150] ss:$12 sps:$4 sm:$0xff]  }
  0x33   :  { %908 = vmatprep.subr.bf16.mxu0 %v2411_v0  ;;  %2243 = vmatprep.subr.bf16.mxu1 %v2411_v0 }
  0x36   :  { %909 = vmatpush1.bf16.msra.mxu0 %v2277_v16  ;;  %2259 = vmatpush1.bf16.msra.mxu1 %v2277_v16  ;;  %v2365_v16 = vld [vmem:[%s3293_s0 + $0x140] ss:$12 sps:$4 sm:$0xff]  }
  0x37   :  { %910 = vmatprep.subr.bf16.mxu0 %v2411_v0  ;;  %2244 = vmatprep.subr.bf16.mxu1 %v2411_v0 }
  0x3a   :  { %911 = vmatpush1.bf16.msra.mxu0 %v2278_v17  ;;  %2260 = vmatpush1.bf16.msra.mxu1 %v2278_v17  ;;  %v2366_v17 = vld [vmem:[%s3293_s0 + $0x16c] ss:$12 sps:$4 sm:$0xff]  }
  0x3b   :  { %912 = vmatprep.subr.bf16.mxu0 %v2411_v0  ;;  %2245 = vmatprep.subr.bf16.mxu1 %v2411_v0  ;;  %v2345_v0 = vld [vmem:[%s3293_s0 + $0x80] ss:$12 sps:$4 sm:$0xff]  }
  0x3e   :  { %913 = vmatpush1.bf16.msra.mxu0 %v2279_v18  ;;  %2261 = vmatpush1.bf16.msra.mxu1 %v2279_v18  ;;  %v2368_v18 = vld [vmem:[%s3293_s0 + $0x158] ss:$12 sps:$4 sm:$0xff]  }
  0x3f   :  { %2160 = vmatprep.subr.bf16.mxu1 %v2286_v19 }
  0x41   :  { %915 = vmatmul.mubr.bf16.vlgmr.msra.gmra.mrb[0].mxu0 %v2280_v20  ;;  %1107 = vmatmul.mubr.bf16.vlgmr.msra.gmra.mrb[0].mxu1 %v2283_v21  ;;  %v2370_v20 = vld [vmem:[%s3293_s0 + $0x170] ss:$12 sps:$4 sm:$0xff]  }
  0x42   :  { %2161 = vmatpush3.bf16.msra.mxu1 %v2286_v19  ;;  %922 = vmatprep.mubr.bf16.mxu0 %v2287_v22  ;;  %v2369_v19 = vld [vmem:[%s3293_s0 + $0x168] ss:$12 sps:$4 sm:$0xff]   ;;  %v2371_v21 = vld [vmem:[%s3293_s0 + $0x184] ss:$12 sps:$4 sm:$0xff]  }
  0x43   :  { %1114 = vmatprep.mubr.bf16.mxu1 %v2289_v23  ;;  %2162 = vmatprep.subr.bf16.mxu1 %v2299_v24  ;;  %v2373_v22 = vld [vmem:[%s3293_s0 + $0x188] ss:$12 sps:$4 sm:$0xff]   ;;  %v2374_v23 = vld [vmem:[%s3293_s0 + $0x180] ss:$12 sps:$4 sm:$0xff]  }
  0x46   :  { %2163 = vmatpush3.bf16.msra.mxu1 %v2299_v24  ;;  %v2375_v24 = vld [vmem:[%s3293_s0 + $0x1a0] ss:$12 sps:$4 sm:$0xff]  }
  0x47   :  { %2262 = vmatprep.subr.msk.bf16.mxu1 %vm878_vm0, %v2318_v26  ;;  %v2378_v26 = vld [vmem:[%s3293_s0 + $0x1b8] ss:$12 sps:$4 sm:$0xff]  }
  0x49   :  { %923 = vmatmul.mubr.bf16.gmra.mrb[4].mxu0 %v2291_v25  ;;  %1115 = vmatmul.mubr.bf16.gmra.mrb[4].mxu1 %v2292_v27  ;;  %v2376_v25 = vld [vmem:[%s3293_s0 + $0x19c] ss:$12 sps:$4 sm:$0xff]   ;;  %v2379_v27 = vld [vmem:[%s3293_s0 + $0x198] ss:$12 sps:$4 sm:$0xff]  }
  0x4a   :  { %930 = vmatprep.mubr.bf16.mxu0 %v2293_v28  ;;  %1122 = vmatprep.mubr.bf16.mxu1 %v2295_v29  ;;  %v2380_v28 = vld [vmem:[%s3293_s0 + $0x1d0] ss:$12 sps:$4 sm:$0xff]   ;;  %v2381_v29 = vld [vmem:[%s3293_s0 + $0x1b4] ss:$12 sps:$4 sm:$0xff]  }
  0x4b   :  { %2165 = vmatpush3.bf16.msra.mxu1 %v880_v30  ;;  %v2383_v30 = vld [vmem:[%s3293_s0 + $0x1e8] ss:$12 sps:$4 sm:$0xff]  }
  0x51   :  { %931 = vmatmul.mubr.bf16.gmra.mrb[8].mxu0 %v2297_v31  ;;  %1123 = vmatmul.mubr.bf16.gmra.mrb[8].mxu1 %v2298_v32  ;;  %v2384_v31 = vld [vmem:[%s3293_s0 + $0x1b0] ss:$12 sps:$4 sm:$0xff]   ;;  %v2385_v32 = vld [vmem:[%s3293_s0 + $0x200] ss:$12 sps:$4 sm:$0xff]  }
  0x52   :  { %938 = vmatprep.mubr.bf16.mxu0 %v2300_v33  ;;  %1130 = vmatprep.mubr.bf16.mxu1 %v2302_v34  ;;  %v2386_v33 = vld [vmem:[%s3293_s0 + $0x1cc] ss:$12 sps:$4 sm:$0xff]  }
  0x53   :  { %v2388_v34 = vld [vmem:[%s3293_s0 + $0x218] ss:$12 sps:$4 sm:$0xff]  }
  0x59   :  { %939 = vmatmul.mubr.bf16.gmra.mrb[12].mxu0 %v2304_v35  ;;  %1131 = vmatmul.mubr.bf16.gmra.mrb[12].mxu1 %v2305_v36  ;;  %v2389_v35 = vld [vmem:[%s3293_s0 + $0x1c8] ss:$12 sps:$4 sm:$0xff]   ;;  %v2390_v36 = vld [vmem:[%s3293_s0 + $0x230] ss:$12 sps:$4 sm:$0xff]  }
  0x5a   :  { %946 = vmatprep.mubr.bf16.mxu0 %v2306_v37  ;;  %1138 = vmatprep.mubr.bf16.mxu1 %v2308_v38  ;;  %v2391_v37 = vld [vmem:[%s3293_s0 + $0x1e4] ss:$12 sps:$4 sm:$0xff]   ;;  %v2393_v38 = vld [vmem:[%s3293_s0 + $0x248] ss:$12 sps:$4 sm:$0xff]  }
  0x61   :  { %947 = vmatmul.mubr.bf16.gmra.mrb[16].mxu0 %v2310_v39  ;;  %1139 = vmatmul.mubr.bf16.gmra.mrb[16].mxu1 %v2311_v40  ;;  %v2394_v39 = vld [vmem:[%s3293_s0 + $0x1e0] ss:$12 sps:$4 sm:$0xff]  }
  0x62   :  { %954 = vmatprep.mubr.bf16.mxu0 %v2312_v41  ;;  %1146 = vmatprep.mubr.bf16.mxu1 %v2314_v42  ;;  %v2395_v40 = vld [vmem:[%s3293_s0 + $0x260] ss:$12 sps:$4 sm:$0xff]   ;;  %v2396_v41 = vld [vmem:[%s3293_s0 + $0x1fc] ss:$12 sps:$4 sm:$0xff]   ;;  %v2398_v42 = vld [vmem:[%s3293_s0 + $0x278] ss:$12 sps:$4 sm:$0xff]  }
  0x69   :  { %955 = vmatmul.mubr.bf16.gmra.mrb[20].mxu0 %v2316_v43  ;;  %1147 = vmatmul.mubr.bf16.gmra.mrb[20].mxu1 %v2317_v44  ;;  %v2399_v43 = vld [vmem:[%s3293_s0 + $0x1f8] ss:$12 sps:$4 sm:$0xff]   ;;  %v2400_v44 = vld [vmem:[%s3293_s0 + $0x290] ss:$12 sps:$4 sm:$0xff]  }
  0x6a   :  { %962 = vmatprep.mubr.bf16.mxu0 %v2319_v45  ;;  %1154 = vmatprep.mubr.bf16.mxu1 %v2321_v46  ;;  %v2401_v45 = vld [vmem:[%s3293_s0 + $0x214] ss:$12 sps:$4 sm:$0xff]  }
  0x6b   :  { %v2403_v46 = vld [vmem:[%s3293_s0 + $0x2a8] ss:$12 sps:$4 sm:$0xff]  }
  0x71   :  { %963 = vmatmul.mubr.bf16.gmra.mrb[24].mxu0 %v2323_v47  ;;  %1155 = vmatmul.mubr.bf16.gmra.mrb[24].mxu1 %v2324_v48  ;;  %v2404_v47 = vld [vmem:[%s3293_s0 + $0x210] ss:$12 sps:$4 sm:$0xff]   ;;  %v2405_v48 = vld [vmem:[%s3293_s0 + $0x2c0] ss:$12 sps:$4 sm:$0xff]  }
  0x72   :  { %970 = vmatprep.mubr.bf16.mxu0 %v2325_v49  ;;  %1162 = vmatprep.mubr.bf16.mxu1 %v2327_v50  ;;  %v2406_v49 = vld [vmem:[%s3293_s0 + $0x22c] ss:$12 sps:$4 sm:$0xff]  }
  0x73   :  { %v2408_v50 = vld [vmem:[%s3293_s0 + $0x2d8] ss:$12 sps:$4 sm:$0xff]  }
  0x79   :  { %971 = vmatmul.mubr.bf16.gmra.mrb[28].mxu0 %v2329_v51  ;;  %1163 = vmatmul.mubr.bf16.gmra.mrb[28].mxu1 %v2330_v52  ;;  %v2409_v51 = vld [vmem:[%s3293_s0 + $0x228] ss:$12 sps:$4 sm:$0xff]   ;;  %v2410_v52 = vld [vmem:[%s3293_s0 + $0x2f0] ss:$12 sps:$4 sm:$0xff]  }
  0x7a   :  { %978 = vmatprep.mubr.bf16.mxu0 %v2331_v53  ;;  %2166 = vmatprep.mubr.msk.bf16.mxu1 %vm781_vm1, %v2333_v54 }
  0x81   :  { %979 = vmatmul.mubr.bf16.gmra.mrb[32].mxu0 %v2334_v55  ;;  %2167 = vmatmul.mubr.msk.bf16.vlgmr.msra.gmra.mrb[32].mxu1 %vm781_vm1, %v2335_v56 }
  0x82   :  { %986 = vmatprep.mubr.bf16.mxu0 %v2336_v57  ;;  %2170 = vmatprep.mubr.msk.bf16.mxu1 %vm781_vm1, %v2338_v58 }
  0x89   :  { %987 = vmatmul.mubr.bf16.gmra.mrb[36].mxu0 %v2339_v59  ;;  %2171 = vmatmul.mubr.msk.bf16.gmra.mrb[36].mxu1 %vm781_vm1, %v2340_v60 }
  0x8a   :  { %994 = vmatprep.mubr.bf16.mxu0 %v2341_v61  ;;  %2174 = vmatprep.mubr.msk.bf16.mxu1 %vm781_vm1, %v2343_v62 }
  0x91   :  { %995 = vmatmul.mubr.bf16.gmra.mrb[40].mxu0 %v2344_v63  ;;  %2175 = vmatmul.mubr.msk.bf16.gmra.mrb[40].mxu1 %vm781_vm1, %v2345_v0 }
  0x92   :  { %1002 = vmatprep.mubr.bf16.mxu0 %v2346_v1  ;;  %2178 = vmatprep.mubr.msk.bf16.mxu1 %vm781_vm1, %v2348_v2 }
  0x99   :  { %1003 = vmatmul.mubr.bf16.gmra.mrb[44].mxu0 %v2349_v3  ;;  %2179 = vmatmul.mubr.msk.bf16.gmra.mrb[44].mxu1 %vm781_vm1, %v2350_v4 }
  0x9a   :  { %1010 = vmatprep.mubr.bf16.mxu0 %v2351_v5  ;;  %2182 = vmatprep.mubr.msk.bf16.mxu1 %vm781_vm1, %v2353_v6 }
  0xa1   :  { %1011 = vmatmul.mubr.bf16.gmra.mrb[48].mxu0 %v2354_v7  ;;  %2183 = vmatmul.mubr.msk.bf16.gmra.mrb[48].mxu1 %vm781_vm1, %v2355_v8 }
  0xa2   :  { %1018 = vmatprep.mubr.bf16.mxu0 %v2356_v9  ;;  %2186 = vmatprep.mubr.msk.bf16.mxu1 %vm781_vm1, %v2358_v10 }
  0xa9   :  { %1019 = vmatmul.mubr.bf16.gmra.mrb[52].mxu0 %v2359_v11  ;;  %2187 = vmatmul.mubr.msk.bf16.gmra.mrb[52].mxu1 %vm781_vm1, %v2360_v12 }
  0xaa   :  { %1026 = vmatprep.mubr.bf16.mxu0 %v2361_v13  ;;  %2190 = vmatprep.mubr.msk.bf16.mxu1 %vm781_vm1, %v2363_v14 }
  0xb1   :  { %1027 = vmatmul.mubr.bf16.gmra.mrb[56].mxu0 %v2364_v15  ;;  %2191 = vmatmul.mubr.msk.bf16.gmra.mrb[56].mxu1 %vm781_vm1, %v2365_v16 }
  0xb2   :  { %1034 = vmatprep.mubr.bf16.mxu0 %v2366_v17  ;;  %2194 = vmatprep.mubr.msk.bf16.mxu1 %vm781_vm1, %v2368_v18 }
  0xb9   :  { %1035 = vmatmul.mubr.bf16.gmra.mrb[60].mxu0 %v2369_v19  ;;  %2195 = vmatmul.mubr.msk.bf16.gmra.mrb[60].mxu1 %vm781_vm1, %v2370_v20 }
  0xba   :  { %1042 = vmatprep.mubr.bf16.mxu0 %v2371_v21  ;;  %2198 = vmatprep.mubr.msk.bf16.mxu1 %vm781_vm1, %v2373_v22 }
  0xc1   :  { %1043 = vmatmul.mubr.bf16.gmra.mrb[64].mxu0 %v2374_v23  ;;  %2199 = vmatmul.mubr.msk.bf16.gmra.mrb[64].mxu1 %vm781_vm1, %v2375_v24 }
  0xc2   :  { %1050 = vmatprep.mubr.bf16.mxu0 %v2376_v25  ;;  %2202 = vmatprep.mubr.msk.bf16.mxu1 %vm781_vm1, %v2378_v26 }
  0xc9   :  { %1051 = vmatmul.mubr.bf16.gmra.mrb[68].mxu0 %v2379_v27  ;;  %2203 = vmatmul.mubr.msk.bf16.gmra.mrb[68].mxu1 %vm781_vm1, %v2380_v28 }
  0xca   :  { %1058 = vmatprep.mubr.bf16.mxu0 %v2381_v29  ;;  %2206 = vmatprep.mubr.msk.bf16.mxu1 %vm781_vm1, %v2383_v30 }
  0xd1   :  { %1059 = vmatmul.mubr.bf16.gmra.mrb[72].mxu0 %v2384_v31  ;;  %2207 = vmatmul.mubr.msk.bf16.gmra.mrb[72].mxu1 %vm781_vm1, %v2385_v32 }
  0xd2   :  { %1066 = vmatprep.mubr.bf16.mxu0 %v2386_v33  ;;  %2210 = vmatprep.mubr.msk.bf16.mxu1 %vm781_vm1, %v2388_v34 }
  0xd9   :  { %1067 = vmatmul.mubr.bf16.gmra.mrb[76].mxu0 %v2389_v35  ;;  %2211 = vmatmul.mubr.msk.bf16.gmra.mrb[76].mxu1 %vm781_vm1, %v2390_v36 }
  0xda   :  { %1074 = vmatprep.mubr.bf16.mxu0 %v2391_v37  ;;  %2214 = vmatprep.mubr.msk.bf16.mxu1 %vm781_vm1, %v2393_v38 }
  0xe1   :  { %1075 = vmatmul.mubr.bf16.gmra.mrb[80].mxu0 %v2394_v39  ;;  %2215 = vmatmul.mubr.msk.bf16.gmra.mrb[80].mxu1 %vm781_vm1, %v2395_v40 }
  0xe2   :  { %1082 = vmatprep.mubr.bf16.mxu0 %v2396_v41  ;;  %2218 = vmatprep.mubr.msk.bf16.mxu1 %vm781_vm1, %v2398_v42 }
  0xe9   :  { %1083 = vmatmul.mubr.bf16.gmra.mrb[84].mxu0 %v2399_v43  ;;  %2219 = vmatmul.mubr.msk.bf16.gmra.mrb[84].mxu1 %vm781_vm1, %v2400_v44 }
  0xea   :  { %1090 = vmatprep.mubr.bf16.mxu0 %v2401_v45  ;;  %2222 = vmatprep.mubr.msk.bf16.mxu1 %vm781_vm1, %v2403_v46 }
  0xf1   :  { %1091 = vmatmul.mubr.bf16.gmra.mrb[88].mxu0 %v2404_v47  ;;  %2223 = vmatmul.mubr.msk.bf16.gmra.mrb[88].mxu1 %vm781_vm1, %v2405_v48 }
  0xf2   :  { %1098 = vmatprep.mubr.bf16.mxu0 %v2406_v49  ;;  %2226 = vmatprep.mubr.msk.bf16.mxu1 %vm781_vm1, %v2408_v50 }
  0xf9   :  { %1099 = vmatmul.mubr.bf16.gmra.mrb[92].mxu0 %v2409_v51  ;;  %2227 = vmatmul.mubr.msk.bf16.gmra.mrb[92].mxu1 %vm781_vm1, %v2410_v52 }
 0x114   :  { %v2841_v53 = vpop.f32.mrb[0].mxu0  ;;  %v2843_v54 = vpop.f32.mrb[0].mxu1 }
 0x115   :  { %v918_v55 = vpop.f32.mrb[1].mxu0  ;;  %v1110_v56 = vpop.f32.mrb[1].mxu1 }
 0x116   :  { %v2845_v57 = vpop.f32.mrb[2].mxu0  ;;  %v2847_v58 = vpop.f32.mrb[2].mxu1  ;;  %v2904_v55 = vld [vmem:[%s3294_s2] ss:$0 sm:$0xff] }
 0x117   :  { %v921_v59 = vpop.f32.mrb[3].mxu0  ;;  %v1113_v60 = vpop.f32.mrb[3].mxu1 }
 0x118   :  { %v917_v59 = vadd.f32 %v2904_v55, %v2841_v53 }
 0x11c   :  { %v924_v61 = vpop.f32.mrb[4].mxu0  ;;  %v2849_v62 = vpop.f32.mrb[4].mxu1 }
 0x11d   :  { %v926_v63 = vpop.f32.mrb[5].mxu0  ;;  %v1118_v0 = vpop.f32.mrb[5].mxu1  ;;  %v925_v56 = vadd.f32 %v2904_v55, %v924_v61 }
 0x11e   :  { %v927_v1 = vpop.f32.mrb[6].mxu0  ;;  %v2851_v2 = vpop.f32.mrb[6].mxu1 }
 0x11f   :  { %v929_v3 = vpop.f32.mrb[7].mxu0  ;;  %v1121_v4 = vpop.f32.mrb[7].mxu1  ;;  %v928_v0 = vadd.f32 %v2904_v55, %v927_v1 }
 0x124   :  { %v2853_v5 = vpop.f32.mrb[8].mxu0  ;;  %v2855_v6 = vpop.f32.mrb[8].mxu1 }
 0x125   :  { %v934_v7 = vpop.f32.mrb[9].mxu0  ;;  %v1126_v8 = vpop.f32.mrb[9].mxu1 }
 0x126   :  { %v2857_v9 = vpop.f32.mrb[10].mxu0  ;;  %v2859_v10 = vpop.f32.mrb[10].mxu1  ;;  %v920_v8 = vadd.f32 %v2904_v55, %v2845_v57 }
 0x127   :  { %v937_v11 = vpop.f32.mrb[11].mxu0  ;;  %v1129_v12 = vpop.f32.mrb[11].mxu1 }
 0x12c   :  { %v2861_v13 = vpop.f32.mrb[12].mxu0  ;;  %v2863_v14 = vpop.f32.mrb[12].mxu1 }
 0x12d   :  { %v942_v15 = vpop.f32.mrb[13].mxu0  ;;  %v1134_v16 = vpop.f32.mrb[13].mxu1 }
 0x12e   :  { %v2865_v17 = vpop.f32.mrb[14].mxu0  ;;  %v2867_v18 = vpop.f32.mrb[14].mxu1 }
 0x12f   :  { %v945_v19 = vpop.f32.mrb[15].mxu0  ;;  %v1137_v20 = vpop.f32.mrb[15].mxu1 }
 0x134   :  { %v2869_v21 = vpop.f32.mrb[16].mxu0  ;;  %v2871_v22 = vpop.f32.mrb[16].mxu1 }
 0x135   :  { %v950_v23 = vpop.f32.mrb[17].mxu0  ;;  %v1142_v24 = vpop.f32.mrb[17].mxu1 }
 0x136   :  { %v2873_v25 = vpop.f32.mrb[18].mxu0  ;;  %v2875_v26 = vpop.f32.mrb[18].mxu1 }
 0x137   :  { %v953_v27 = vpop.f32.mrb[19].mxu0  ;;  %v1145_v28 = vpop.f32.mrb[19].mxu1 }
 0x13c   :  { %v2877_v29 = vpop.f32.mrb[20].mxu0  ;;  %v2879_v30 = vpop.f32.mrb[20].mxu1 }
 0x13d   :  { %v958_v31 = vpop.f32.mrb[21].mxu0  ;;  %v1150_v32 = vpop.f32.mrb[21].mxu1 }
 0x13e   :  { %v2881_v33 = vpop.f32.mrb[22].mxu0  ;;  %v2883_v34 = vpop.f32.mrb[22].mxu1  ;;  %v941_v31 = vadd.f32 %v2904_v55, %v2861_v13  ;;  %v933_v32 = vadd.f32 %v2904_v55, %v2853_v5  ;;  %v944_v13 = vadd.f32 %v2904_v55, %v2865_v17 }
 0x13f   :  { %v961_v35 = vpop.f32.mrb[23].mxu0  ;;  %v1153_v36 = vpop.f32.mrb[23].mxu1 }
 0x144   :  { %v2885_v37 = vpop.f32.mrb[24].mxu0  ;;  %v2887_v38 = vpop.f32.mrb[24].mxu1 }
 0x145   :  { %v966_v39 = vpop.f32.mrb[25].mxu0  ;;  %v1158_v40 = vpop.f32.mrb[25].mxu1 }
 0x146   :  { %v2889_v41 = vpop.f32.mrb[26].mxu0  ;;  %v2891_v42 = vpop.f32.mrb[26].mxu1 }
 0x147   :  { %v969_v43 = vpop.f32.mrb[27].mxu0  ;;  %v1161_v44 = vpop.f32.mrb[27].mxu1 }
 0x148   :  { %v936_v44 = vadd.f32 %v2904_v55, %v2857_v9  ;;  %v957_v9 = vadd.f32 %v2904_v55, %v2877_v29  ;;  %v960_v29 = vadd.f32 %v2904_v55, %v2881_v33 }
 0x14c   :  { %v2893_v45 = vpop.f32.mrb[28].mxu0  ;;  %v2895_v46 = vpop.f32.mrb[28].mxu1 }
 0x14d   :  { %v974_v47 = vpop.f32.mrb[29].mxu0  ;;  %v1166_v48 = vpop.f32.mrb[29].mxu1 }
 0x14e   :  { %v2897_v49 = vpop.f32.mrb[30].mxu0  ;;  %v2899_v50 = vpop.f32.mrb[30].mxu1 }
 0x14f   :  { %v977_v51 = vpop.f32.mrb[31].mxu0  ;;  %v1169_v52 = vpop.f32.mrb[31].mxu1 }
 0x154   :  { %v2909_v60 = vpop.f32.mrb[32].mxu0  ;;  %v2168_v63 = vpop.f32.mrb[32].mxu1 }
 0x155   :  { %v1214_v3 = vadd.f32 %v2168_v63, %v925_v56  ;;  %v982_v4 = vpop.f32.mrb[33].mxu0  ;;  %v1205_v7 = vpop.f32.mrb[33].mxu1 }
 0x156   :  { %v1206_v11 = vadd.f32 %v1205_v7, %v917_v59  ;;  %v2914_v12 = vpop.f32.mrb[34].mxu0  ;;  %v2169_v15 = vpop.f32.mrb[34].mxu1 }
 0x157   :  { %v1462_v16 = vmax.f32 %v1214_v3, 0.0  ;;  %v1217_v61 = vadd.f32 %v2169_v15, %v928_v0  ;;  %v985_v19 = vpop.f32.mrb[35].mxu0  ;;  %v1208_v20 = vpop.f32.mrb[35].mxu1  ;;  %v949_v15 = vadd.f32 %v2904_v55, %v2869_v21 }
 0x158   :  { %v1460_v53 = vmax.f32 %v1206_v11, 0.0  ;;  %v1209_v23 = vadd.f32 %v1208_v20, %v920_v8 }
 0x159   :  { %v2063_v24 = vpack.c.bf16 %v1462_v16, %v1462_v16  ;;  %v1463_v27 = vmax.f32 %v1217_v61, 0.0 }
 0x15a   :  { %v2061_v1 = vpack.c.bf16 %v1460_v53, %v1460_v53  ;;  %v1461_v28 = vmax.f32 %v1209_v23, 0.0  ;;  %v952_v23 = vadd.f32 %v2904_v55, %v2873_v25  ;;  %v973_v25 = vadd.f32 %v2904_v55, %v2893_v45 }
 0x15b   :  { %1783 = vst.msk [vmem:[%s3295_s3 + $0x8] sm:$0xf] %vm1780_vm2, %v2063_v24  ;;  %v2064_v57 = vpack.c.bf16 %v1463_v27, %v1463_v27  ;;  %v976_v45 = vadd.f32 %v2904_v55, %v2897_v49 }
 0x15c   :  { %1781 = vst.msk [vmem:[%s3295_s3] sm:$0xf] %vm1780_vm2, %v2061_v1  ;;  %v2062_v35 = vpack.c.bf16 %v1461_v28, %v1461_v28  ;;  %v2928_v36 = vpop.f32.mrb[36].mxu0  ;;  %v2172_v39 = vpop.f32.mrb[36].mxu1 }
 0x15d   :  { %1784 = vst.msk [vmem:[%s3295_s3 + $0xc] sm:$0xf] %vm1780_vm2, %v2064_v57  ;;  %v1230_v40 = vadd.f32 %v2172_v39, %v941_v31  ;;  %v990_v43 = vpop.f32.mrb[37].mxu0  ;;  %v1221_v5 = vpop.f32.mrb[37].mxu1 }
 0x15e   :  { %1782 = vst.msk [vmem:[%s3295_s3 + $0x4] sm:$0xf] %vm1780_vm2, %v2062_v35  ;;  %v1222_v47 = vadd.f32 %v1221_v5, %v933_v32  ;;  %v2942_v48 = vpop.f32.mrb[38].mxu0  ;;  %v2173_v17 = vpop.f32.mrb[38].mxu1 }
 0x15f   :  { %v1466_v51 = vmax.f32 %v1230_v40, 0.0  ;;  %v1233_v52 = vadd.f32 %v2173_v17, %v944_v13  ;;  %v993_v56 = vpop.f32.mrb[39].mxu0  ;;  %v1224_v59 = vpop.f32.mrb[39].mxu1 }
 0x160   :  { %v1464_v63 = vmax.f32 %v1222_v47, 0.0  ;;  %v1225_v0 = vadd.f32 %v1224_v59, %v936_v44  ;;  %v965_v44 = vadd.f32 %v2904_v55, %v2885_v37  ;;  %v968_v37 = vadd.f32 %v2904_v55, %v2889_v41 }
 0x161   :  { %v2067_v3 = vpack.c.bf16 %v1466_v51, %v1466_v51  ;;  %v1467_v4 = vmax.f32 %v1233_v52, 0.0  ;;  %v989_v41 = vadd.f32 %v2904_v55, %v2928_v36  ;;  %v992_v36 = vadd.f32 %v2904_v55, %v2942_v48 }
 0x162   :  { %v2065_v7 = vpack.c.bf16 %v1464_v63, %v1464_v63  ;;  %v1465_v8 = vmax.f32 %v1225_v0, 0.0 }
 0x163   :  { %1787 = vst.msk [vmem:[%s3295_s3 + $0x18] sm:$0xf] %vm1780_vm2, %v2067_v3  ;;  %v2068_v11 = vpack.c.bf16 %v1467_v4, %v1467_v4 }
 0x164   :  { %1785 = vst.msk [vmem:[%s3295_s3 + $0x10] sm:$0xf] %vm1780_vm2, %v2065_v7  ;;  %v2066_v16 = vpack.c.bf16 %v1465_v8, %v1465_v8  ;;  %v2956_v61 = vpop.f32.mrb[40].mxu0  ;;  %v2176_v19 = vpop.f32.mrb[40].mxu1 }
 0x165   :  { %1788 = vst.msk [vmem:[%s3295_s3 + $0x1c] sm:$0xf] %vm1780_vm2, %v2068_v11  ;;  %v1246_v20 = vadd.f32 %v2176_v19, %v957_v9  ;;  %v998_v53 = vpop.f32.mrb[41].mxu0  ;;  %v1237_v21 = vpop.f32.mrb[41].mxu1 }
 0x166   :  { %1786 = vst.msk [vmem:[%s3295_s3 + $0x14] sm:$0xf] %vm1780_vm2, %v2066_v16  ;;  %v1238_v24 = vadd.f32 %v1237_v21, %v949_v15  ;;  %v2970_v27 = vpop.f32.mrb[42].mxu0  ;;  %v2177_v33 = vpop.f32.mrb[42].mxu1  ;;  %v981_v53 = vadd.f32 %v2904_v55, %v2909_v60  ;;  %v984_v60 = vadd.f32 %v2904_v55, %v2914_v12 }
 0x167   :  { %v1470_v1 = vmax.f32 %v1246_v20, 0.0  ;;  %v1249_v28 = vadd.f32 %v2177_v33, %v960_v29  ;;  %v1001_v31 = vpop.f32.mrb[43].mxu0  ;;  %v1240_v57 = vpop.f32.mrb[43].mxu1 }
 0x168   :  { %v1468_v32 = vmax.f32 %v1238_v24, 0.0  ;;  %v1241_v35 = vadd.f32 %v1240_v57, %v952_v23 }
 0x169   :  { %v2071_v39 = vpack.c.bf16 %v1470_v1, %v1470_v1  ;;  %v1471_v13 = vmax.f32 %v1249_v28, 0.0 }
 0x16a   :  { %v2069_v40 = vpack.c.bf16 %v1468_v32, %v1468_v32  ;;  %v1469_v43 = vmax.f32 %v1241_v35, 0.0 }
 0x16b   :  { %1791 = vst.msk [vmem:[%s3295_s3 + $0x28] sm:$0xf] %vm1780_vm2, %v2071_v39  ;;  %v2072_v5 = vpack.c.bf16 %v1471_v13, %v1471_v13 }
 0x16c   :  { %1789 = vst.msk [vmem:[%s3295_s3 + $0x20] sm:$0xf] %vm1780_vm2, %v2069_v40  ;;  %v2070_v47 = vpack.c.bf16 %v1469_v43, %v1469_v43  ;;  %v1004_v17 = vpop.f32.mrb[44].mxu0  ;;  %v2180_v51 = vpop.f32.mrb[44].mxu1 }
 0x16d   :  { %1792 = vst.msk [vmem:[%s3295_s3 + $0x2c] sm:$0xf] %vm1780_vm2, %v2072_v5  ;;  %v1262_v52 = vadd.f32 %v2180_v51, %v973_v25  ;;  %v1006_v56 = vpop.f32.mrb[45].mxu0  ;;  %v1253_v59 = vpop.f32.mrb[45].mxu1  ;;  %v1005_v12 = vadd.f32 %v2904_v55, %v1004_v17 }
 0x16e   :  { %1790 = vst.msk [vmem:[%s3295_s3 + $0x24] sm:$0xf] %vm1780_vm2, %v2070_v47  ;;  %v1254_v63 = vadd.f32 %v1253_v59, %v965_v44  ;;  %v1007_v0 = vpop.f32.mrb[46].mxu0  ;;  %v2181_v3 = vpop.f32.mrb[46].mxu1 }
 0x16f   :  { %v1474_v49 = vmax.f32 %v1262_v52, 0.0  ;;  %v1265_v4 = vadd.f32 %v2181_v3, %v976_v45  ;;  %v1009_v7 = vpop.f32.mrb[47].mxu0  ;;  %v1256_v8 = vpop.f32.mrb[47].mxu1  ;;  %v997_v45 = vadd.f32 %v2904_v55, %v2956_v61  ;;  %v1000_v61 = vadd.f32 %v2904_v55, %v2970_v27 }
 0x170   :  { %v1472_v9 = vmax.f32 %v1254_v63, 0.0  ;;  %v1257_v11 = vadd.f32 %v1256_v8, %v968_v37  ;;  %v1008_v37 = vadd.f32 %v2904_v55, %v1007_v0 }
 0x171   :  { %v2075_v15 = vpack.c.bf16 %v1474_v49, %v1474_v49  ;;  %v1475_v16 = vmax.f32 %v1265_v4, 0.0 }
 0x172   :  { %v2073_v19 = vpack.c.bf16 %v1472_v9, %v1472_v9  ;;  %v1473_v29 = vmax.f32 %v1257_v11, 0.0 }
 0x173   :  { %1795 = vst.msk [vmem:[%s3295_s3 + $0x38] sm:$0xf] %vm1780_vm2, %v2075_v15  ;;  %v2076_v20 = vpack.c.bf16 %v1475_v16, %v1475_v16 }
 0x174   :  { %1793 = vst.msk [vmem:[%s3295_s3 + $0x30] sm:$0xf] %vm1780_vm2, %v2073_v19  ;;  %v2074_v21 = vpack.c.bf16 %v1473_v29, %v1473_v29  ;;  %v1012_v23 = vpop.f32.mrb[48].mxu0  ;;  %v2184_v24 = vpop.f32.mrb[48].mxu1 }
 0x175   :  { %1796 = vst.msk [vmem:[%s3295_s3 + $0x3c] sm:$0xf] %vm1780_vm2, %v2076_v20  ;;  %v1278_v33 = vadd.f32 %v2184_v24, %v989_v41  ;;  %v1014_v1 = vpop.f32.mrb[49].mxu0  ;;  %v1269_v28 = vpop.f32.mrb[49].mxu1 }
 0x176   :  { %1794 = vst.msk [vmem:[%s3295_s3 + $0x34] sm:$0xf] %vm1780_vm2, %v2074_v21  ;;  %v1270_v31 = vadd.f32 %v1269_v28, %v981_v53  ;;  %v1015_v57 = vpop.f32.mrb[50].mxu0  ;;  %v2185_v32 = vpop.f32.mrb[50].mxu1  ;;  %v1013_v21 = vadd.f32 %v2904_v55, %v1012_v23 }
 0x177   :  { %v1478_v48 = vmax.f32 %v1278_v33, 0.0  ;;  %v1281_v35 = vadd.f32 %v2185_v32, %v992_v36  ;;  %v1017_v39 = vpop.f32.mrb[51].mxu0  ;;  %v1272_v13 = vpop.f32.mrb[51].mxu1  ;;  %v1016_v23 = vadd.f32 %v2904_v55, %v1015_v57 }
 0x178   :  { %v1476_v40 = vmax.f32 %v1270_v31, 0.0  ;;  %v1273_v43 = vadd.f32 %v1272_v13, %v984_v60 }
 0x179   :  { %v2079_v25 = vpack.c.bf16 %v1478_v48, %v1478_v48  ;;  %v1479_v5 = vmax.f32 %v1281_v35, 0.0 }
 0x17a   :  { %v2077_v44 = vpack.c.bf16 %v1476_v40, %v1476_v40  ;;  %v1477_v47 = vmax.f32 %v1273_v43, 0.0 }
 0x17b   :  { %1799 = vst.msk [vmem:[%s3295_s3 + $0x48] sm:$0xf] %vm1780_vm2, %v2079_v25  ;;  %v2080_v51 = vpack.c.bf16 %v1479_v5, %v1479_v5 }
 0x17c   :  { %1797 = vst.msk [vmem:[%s3295_s3 + $0x40] sm:$0xf] %vm1780_vm2, %v2077_v44  ;;  %v2078_v52 = vpack.c.bf16 %v1477_v47, %v1477_v47  ;;  %v1020_v56 = vpop.f32.mrb[52].mxu0  ;;  %v2188_v59 = vpop.f32.mrb[52].mxu1 }
 0x17d   :  { %1800 = vst.msk [vmem:[%s3295_s3 + $0x4c] sm:$0xf] %vm1780_vm2, %v2080_v51  ;;  %v1294_v17 = vadd.f32 %v2188_v59, %v1005_v12  ;;  %v1022_v63 = vpop.f32.mrb[53].mxu0  ;;  %v1285_v3 = vpop.f32.mrb[53].mxu1  ;;  %v1021_v27 = vadd.f32 %v2904_v55, %v1020_v56 }
 0x17e   :  { %1798 = vst.msk [vmem:[%s3295_s3 + $0x44] sm:$0xf] %vm1780_vm2, %v2078_v52  ;;  %v1286_v49 = vadd.f32 %v1285_v3, %v997_v45  ;;  %v1023_v4 = vpop.f32.mrb[54].mxu0  ;;  %v2189_v7 = vpop.f32.mrb[54].mxu1 }
 0x17f   :  { %v1482_v0 = vmax.f32 %v1294_v17, 0.0  ;;  %v1297_v8 = vadd.f32 %v2189_v7, %v1008_v37  ;;  %v1025_v9 = vpop.f32.mrb[55].mxu0  ;;  %v1288_v11 = vpop.f32.mrb[55].mxu1  ;;  %v1024_v1 = vadd.f32 %v2904_v55, %v1023_v4 }
 0x180   :  { %v1480_v15 = vmax.f32 %v1286_v49, 0.0  ;;  %v1289_v16 = vadd.f32 %v1288_v11, %v1000_v61 }
 0x181   :  { %v2083_v19 = vpack.c.bf16 %v1482_v0, %v1482_v0  ;;  %v1483_v29 = vmax.f32 %v1297_v8, 0.0 }
 0x182   :  { %v2081_v41 = vpack.c.bf16 %v1480_v15, %v1480_v15  ;;  %v1481_v20 = vmax.f32 %v1289_v16, 0.0 }
 0x183   :  { %1803 = vst.msk [vmem:[%s3295_s3 + $0x58] sm:$0xf] %vm1780_vm2, %v2083_v19  ;;  %v2084_v53 = vpack.c.bf16 %v1483_v29, %v1483_v29 }
 0x184   :  { %1801 = vst.msk [vmem:[%s3295_s3 + $0x50] sm:$0xf] %vm1780_vm2, %v2081_v41  ;;  %v2082_v24 = vpack.c.bf16 %v1481_v20, %v1481_v20  ;;  %v1028_v36 = vpop.f32.mrb[56].mxu0  ;;  %v2192_v33 = vpop.f32.mrb[56].mxu1 }
 0x185   :  { %1804 = vst.msk [vmem:[%s3295_s3 + $0x5c] sm:$0xf] %vm1780_vm2, %v2084_v53  ;;  %v1310_v28 = vadd.f32 %v2192_v33, %v1021_v27  ;;  %v1030_v60 = vpop.f32.mrb[57].mxu0  ;;  %v1301_v31 = vpop.f32.mrb[57].mxu1  ;;  %v1029_v45 = vadd.f32 %v2904_v55, %v1028_v36 }
 0x186   :  { %1802 = vst.msk [vmem:[%s3295_s3 + $0x54] sm:$0xf] %vm1780_vm2, %v2082_v24  ;;  %v1302_v32 = vadd.f32 %v1301_v31, %v1013_v21  ;;  %v1031_v48 = vpop.f32.mrb[58].mxu0  ;;  %v2193_v35 = vpop.f32.mrb[58].mxu1 }
 0x187   :  { %v1486_v39 = vmax.f32 %v1310_v28, 0.0  ;;  %v1313_v13 = vadd.f32 %v2193_v35, %v1024_v1  ;;  %v1033_v40 = vpop.f32.mrb[59].mxu0  ;;  %v1304_v43 = vpop.f32.mrb[59].mxu1  ;;  %v1032_v3 = vadd.f32 %v2904_v55, %v1031_v48 }
 0x188   :  { %v1484_v25 = vmax.f32 %v1302_v32, 0.0  ;;  %v1305_v5 = vadd.f32 %v1304_v43, %v1016_v23 }
 0x189   :  { %v2087_v44 = vpack.c.bf16 %v1486_v39, %v1486_v39  ;;  %v1487_v47 = vmax.f32 %v1313_v13, 0.0 }
 0x18a   :  { %v2085_v12 = vpack.c.bf16 %v1484_v25, %v1484_v25  ;;  %v1485_v51 = vmax.f32 %v1305_v5, 0.0 }
 0x18b   :  { %1807 = vst.msk [vmem:[%s3295_s3 + $0x68] sm:$0xf] %vm1780_vm2, %v2087_v44  ;;  %v2088_v57 = vpack.c.bf16 %v1487_v47, %v1487_v47 }
 0x18c   :  { %1805 = vst.msk [vmem:[%s3295_s3 + $0x60] sm:$0xf] %vm1780_vm2, %v2085_v12  ;;  %v2086_v52 = vpack.c.bf16 %v1485_v51, %v1485_v51  ;;  %v1036_v56 = vpop.f32.mrb[60].mxu0  ;;  %v2196_v59 = vpop.f32.mrb[60].mxu1 }
 0x18d   :  { %1808 = vst.msk [vmem:[%s3295_s3 + $0x6c] sm:$0xf] %vm1780_vm2, %v2088_v57  ;;  %v1037_v37 = vadd.f32 %v2904_v55, %v1036_v56  ;;  %v1038_v17 = vpop.f32.mrb[61].mxu0  ;;  %v1317_v63 = vpop.f32.mrb[61].mxu1 }
 0x18e   :  { %1806 = vst.msk [vmem:[%s3295_s3 + $0x64] sm:$0xf] %vm1780_vm2, %v2086_v52  ;;  %v1318_v61 = vadd.f32 %v1317_v63, %v1029_v45  ;;  %v1039_v49 = vpop.f32.mrb[62].mxu0  ;;  %v2197_v4 = vpop.f32.mrb[62].mxu1 }
 0x18f   :  { %v1326_v7 = vadd.f32 %v2196_v59, %v1037_v37  ;;  %v1040_v0 = vadd.f32 %v2904_v55, %v1039_v49  ;;  %v1041_v8 = vpop.f32.mrb[63].mxu0  ;;  %v1320_v9 = vpop.f32.mrb[63].mxu1 }
 0x190   :  { %v1488_v11 = vmax.f32 %v1318_v61, 0.0  ;;  %v1321_v15 = vadd.f32 %v1320_v9, %v1032_v3 }
 0x191   :  { %v1490_v16 = vmax.f32 %v1326_v7, 0.0  ;;  %v1329_v19 = vadd.f32 %v2197_v4, %v1040_v0 }
 0x192   :  { %v2089_v29 = vpack.c.bf16 %v1488_v11, %v1488_v11  ;;  %v1489_v41 = vmax.f32 %v1321_v15, 0.0 }
 0x193   :  { %v2091_v20 = vpack.c.bf16 %v1490_v16, %v1490_v16  ;;  %v1491_v27 = vmax.f32 %v1329_v19, 0.0 }
 0x194   :  { %1809 = vst.msk [vmem:[%s3295_s3 + $0x70] sm:$0xf] %vm1780_vm2, %v2089_v29  ;;  %v2090_v53 = vpack.c.bf16 %v1489_v41, %v1489_v41  ;;  %v1044_v21 = vpop.f32.mrb[64].mxu0  ;;  %v2200_v24 = vpop.f32.mrb[64].mxu1 }
 0x195   :  { %1811 = vst.msk [vmem:[%s3295_s3 + $0x78] sm:$0xf] %vm1780_vm2, %v2091_v20  ;;  %v2092_v36 = vpack.c.bf16 %v1491_v27, %v1491_v27  ;;  %v1045_v33 = vadd.f32 %v2904_v55, %v1044_v21  ;;  %v1046_v1 = vpop.f32.mrb[65].mxu0  ;;  %v1333_v28 = vpop.f32.mrb[65].mxu1 }
 0x196   :  { %1810 = vst.msk [vmem:[%s3295_s3 + $0x74] sm:$0xf] %vm1780_vm2, %v2090_v53  ;;  %v1047_v60 = vpop.f32.mrb[66].mxu0  ;;  %v2201_v31 = vpop.f32.mrb[66].mxu1 }
 0x197   :  { %1812 = vst.msk [vmem:[%s3295_s3 + $0x7c] sm:$0xf] %vm1780_vm2, %v2092_v36  ;;  %v1334_v23 = vadd.f32 %v1333_v28, %v1045_v33  ;;  %v1048_v32 = vadd.f32 %v2904_v55, %v1047_v60  ;;  %v1049_v48 = vpop.f32.mrb[67].mxu0  ;;  %v1336_v35 = vpop.f32.mrb[67].mxu1 }
 0x199   :  { %v1492_v39 = vmax.f32 %v1334_v23, 0.0  ;;  %v1337_v13 = vadd.f32 %v1336_v35, %v1048_v32 }
 0x19b   :  { %v2093_v40 = vpack.c.bf16 %v1492_v39, %v1492_v39  ;;  %v1493_v43 = vmax.f32 %v1337_v13, 0.0 }
 0x19c   :  { %v1052_v25 = vpop.f32.mrb[68].mxu0  ;;  %v2204_v5 = vpop.f32.mrb[68].mxu1 }
 0x19d   :  { %1813 = vst.msk [vmem:[%s3295_s3 + $0x80] sm:$0xf] %vm1780_vm2, %v2093_v40  ;;  %v2094_v44 = vpack.c.bf16 %v1493_v43, %v1493_v43  ;;  %v1053_v47 = vadd.f32 %v2904_v55, %v1052_v25  ;;  %v1054_v12 = vpop.f32.mrb[69].mxu0  ;;  %v1349_v51 = vpop.f32.mrb[69].mxu1  ;;  %v1117_v43 = vadd.f32 %v2904_v55, %v2849_v62 }
 0x19e   :  { %v1055_v57 = vpop.f32.mrb[70].mxu0  ;;  %v2205_v45 = vpop.f32.mrb[70].mxu1 }
 0x19f   :  { %1814 = vst.msk [vmem:[%s3295_s3 + $0x84] sm:$0xf] %vm1780_vm2, %v2094_v44  ;;  %v1342_v52 = vadd.f32 %v2200_v24, %v1053_v47  ;;  %v1056_v56 = vadd.f32 %v2904_v55, %v1055_v57  ;;  %v1057_v59 = vpop.f32.mrb[71].mxu0  ;;  %v1352_v37 = vpop.f32.mrb[71].mxu1  ;;  %v1109_v47 = vadd.f32 %v2904_v55, %v2843_v54 }
 0x1a0   :  { %v1112_v59 = vadd.f32 %v2904_v55, %v2847_v58 }
 0x1a1   :  { %v1494_v17 = vmax.f32 %v1342_v52, 0.0  ;;  %v1345_v63 = vadd.f32 %v2201_v31, %v1056_v56 }
 0x1a3   :  { %v2095_v3 = vpack.c.bf16 %v1494_v17, %v1494_v17  ;;  %v1495_v61 = vmax.f32 %v1345_v63, 0.0 }
 0x1a4   :  { %v1060_v49 = vpop.f32.mrb[72].mxu0  ;;  %v3110_v4 = vpop.f32.mrb[72].mxu1 }
 0x1a5   :  { %1815 = vst.msk [vmem:[%s3295_s3 + $0x88] sm:$0xf] %vm1780_vm2, %v2095_v3  ;;  %v2096_v7 = vpack.c.bf16 %v1495_v61, %v1495_v61  ;;  %v1061_v0 = vadd.f32 %v2904_v55, %v1060_v49  ;;  %v1062_v8 = vpop.f32.mrb[73].mxu0  ;;  %v1365_v9 = vpop.f32.mrb[73].mxu1 }
 0x1a6   :  { %v1063_v11 = vpop.f32.mrb[74].mxu0  ;;  %v3117_v15 = vpop.f32.mrb[74].mxu1 }
 0x1a7   :  { %1816 = vst.msk [vmem:[%s3295_s3 + $0x8c] sm:$0xf] %vm1780_vm2, %v2096_v7  ;;  %v1350_v16 = vadd.f32 %v1349_v51, %v1061_v0  ;;  %v1064_v19 = vadd.f32 %v2904_v55, %v1063_v11  ;;  %v1065_v29 = vpop.f32.mrb[75].mxu0  ;;  %v1368_v41 = vpop.f32.mrb[75].mxu1 }
 0x1a9   :  { %v1496_v20 = vmax.f32 %v1350_v16, 0.0  ;;  %v1353_v27 = vadd.f32 %v1352_v37, %v1064_v19 }
 0x1ab   :  { %v2097_v53 = vpack.c.bf16 %v1496_v20, %v1496_v20  ;;  %v1497_v21 = vmax.f32 %v1353_v27, 0.0  ;;  %v1133_v27 = vadd.f32 %v2904_v55, %v2863_v14  ;;  %v1136_v14 = vadd.f32 %v2904_v55, %v2867_v18 }
 0x1ac   :  { %v1068_v24 = vpop.f32.mrb[76].mxu0  ;;  %v3124_v36 = vpop.f32.mrb[76].mxu1 }
 0x1ad   :  { %1817 = vst.msk [vmem:[%s3295_s3 + $0x90] sm:$0xf] %vm1780_vm2, %v2097_v53  ;;  %v2098_v33 = vpack.c.bf16 %v1497_v21, %v1497_v21  ;;  %v1069_v1 = vadd.f32 %v2904_v55, %v1068_v24  ;;  %v1070_v28 = vpop.f32.mrb[77].mxu0  ;;  %v3131_v60 = vpop.f32.mrb[77].mxu1  ;;  %v1125_v24 = vadd.f32 %v2904_v55, %v2855_v6 }
 0x1ae   :  { %v1071_v31 = vpop.f32.mrb[78].mxu0  ;;  %v3133_v23 = vpop.f32.mrb[78].mxu1 }
 0x1af   :  { %1818 = vst.msk [vmem:[%s3295_s3 + $0x94] sm:$0xf] %vm1780_vm2, %v2098_v33  ;;  %v1358_v32 = vadd.f32 %v2204_v5, %v1069_v1  ;;  %v1072_v48 = vadd.f32 %v2904_v55, %v1071_v31  ;;  %v1073_v35 = vpop.f32.mrb[79].mxu0  ;;  %v3140_v39 = vpop.f32.mrb[79].mxu1  ;;  %v1120_v5 = vadd.f32 %v2904_v55, %v2851_v2 }
 0x1b0   :  { %v1128_v35 = vadd.f32 %v2904_v55, %v2859_v10 }
 0x1b1   :  { %v1498_v13 = vmax.f32 %v1358_v32, 0.0  ;;  %v1361_v40 = vadd.f32 %v2205_v45, %v1072_v48 }
 0x1b3   :  { %v2099_v25 = vpack.c.bf16 %v1498_v13, %v1498_v13  ;;  %v1499_v44 = vmax.f32 %v1361_v40, 0.0 }
 0x1b4   :  { %v1076_v12 = vpop.f32.mrb[80].mxu0  ;;  %v2216_v51 = vpop.f32.mrb[80].mxu1 }
 0x1b5   :  { %1819 = vst.msk [vmem:[%s3295_s3 + $0x98] sm:$0xf] %vm1780_vm2, %v2099_v25  ;;  %v2100_v57 = vpack.c.bf16 %v1499_v44, %v1499_v44  ;;  %v1077_v45 = vadd.f32 %v2904_v55, %v1076_v12  ;;  %v1406_v52 = vadd.f32 %v2216_v51, %v1117_v43  ;;  %v1078_v62 = vpop.f32.mrb[81].mxu0  ;;  %v1397_v56 = vpop.f32.mrb[81].mxu1 }
 0x1b6   :  { %v1398_v54 = vadd.f32 %v1397_v56, %v1109_v47  ;;  %v1079_v37 = vpop.f32.mrb[82].mxu0  ;;  %v2217_v17 = vpop.f32.mrb[82].mxu1 }
 0x1b7   :  { %1820 = vst.msk [vmem:[%s3295_s3 + $0x9c] sm:$0xf] %vm1780_vm2, %v2100_v57  ;;  %v1366_v2 = vadd.f32 %v1365_v9, %v1077_v45  ;;  %v1510_v63 = vmax.f32 %v1406_v52, 0.0  ;;  %v1080_v3 = vadd.f32 %v2904_v55, %v1079_v37  ;;  %v1409_v61 = vadd.f32 %v2217_v17, %v1120_v5  ;;  %v1081_v49 = vpop.f32.mrb[83].mxu0  ;;  %v1400_v7 = vpop.f32.mrb[83].mxu1 }
 0x1b8   :  { %v1508_v0 = vmax.f32 %v1398_v54, 0.0  ;;  %v1401_v8 = vadd.f32 %v1400_v7, %v1112_v59  ;;  %v1149_v54 = vadd.f32 %v2904_v55, %v2879_v30  ;;  %v1152_v30 = vadd.f32 %v2904_v55, %v2883_v34 }
 0x1b9   :  { %v1500_v11 = vmax.f32 %v1366_v2, 0.0  ;;  %v2111_v16 = vpack.c.bf16 %v1510_v63, %v1510_v63  ;;  %v1369_v58 = vadd.f32 %v1368_v41, %v1080_v3  ;;  %v1511_v19 = vmax.f32 %v1409_v61, 0.0 }
 0x1ba   :  { %v2109_v29 = vpack.c.bf16 %v1508_v0, %v1508_v0  ;;  %v1509_v20 = vmax.f32 %v1401_v8, 0.0  ;;  %v1141_v2 = vadd.f32 %v2904_v55, %v2871_v22  ;;  %v1144_v8 = vadd.f32 %v2904_v55, %v2875_v26 }
 0x1bb   :  { %v2101_v53 = vpack.c.bf16 %v1500_v11, %v1500_v11  ;;  %1831 = vst.msk [vmem:[%s3295_s3 + $0xc8] sm:$0xf] %vm1780_vm2, %v2111_v16  ;;  %v1501_v9 = vmax.f32 %v1369_v58, 0.0  ;;  %v2112_v21 = vpack.c.bf16 %v1511_v19, %v1511_v19 }
 0x1bc   :  { %1829 = vst.msk [vmem:[%s3295_s3 + $0xc0] sm:$0xf] %vm1780_vm2, %v2109_v29  ;;  %v2110_v41 = vpack.c.bf16 %v1509_v20, %v1509_v20  ;;  %v1084_v33 = vpop.f32.mrb[84].mxu0  ;;  %v2220_v1 = vpop.f32.mrb[84].mxu1 }
 0x1bd   :  { %1821 = vst.msk [vmem:[%s3295_s3 + $0xa0] sm:$0xf] %vm1780_vm2, %v2101_v53  ;;  %v2102_v28 = vpack.c.bf16 %v1501_v9, %v1501_v9  ;;  %1832 = vst.msk [vmem:[%s3295_s3 + $0xcc] sm:$0xf] %vm1780_vm2, %v2112_v21  ;;  %v1085_v6 = vadd.f32 %v2904_v55, %v1084_v33  ;;  %v1422_v31 = vadd.f32 %v2220_v1, %v1133_v27  ;;  %v1086_v32 = vpop.f32.mrb[85].mxu0  ;;  %v1413_v48 = vpop.f32.mrb[85].mxu1 }
 0x1be   :  { %1830 = vst.msk [vmem:[%s3295_s3 + $0xc4] sm:$0xf] %vm1780_vm2, %v2110_v41  ;;  %v1414_v18 = vadd.f32 %v1413_v48, %v1125_v24  ;;  %v1087_v13 = vpop.f32.mrb[86].mxu0  ;;  %v2221_v40 = vpop.f32.mrb[86].mxu1  ;;  %v1157_v32 = vadd.f32 %v2904_v55, %v2887_v38 }
 0x1bf   :  { %1822 = vst.msk [vmem:[%s3295_s3 + $0xa4] sm:$0xf] %vm1780_vm2, %v2102_v28  ;;  %v1374_v43 = vadd.f32 %v3110_v4, %v1085_v6  ;;  %v1514_v25 = vmax.f32 %v1422_v31, 0.0  ;;  %v1088_v44 = vadd.f32 %v2904_v55, %v1087_v13  ;;  %v1425_v47 = vadd.f32 %v2221_v40, %v1136_v14  ;;  %v1089_v10 = vpop.f32.mrb[87].mxu0  ;;  %v1416_v12 = vpop.f32.mrb[87].mxu1 }
 0x1c0   :  { %v1512_v51 = vmax.f32 %v1414_v18, 0.0  ;;  %v1417_v5 = vadd.f32 %v1416_v12, %v1128_v35  ;;  %v1165_v28 = vadd.f32 %v2904_v55, %v2895_v46  ;;  %v1168_v46 = vadd.f32 %v2904_v55, %v2899_v50 }
 0x1c1   :  { %v1502_v57 = vmax.f32 %v1374_v43, 0.0  ;;  %v2115_v45 = vpack.c.bf16 %v1514_v25, %v1514_v25  ;;  %v1377_v52 = vadd.f32 %v3117_v15, %v1088_v44  ;;  %v1515_v62 = vmax.f32 %v1425_v47, 0.0 }
 0x1c2   :  { %v2113_v56 = vpack.c.bf16 %v1512_v51, %v1512_v51  ;;  %v1513_v59 = vmax.f32 %v1417_v5, 0.0  ;;  %v1160_v25 = vadd.f32 %v2904_v55, %v2891_v42 }
 0x1c3   :  { %v2103_v37 = vpack.c.bf16 %v1502_v57, %v1502_v57  ;;  %1835 = vst.msk [vmem:[%s3295_s3 + $0xd8] sm:$0xf] %vm1780_vm2, %v2115_v45  ;;  %v1503_v4 = vmax.f32 %v1377_v52, 0.0  ;;  %v2116_v17 = vpack.c.bf16 %v1515_v62, %v1515_v62 }
 0x1c4   :  { %1833 = vst.msk [vmem:[%s3295_s3 + $0xd0] sm:$0xf] %vm1780_vm2, %v2113_v56  ;;  %v2114_v15 = vpack.c.bf16 %v1513_v59, %v1513_v59  ;;  %v1092_v63 = vpop.f32.mrb[88].mxu0  ;;  %v2224_v3 = vpop.f32.mrb[88].mxu1 }
 0x1c5   :  { %1823 = vst.msk [vmem:[%s3295_s3 + $0xa8] sm:$0xf] %vm1780_vm2, %v2103_v37  ;;  %v2104_v61 = vpack.c.bf16 %v1503_v4, %v1503_v4  ;;  %1836 = vst.msk [vmem:[%s3295_s3 + $0xdc] sm:$0xf] %vm1780_vm2, %v2116_v17  ;;  %v1093_v22 = vadd.f32 %v2904_v55, %v1092_v63  ;;  %v1438_v49 = vadd.f32 %v2224_v3, %v1149_v54  ;;  %v1094_v7 = vpop.f32.mrb[89].mxu0  ;;  %v1429_v0 = vpop.f32.mrb[89].mxu1 }
 0x1c6   :  { %1834 = vst.msk [vmem:[%s3295_s3 + $0xd4] sm:$0xf] %vm1780_vm2, %v2114_v15  ;;  %v1430_v34 = vadd.f32 %v1429_v0, %v1141_v2  ;;  %v1095_v11 = vpop.f32.mrb[90].mxu0  ;;  %v2225_v16 = vpop.f32.mrb[90].mxu1 }
 0x1c7   :  { %1824 = vst.msk [vmem:[%s3295_s3 + $0xac] sm:$0xf] %vm1780_vm2, %v2104_v61  ;;  %v1382_v58 = vadd.f32 %v3131_v60, %v1093_v22  ;;  %v1518_v19 = vmax.f32 %v1438_v49, 0.0  ;;  %v1096_v29 = vadd.f32 %v2904_v55, %v1095_v11  ;;  %v1441_v20 = vadd.f32 %v2225_v16, %v1152_v30  ;;  %v1097_v26 = vpop.f32.mrb[91].mxu0  ;;  %v1432_v27 = vpop.f32.mrb[91].mxu1 }
 0x1c8   :  { %v1516_v53 = vmax.f32 %v1430_v34, 0.0  ;;  %v1433_v9 = vadd.f32 %v1432_v27, %v1144_v8 }
 0x1c9   :  { %v1504_v21 = vmax.f32 %v1382_v58, 0.0  ;;  %v2119_v24 = vpack.c.bf16 %v1518_v19, %v1518_v19  ;;  %v1385_v41 = vadd.f32 %v3140_v39, %v1096_v29  ;;  %v1519_v33 = vmax.f32 %v1441_v20, 0.0 }
 0x1ca   :  { %v2117_v1 = vpack.c.bf16 %v1516_v53, %v1516_v53  ;;  %v1517_v14 = vmax.f32 %v1433_v9, 0.0 }
 0x1cb   :  { %v2105_v6 = vpack.c.bf16 %v1504_v21, %v1504_v21  ;;  %1839 = vst.msk [vmem:[%s3295_s3 + $0xe8] sm:$0xf] %vm1780_vm2, %v2119_v24  ;;  %v1505_v60 = vmax.f32 %v1385_v41, 0.0  ;;  %v2120_v31 = vpack.c.bf16 %v1519_v33, %v1519_v33 }
 0x1cc   :  { %1837 = vst.msk [vmem:[%s3295_s3 + $0xe0] sm:$0xf] %vm1780_vm2, %v2117_v1  ;;  %v2118_v39 = vpack.c.bf16 %v1517_v14, %v1517_v14  ;;  %v1100_v48 = vpop.f32.mrb[92].mxu0  ;;  %v2228_v35 = vpop.f32.mrb[92].mxu1 }
 0x1cd   :  { %1825 = vst.msk [vmem:[%s3295_s3 + $0xb0] sm:$0xf] %vm1780_vm2, %v2105_v6  ;;  %v2106_v18 = vpack.c.bf16 %v1505_v60, %v1505_v60  ;;  %1840 = vst.msk [vmem:[%s3295_s3 + $0xec] sm:$0xf] %vm1780_vm2, %v2120_v31  ;;  %v1101_v38 = vadd.f32 %v2904_v55, %v1100_v48  ;;  %v1454_v13 = vadd.f32 %v2228_v35, %v1165_v28  ;;  %v1102_v40 = vpop.f32.mrb[93].mxu0  ;;  %v1445_v43 = vpop.f32.mrb[93].mxu1 }
 0x1ce   :  { %1838 = vst.msk [vmem:[%s3295_s3 + $0xe4] sm:$0xf] %vm1780_vm2, %v2118_v39  ;;  %v1446_v50 = vadd.f32 %v1445_v43, %v1157_v32  ;;  %v1103_v44 = vpop.f32.mrb[94].mxu0  ;;  %v2229_v47 = vpop.f32.mrb[94].mxu1 }
 0x1cf   :  { %1826 = vst.msk [vmem:[%s3295_s3 + $0xb4] sm:$0xf] %vm1780_vm2, %v2106_v18  ;;  %v1390_v10 = vadd.f32 %v3124_v36, %v1101_v38  ;;  %v1522_v12 = vmax.f32 %v1454_v13, 0.0  ;;  %v1104_v51 = vadd.f32 %v2904_v55, %v1103_v44  ;;  %v1457_v5 = vadd.f32 %v2229_v47, %v1168_v46  ;;  %v1105_v42 = vpop.f32.mrb[95].mxu0  ;;  %v1448_v57 = vpop.f32.mrb[95].mxu1 }
 0x1d0   :  { %v1520_v45 = vmax.f32 %v1446_v50, 0.0  ;;  %v1449_v52 = vadd.f32 %v1448_v57, %v1160_v25 }
 0x1d1   :  { %v1506_v62 = vmax.f32 %v1390_v10, 0.0  ;;  %v2123_v56 = vpack.c.bf16 %v1522_v12, %v1522_v12  ;;  %v1393_v59 = vadd.f32 %v3133_v23, %v1104_v51  ;;  %v1523_v54 = vmax.f32 %v1457_v5, 0.0 }
 0x1d2   :  { %v2121_v37 = vpack.c.bf16 %v1520_v45, %v1520_v45  ;;  %v1521_v4 = vmax.f32 %v1449_v52, 0.0 }
 0x1d3   :  { %v2107_v17 = vpack.c.bf16 %v1506_v62, %v1506_v62  ;;  %1843 = vst.msk [vmem:[%s3295_s3 + $0xf8] sm:$0xf] %vm1780_vm2, %v2123_v56  ;;  %v1507_v36 = vmax.f32 %v1393_v59, 0.0  ;;  %v2124_v55 = vpack.c.bf16 %v1523_v54, %v1523_v54 }
 0x1d4   :  { %1841 = vst.msk [vmem:[%s3295_s3 + $0xf0] sm:$0xf] %vm1780_vm2, %v2121_v37  ;;  %v2122_v2 = vpack.c.bf16 %v1521_v4, %v1521_v4 }
 0x1d5   :  { %1827 = vst.msk [vmem:[%s3295_s3 + $0xb8] sm:$0xf] %vm1780_vm2, %v2107_v17  ;;  %v2108_v23 = vpack.c.bf16 %v1507_v36, %v1507_v36  ;;  %1844 = vst.msk [vmem:[%s3295_s3 + $0xfc] sm:$0xf] %vm1780_vm2, %v2124_v55 }
 0x1d6   :  { %1842 = vst.msk [vmem:[%s3295_s3 + $0xf4] sm:$0xf] %vm1780_vm2, %v2122_v2 }
 0x1d7   :  { %1828 = vst.msk [vmem:[%s3295_s3 + $0xbc] sm:$0xf] %vm1780_vm2, %v2108_v23 }

// kernel: dqn_forward.8
= control target key start
LH: loop header
LB: loop body
LE: loop exit
PB: predicated region body
PF: predicated region fallthrough
CT: control target
= control target key end

     0   :  { %vm384_vm0 = vcmask 719872   ;;  %vm391_vm1 = vcmask 1043456   ;;  %vm546_vm2 = vcmask 261120   ;;  %s920_s1 = inlined_call_operand.vmem [shape: bf16[600,32], index: 1, kind: input, shape index: {}]   ;;  %s921_s0 = inlined_call_operand.vmem [shape: bf16[32,600], index: 0, kind: input, shape index: {}]   ;;  %s922_s2 = inlined_call_operand.vmem [shape: f32[1,32], index: 2, kind: input, shape index: {}]   ;;  %s923_s3 = inlined_call_operand.vmem [shape: f32[32,32], index: 3, kind: output, shape index: {}]  }
   0x1   :  { %v687_v0 = vld [vmem:[%s920_s1 + $0x40] sm:$0xff]   ;;  %v691_v4 = vld [vmem:[%s920_s1 + $0x48] sm:$0xff]   ;;  %v695_v8 = vld [vmem:[%s920_s1 + $0x50] sm:$0xff]  }
   0x2   :  { %v688_v1 = vld [vmem:[%s920_s1] sm:$0xff]   ;;  %606 = vmatprep.subr.bf16.mxu0 %v687_v0  ;;  %v692_v5 = vld [vmem:[%s920_s1 + $0x8] sm:$0xff]   ;;  %v696_v9 = vld [vmem:[%s920_s1 + $0x10] sm:$0xff]  }
   0x3   :  { %v689_v2 = vld [vmem:[%s920_s1 + $0xc0] sm:$0xff]   ;;  %607 = vmatpush3.bf16.msra.mxu0 %v688_v1  ;;  %v693_v6 = vld [vmem:[%s920_s1 + $0xc8] sm:$0xff]   ;;  %v697_v10 = vld [vmem:[%s920_s1 + $0xd0] sm:$0xff]  }
   0x4   :  { %v690_v3 = vld [vmem:[%s920_s1 + $0x80] sm:$0xff]   ;;  %634 = vmatprep.subr.bf16.mxu1 %v689_v2  ;;  %608 = vmatprep.subr.bf16.mxu0 %v691_v4  ;;  %v694_v7 = vld [vmem:[%s920_s1 + $0x88] sm:$0xff]   ;;  %v698_v11 = vld [vmem:[%s920_s1 + $0x90] sm:$0xff]  }
   0x5   :  { %635 = vmatpush3.bf16.msra.mxu1 %v690_v3  ;;  %v699_v12 = vld [vmem:[%s920_s1 + $0x58] sm:$0xff]   ;;  %v703_v16 = vld [vmem:[%s920_s1 + $0x60] sm:$0xff]   ;;  %v707_v20 = vld [vmem:[%s920_s1 + $0x68] sm:$0xff]  }
   0x6   :  { %636 = vmatprep.subr.bf16.mxu1 %v693_v6  ;;  %v700_v13 = vld [vmem:[%s920_s1 + $0x18] sm:$0xff]   ;;  %v704_v17 = vld [vmem:[%s920_s1 + $0x20] sm:$0xff]   ;;  %v708_v21 = vld [vmem:[%s920_s1 + $0x28] sm:$0xff]  }
   0x7   :  { %609 = vmatpush3.bf16.msra.mxu0 %v692_v5  ;;  %v701_v14 = vld [vmem:[%s920_s1 + $0xd8] sm:$0xff]   ;;  %v705_v18 = vld [vmem:[%s920_s1 + $0xe0] sm:$0xff]   ;;  %v709_v22 = vld [vmem:[%s920_s1 + $0xe8] sm:$0xff]  }
   0x8   :  { %610 = vmatprep.subr.bf16.mxu0 %v695_v8  ;;  %v702_v15 = vld [vmem:[%s920_s1 + $0x98] sm:$0xff]   ;;  %v706_v19 = vld [vmem:[%s920_s1 + $0xa0] sm:$0xff]   ;;  %v710_v23 = vld [vmem:[%s920_s1 + $0xa8] sm:$0xff]  }
   0x9   :  { %637 = vmatpush3.bf16.msra.mxu1 %v694_v7  ;;  %v711_v24 = vld [vmem:[%s920_s1 + $0x70] sm:$0xff]   ;;  %v715_v28 = vld [vmem:[%s920_s1 + $0x78] sm:$0xff]   ;;  %v722_v34 = vld [vmem:[%s920_s1 + $0x100] sm:$0xff]  }
   0xa   :  { %638 = vmatprep.subr.bf16.mxu1 %v697_v10  ;;  %v712_v25 = vld [vmem:[%s920_s1 + $0x30] sm:$0xff]   ;;  %v716_v29 = vld [vmem:[%s920_s1 + $0x38] sm:$0xff]   ;;  %v725_v36 = vld [vmem:[%s921_s0 + $0xc] ss:$20 sps:$4 sm:$0xff]  }
   0xb   :  { %611 = vmatpush3.bf16.msra.mxu0 %v696_v9  ;;  %v713_v26 = vld [vmem:[%s920_s1 + $0xf0] sm:$0xff]   ;;  %v717_v30 = vld [vmem:[%s920_s1 + $0xf8] sm:$0xff]   ;;  %v726_v37 = vld [vmem:[%s920_s1 + $0x108] sm:$0xff]   ;;  %476 = vmatprep.mubr.bf16.mxu1 %v725_v36 }
   0xc   :  { %612 = vmatprep.subr.bf16.mxu0 %v699_v12  ;;  %v714_v27 = vld [vmem:[%s920_s1 + $0xb0] sm:$0xff]   ;;  %v720_v32 = vld [vmem:[%s921_s0 + $0x4] ss:$20 sps:$4 sm:$0xff]   ;;  %v723_v35 = vld [vmem:[%s921_s0 + $0x8] ss:$20 sps:$4 sm:$0xff]  }
   0xd   :  { %639 = vmatpush3.bf16.msra.mxu1 %v698_v11  ;;  %v718_v31 = vld [vmem:[%s921_s0] ss:$20 sps:$4 sm:$0xff]   ;;  %v721_v33 = vld [vmem:[%s920_s1 + $0xb8] sm:$0xff]   ;;  %427 = vmatprep.mubr.bf16.mxu0 %v720_v32  ;;  %v734_v43 = vld [vmem:[%s921_s0 + $0x30] ss:$20 sps:$4 sm:$0xff]  }
   0xe   :  { %640 = vmatprep.subr.bf16.mxu1 %v701_v14  ;;  %v727_v38 = vld [vmem:[%s920_s1 + $0x110] sm:$0xff]   ;;  %v728_v39 = vld [vmem:[%s921_s0 + $0x2c] ss:$20 sps:$4 sm:$0xff]   ;;  %v731_v40 = vld [vmem:[%s921_s0 + $0x28] ss:$20 sps:$4 sm:$0xff]  }
   0xf   :  { %613 = vmatpush3.bf16.msra.mxu0 %v700_v13  ;;  %v732_v41 = vld [vmem:[%s921_s0 + $0x34] ss:$20 sps:$4 sm:$0xff]   ;;  %v730_v42 = vld [vmem:[%s920_s1 + $0x118] sm:$0xff]   ;;  %v737_v44 = vld [vmem:[%s921_s0 + $0x10] ss:$20 sps:$4 sm:$0xff]  }
  0x10   :  { %614 = vmatprep.subr.bf16.mxu0 %v703_v16  ;;  %v735_v45 = vld [vmem:[%s920_s1 + $0x120] sm:$0xff]   ;;  %v736_v46 = vld [vmem:[%s920_s1 + $0x128] ss:$0 sps:$4 sm:$0xff]   ;;  %v738_v48 = vld [vmem:[%s921_s0 + $0x38] ss:$20 sps:$4 sm:$0xff]  }
  0x11   :  { %641 = vmatpush3.bf16.msra.mxu1 %v702_v15  ;;  %v393_v47 = vsel %vm391_vm1, %v736_v46, 0  ;;  %v555_v50 = vld [vmem:[%s922_s2] ss:$0 sm:$0xff] }
  0x12   :  { %642 = vmatprep.subr.bf16.mxu1 %v705_v18 }
  0x13   :  { %615 = vmatpush3.bf16.msra.mxu0 %v704_v17 }
  0x14   :  { %616 = vmatprep.subr.bf16.mxu0 %v707_v20 }
  0x15   :  { %643 = vmatpush3.bf16.msra.mxu1 %v706_v19 }
  0x16   :  { %644 = vmatprep.subr.bf16.mxu1 %v709_v22 }
  0x17   :  { %617 = vmatpush3.bf16.msra.mxu0 %v708_v21 }
  0x18   :  { %618 = vmatprep.subr.bf16.mxu0 %v711_v24 }
  0x19   :  { %645 = vmatpush3.bf16.msra.mxu1 %v710_v23 }
  0x1a   :  { %646 = vmatprep.subr.bf16.mxu1 %v713_v26 }
  0x1b   :  { %619 = vmatpush3.bf16.msra.mxu0 %v712_v25 }
  0x1c   :  { %620 = vmatprep.subr.bf16.mxu0 %v715_v28 }
  0x1d   :  { %647 = vmatpush3.bf16.msra.mxu1 %v714_v27 }
  0x1e   :  { %648 = vmatprep.subr.bf16.mxu1 %v717_v30 }
  0x1f   :  { %621 = vmatpush3.bf16.msra.mxu0 %v716_v29 }
  0x20   :  { %670 = vmatprep.subr.bf16.mxu0 %v722_v34 }
  0x21   :  { %649 = vmatpush3.bf16.msra.mxu1 %v721_v33 }
  0x22   :  { %428 = vmatmul.mubr.bf16.vlgmr.msra.gmra.mrb[0].mxu0 %v718_v31 }
  0x23   :  { %671 = vmatpush3.bf16.msra.mxu0 %v722_v34  ;;  %435 = vmatprep.mubr.bf16.mxu0 %v728_v39 }
  0x24   :  { %477 = vmatmul.mubr.bf16.vlgmr.msra.gmra.mrb[0].mxu1 %v723_v35  ;;  %672 = vmatprep.subr.bf16.mxu0 %v726_v37 }
  0x25   :  { %484 = vmatprep.mubr.bf16.mxu1 %v732_v41 }
  0x27   :  { %673 = vmatpush3.bf16.msra.mxu0 %v726_v37 }
  0x28   :  { %674 = vmatprep.subr.bf16.mxu0 %v727_v38 }
  0x2a   :  { %436 = vmatmul.mubr.bf16.gmra.mrb[4].mxu0 %v731_v40 }
  0x2b   :  { %675 = vmatpush3.bf16.msra.mxu0 %v727_v38  ;;  %682 = vmatprep.mubr.msk.bf16.mxu0 %vm384_vm0, %v737_v44 }
  0x2c   :  { %676 = vmatprep.subr.bf16.mxu0 %v730_v42  ;;  %485 = vmatmul.mubr.bf16.gmra.mrb[4].mxu1 %v734_v43 }
  0x2f   :  { %677 = vmatpush3.bf16.msra.mxu0 %v730_v42 }
  0x30   :  { %678 = vmatprep.subr.bf16.mxu0 %v735_v45 }
  0x33   :  { %679 = vmatpush3.bf16.msra.mxu0 %v735_v45 }
  0x34   :  { %686 = vmatprep.subr.msk.bf16.mxu0 %vm391_vm1, %v736_v46 }
  0x37   :  { %681 = vmatpush3.bf16.msra.mxu0 %v393_v47 }
  0x3a   :  { %683 = vmatmul.mubr.msk.bf16.vlgmr.msra.gmra.mrb[8].mxu0 %vm384_vm0, %v738_v48 }
  0xf5   :  { %v622_v49 = vpop.f32.mrb[0].mxu0 }
  0xf6   :  { %v623_v51 = vpop.f32.mrb[1].mxu0 }
  0xf7   :  { %v624_v52 = vadd.f32 %v623_v51, %v622_v49  ;;  %v625_v53 = vpop.f32.mrb[2].mxu0  ;;  %v650_v54 = vpop.f32.mrb[0].mxu1 }
  0xf8   :  { %v626_v55 = vpop.f32.mrb[3].mxu0  ;;  %v651_v58 = vpop.f32.mrb[1].mxu1 }
  0xf9   :  { %v430_v56 = vadd.f32 %v624_v52, %v555_v50  ;;  %v627_v57 = vadd.f32 %v626_v55, %v625_v53  ;;  %v652_v59 = vadd.f32 %v651_v58, %v650_v54  ;;  %v653_v60 = vpop.f32.mrb[2].mxu1 }
  0xfa   :  { %v654_v62 = vpop.f32.mrb[3].mxu1 }
  0xfb   :  { %v433_v61 = vadd.f32 %v627_v57, %v555_v50  ;;  %v655_v63 = vadd.f32 %v654_v62, %v653_v60  ;;  %v479_v0 = vadd.f32 %v652_v59, %v430_v56 }
  0xfd   :  { %v628_v1 = vpop.f32.mrb[4].mxu0  ;;  %v482_v3 = vadd.f32 %v655_v63, %v433_v61 }
  0xfe   :  { %v629_v2 = vpop.f32.mrb[5].mxu0 }
  0xff   :  { %v630_v4 = vadd.f32 %v629_v2, %v628_v1  ;;  %v631_v5 = vpop.f32.mrb[6].mxu0  ;;  %v656_v6 = vpop.f32.mrb[4].mxu1 }
 0x100   :  { %v632_v7 = vpop.f32.mrb[7].mxu0  ;;  %v657_v10 = vpop.f32.mrb[5].mxu1 }
 0x101   :  { %v438_v8 = vadd.f32 %v630_v4, %v555_v50  ;;  %v633_v9 = vadd.f32 %v632_v7, %v631_v5  ;;  %v658_v11 = vadd.f32 %v657_v10, %v656_v6  ;;  %v659_v12 = vpop.f32.mrb[6].mxu1 }
 0x102   :  { %v660_v14 = vpop.f32.mrb[7].mxu1 }
 0x103   :  { %v441_v13 = vadd.f32 %v633_v9, %v555_v50  ;;  %v661_v15 = vadd.f32 %v660_v14, %v659_v12  ;;  %v487_v16 = vadd.f32 %v658_v11, %v438_v8 }
 0x105   :  { %v490_v17 = vadd.f32 %v661_v15, %v441_v13 }
 0x10d   :  { %v684_v18 = vpop.f32.mrb[8].mxu0 }
 0x10e   :  { %v536_v19 = vadd.f32 %v684_v18, %v487_v16  ;;  %v527_v20 = vpop.f32.mrb[9].mxu0 }
 0x10f   :  { %v528_v21 = vadd.f32 %v527_v20, %v479_v0  ;;  %v685_v22 = vpop.f32.mrb[10].mxu0 }
 0x110   :  { %v544_v23 = vmax.f32 %v536_v19, 0.0  ;;  %v539_v24 = vadd.f32 %v685_v22, %v490_v17  ;;  %v530_v25 = vpop.f32.mrb[11].mxu0 }
 0x111   :  { %v542_v26 = vmax.f32 %v528_v21, 0.0  ;;  %v531_v27 = vadd.f32 %v530_v25, %v482_v3 }
 0x112   :  { %549 = vst.msk [vmem:[%s923_s3 + $0x10] sm:$0xff] %vm546_vm2, %v544_v23  ;;  %v545_v28 = vmax.f32 %v539_v24, 0.0 }
 0x113   :  { %547 = vst.msk [vmem:[%s923_s3] sm:$0xff] %vm546_vm2, %v542_v26  ;;  %v543_v29 = vmax.f32 %v531_v27, 0.0 }
 0x114   :  { %550 = vst.msk [vmem:[%s923_s3 + $0x18] sm:$0xff] %vm546_vm2, %v545_v28 }
 0x115   :  { %548 = vst.msk [vmem:[%s923_s3 + $0x8] sm:$0xff] %vm546_vm2, %v543_v29 }

// kernel: squeeze.5
= control target key start
LH: loop header
LB: loop body
LE: loop exit
PB: predicated region body
PF: predicated region fallthrough
CT: control target
= control target key end

     0   :  { %s7_s6 = smov 3  ;;  %s21_s9 = smov 3  ;;  %vm4_vm0 = vcmask 31744   ;;  %vm11_vm1 = vcmask 326944   ;;  %vm18_vm2 = vcmask 294144   ;;  %vm25_vm3 = vcmask 261344   ;;  %s145_s0 = inlined_call_operand.vmem [shape: f32[2,10,4,1], index: 0, kind: input, shape index: {}]   ;;  %s146_s1 = inlined_call_operand.vmem [shape: f32[2,40], index: 1, kind: output, shape index: {}]  }
   0x1   :  { %v75_v0 = vld [vmem:[%s145_s0 + $0x9] ss:$16 sm:%s7_s6]   ;;  %s93_s10 = smov 36   ;;  %v77_v1 = vld [vmem:[%s145_s0 + $0x7] ss:$16 sm:%s21_s9]   ;;  %s14_s13 = smov 3 }
   0x2   :  { %9 = vrot.lane.b32.xlu0 %v75_v0, %s93_s10  ;;  %s94_s14 = smov 28   ;;  %v76_v2 = vld [vmem:[%s145_s0 + $0x8] ss:$16 sm:%s14_s13]   ;;  %s28_s17 = smov 3  ;;  %vm32_vm4 = vcmask 228544   ;;  %vm39_vm5 = vcmask 195744  }
   0x3   :  { %23 = vrot.lane.b32.xlu1 %v77_v1, %s94_s14  ;;  %v78_v3 = vld [vmem:[%s145_s0 + $0x6] ss:$16 sm:%s28_s17]   ;;  %s35_s20 = smov 3  ;;  %s42_s21 = smov 3  ;;  %vm46_vm6 = vcmask 162944   ;;  %vm53_vm7 = vcmask 130144  }
   0x4   :  { %s95_s22 = smov 32   ;;  %s96_s23 = smov 24   ;;  %v79_v4 = vld [vmem:[%s145_s0 + $0x5] ss:$16 sm:%s35_s20]   ;;  %v80_v5 = vld [vmem:[%s145_s0 + $0x4] ss:$16 sm:%s42_s21]  }
   0x5   :  { %s49_s28 = smov 3  ;;  %s56_s29 = smov 3  ;;  %vm60_vm8 = vcmask 97344   ;;  %vm67_vm9 = vcmask 64544  }
   0x6   :  { %16 = vrot.lane.b32.xlu0 %v76_v2, %s95_s22  ;;  %s2_s30 = smov 3  ;;  %s97_s2 = smov 20   ;;  %v81_v7 = vld [vmem:[%s145_s0 + $0x3] ss:$16 sm:%s49_s28]  }
   0x7   :  { %30 = vrot.lane.b32.xlu1 %v78_v3, %s96_s23  ;;  %v3_v6 = vld [vmem:[%s145_s0] ss:$16 sm:%s2_s30]   ;;  %s98_s5 = smov 16   ;;  %s63_s10 = smov 3 }
   0x8   :  { %5 = vst.msk [vmem:[#allocation0] sm:$0x3] %vm4_vm0, %v3_v6   ;;  %v82_v8 = vld [vmem:[%s145_s0 + $0x2] ss:$16 sm:%s56_s29]   ;;  %s99_s11 = smov 12   ;;  %s100_s12 = smov 8  }
   0x9   :  { %v83_v9 = vld [vmem:[%s145_s0 + $0x1] ss:$16 sm:%s63_s10]   ;;  %s101_s0 = smov 4  }
   0xa   :  { %37 = vrot.lane.b32.xlu0 %v79_v4, %s97_s2 }
   0xb   :  { %44 = vrot.lane.b32.xlu1 %v80_v5, %s98_s5 }
   0xe   :  { %51 = vrot.lane.b32.xlu0 %v81_v7, %s99_s11 }
   0xf   :  { %58 = vrot.lane.b32.xlu1 %v82_v8, %s100_s12 }
  0x12   :  { %65 = vrot.lane.b32.xlu0 %v83_v9, %s101_s0 }
  0x74   :  { %v10_v10 = vpop.permute.xlu0 %9  }
  0x75   :  { %12 = vst.msk [vmem:[#allocation0] sm:$0x3] %vm11_vm1, %v10_v10   ;;  %v24_v11 = vpop.permute.xlu1 %23  }
  0x78   :  { %v17_v12 = vpop.permute.xlu0 %16  }
  0x79   :  { %19 = vst.msk [vmem:[#allocation0] sm:$0x3] %vm18_vm2, %v17_v12   ;;  %v31_v13 = vpop.permute.xlu1 %30  }
  0x7a   :  { %26 = vst.msk [vmem:[#allocation0] sm:$0x3] %vm25_vm3, %v24_v11  }
  0x7b   :  { %33 = vst.msk [vmem:[#allocation0] sm:$0x3] %vm32_vm4, %v31_v13  }
  0x7c   :  { %v38_v14 = vpop.permute.xlu0 %37  }
  0x7d   :  { %40 = vst.msk [vmem:[#allocation0] sm:$0x3] %vm39_vm5, %v38_v14   ;;  %v45_v15 = vpop.permute.xlu1 %44  }
  0x7e   :  { %47 = vst.msk [vmem:[#allocation0] sm:$0x3] %vm46_vm6, %v45_v15  }
  0x80   :  { %v52_v16 = vpop.permute.xlu0 %51  }
  0x81   :  { %54 = vst.msk [vmem:[#allocation0] sm:$0x3] %vm53_vm7, %v52_v16   ;;  %v59_v17 = vpop.permute.xlu1 %58  }
  0x82   :  { %61 = vst.msk [vmem:[#allocation0] sm:$0x3] %vm60_vm8, %v59_v17  }
  0x84   :  { %v66_v18 = vpop.permute.xlu0 %65  }
  0x85   :  { %68 = vst.msk [vmem:[#allocation0] sm:$0x3] %vm67_vm9, %v66_v18  }
  0x8c   :  { %v72_v19 = vld [vmem:[#allocation0] sm:$0x3] }
  0x8d   :  { %74 = vst [vmem:[%s146_s1] sm:$0x3] %v72_v19 }

// kernel: dqn_forward.9
= control target key start
LH: loop header
LB: loop body
LE: loop exit
PB: predicated region body
PF: predicated region fallthrough
CT: control target
= control target key end

     0   :  { %v3066_v1 = vmov 0.0   ;;  %vm3067_vm0 = vmmov 0   ;;  %vm117_vm1 = vcmask 1040384   ;;  %vm113_vm2 = vcmask 801792   ;;  %s4043_s0 = inlined_call_operand.vmem [shape: f32[2,98], index: 0, kind: input, shape index: {}]   ;;  %s4044_s1 = inlined_call_operand.vmem [shape: f32[2,512], index: 1, kind: input, shape index: {}]   ;;  %s4045_s2 = inlined_call_operand.vmem [shape: bf16[98,128], index: 2, kind: input, shape index: {}]   ;;  %s4046_s3 = inlined_call_operand.vmem [shape: f32[1,128], index: 3, kind: input, shape index: {}]   ;;  %s4047_s4 = inlined_call_operand.vmem [shape: bf16[128,128], index: 4, kind: input, shape index: {}]   ;;  %s4048_s5 = inlined_call_operand.vmem [shape: f32[1,128], index: 5, kind: input, shape index: {}]   ;;  %s4049_s6 = inlined_call_operand.vmem [shape: bf16[128,512], index: 6, kind: input, shape index: {}]   ;;  %s4050_s7 = inlined_call_operand.vmem [shape: bf16[512,512], index: 7, kind: input, shape index: {}]   ;;  %s4051_s8 = inlined_call_operand.vmem [shape: f32[1,512], index: 8, kind: input, shape index: {}]   ;;  %s4052_s9 = inlined_call_operand.vmem [shape: bf16[512,256], index: 9, kind: input, shape index: {}]   ;;  %s4053_s10 = inlined_call_operand.vmem [shape: f32[1,256], index: 10, kind: input, shape index: {}]   ;;  %s4054_s11 = inlined_call_operand.vmem [shape: bf16[256,64], index: 11, kind: input, shape index: {}]   ;;  %s4055_s12 = inlined_call_operand.vmem [shape: f32[1,64], index: 12, kind: input, shape index: {}]   ;;  %s4056_s13 = inlined_call_operand.vmem [shape: bf16[64,5], index: 13, kind: input, shape index: {}]   ;;  %s4057_s14 = inlined_call_operand.vmem [shape: f32[1,5], index: 14, kind: input, shape index: {}]   ;;  %s4058_s15 = inlined_call_operand.hbm [shape: f32[2,5], index: 15, kind: output, shape index: {}]  }
   0x1   :  { %v2670_v0 = vld [vmem:[%s4045_s2] sm:$0xff]   ;;  %2609 = vmatprep.subr.bf16.mxu0 %v3066_v1  ;;  %2627 = vmatprep.subr.bf16.mxu1 %v3066_v1  ;;  %v2671_v2 = vld [vmem:[%s4045_s2 + $0x8] sm:$0xff]   ;;  %v2672_v3 = vld [vmem:[%s4045_s2 + $0x10] sm:$0xff]  }
   0x2   :  { %2610 = vmatpush3.bf16.msra.mxu0 %v2670_v0  ;;  %2623 = vmatprep.mubr.msk.bf16.mxu0 %vm3067_vm0, %v3066_v1  ;;  %v2677_v4 = vld [vmem:[%s4047_s4] sm:$0xff]   ;;  %v2678_v5 = vld [vmem:[%s4047_s4 + $0x8] sm:$0xff]   ;;  %v2673_v6 = vld [vmem:[%s4045_s2 + $0x18] sm:$0xff]  }
   0x3   :  { %2611 = vmatprep.subr.bf16.mxu0 %v3066_v1  ;;  %2643 = vmatprep.mubr.msk.bf16.mxu1 %vm3067_vm0, %v3066_v1  ;;  %v2679_v7 = vld [vmem:[%s4047_s4 + $0x10] sm:$0xff]   ;;  %v2674_v8 = vld [vmem:[%s4045_s2 + $0x20] sm:$0xff]   ;;  %v2680_v9 = vld [vmem:[%s4047_s4 + $0x18] sm:$0xff]  }
   0x4   :  { %2628 = vmatpush3.bf16.msra.mxu1 %v2677_v4  ;;  %v2675_v10 = vld [vmem:[%s4045_s2 + $0x28] sm:$0xff]   ;;  %v2676_v11 = vld [vmem:[%s4045_s2 + $0x30] ss:$0 sps:$4 sm:$0x11]   ;;  %v2681_v12 = vld [vmem:[%s4047_s4 + $0x20] sm:$0xff]  }
   0x5   :  { %2629 = vmatprep.subr.bf16.mxu1 %v3066_v1  ;;  %v52_v13 = vld [vmem:[%s4043_s0] sm:$0x3]  ;;  %v2682_v14 = vld [vmem:[%s4047_s4 + $0x28] sm:$0xff]   ;;  %v119_v15 = vsel %vm117_vm1, %v2676_v11, 0 }
   0x6   :  { %2612 = vmatpush3.bf16.msra.mxu0 %v2671_v2  ;;  %v53_v16 = vpack.c.bf16 %v52_v13, %v52_v13 }
   0x7   :  { %2613 = vmatprep.subr.bf16.mxu0 %v3066_v1 }
   0x8   :  { %2630 = vmatpush3.bf16.msra.mxu1 %v2678_v5 }
   0x9   :  { %2631 = vmatprep.subr.bf16.mxu1 %v3066_v1 }
   0xa   :  { %2614 = vmatpush3.bf16.msra.mxu0 %v2672_v3 }
   0xb   :  { %2615 = vmatprep.subr.bf16.mxu0 %v3066_v1 }
   0xc   :  { %2632 = vmatpush3.bf16.msra.mxu1 %v2679_v7 }
   0xd   :  { %2633 = vmatprep.subr.bf16.mxu1 %v3066_v1 }
   0xe   :  { %2616 = vmatpush3.bf16.msra.mxu0 %v2673_v6 }
   0xf   :  { %2617 = vmatprep.subr.bf16.mxu0 %v3066_v1 }
  0x10   :  { %2634 = vmatpush3.bf16.msra.mxu1 %v2680_v9 }
  0x11   :  { %2635 = vmatprep.subr.bf16.mxu1 %v3066_v1 }
  0x12   :  { %2618 = vmatpush3.bf16.msra.mxu0 %v2674_v8 }
  0x13   :  { %2619 = vmatprep.subr.bf16.mxu0 %v3066_v1 }
  0x14   :  { %2636 = vmatpush3.bf16.msra.mxu1 %v2681_v12 }
  0x15   :  { %2637 = vmatprep.subr.bf16.mxu1 %v3066_v1 }
  0x16   :  { %2620 = vmatpush3.bf16.msra.mxu0 %v2675_v10 }
  0x17   :  { %2621 = vmatprep.subr.bf16.mxu0 %v3066_v1 }
  0x18   :  { %2638 = vmatpush3.bf16.msra.mxu1 %v2682_v14 }
  0x19   :  { %2639 = vmatprep.subr.bf16.mxu1 %v3066_v1 }
  0x1a   :  { %2622 = vmatpush3.bf16.msra.mxu0 %v119_v15 }
  0x1d   :  { %2624 = vmatmul.mubr.msk.bf16.vlgmr.msra.gmra.mrb[0].mxu0 %vm113_vm2, %v53_v16 }
  0x1e   :  { %20 = vsyncpa [#allocation3], 0  ;;  %v2683_v17 = vld [vmem:[%s4047_s4 + $0x30] sm:$0xff]   ;;  %v2684_v18 = vld [vmem:[%s4047_s4 + $0x38] sm:$0xff]   ;;  %v313_v52 = vlaneseq  ;;  %v3068_v53 = vmov 1983009808  }
  0x1f   :  { %2640 = vmatpush3.bf16.msra.mxu1 %v2683_v17  ;;  %v2687_v19 = vld [vmem:[%s4050_s7 + $0x204] ss:$16 sps:$4 sm:$0xff]   ;;  %v2688_v20 = vld [vmem:[%s4050_s7] ss:$16 sps:$4 sm:$0xff]   ;;  %v311_v54 = vunpack.c.l.s4 %v3068_v53  ;;  %v2787_v57 = vld [vmem:[%s4050_s7 + $0xc] ss:$16 sps:$4 sm:$0xff]  }
  0x20   :  { %2641 = vmatprep.subr.bf16.mxu1 %v3066_v1  ;;  %v2690_v21 = vld [vmem:[%s4050_s7 + $0x4] ss:$16 sps:$4 sm:$0xff]   ;;  %v2694_v22 = vld [vmem:[%s4050_s7 + $0x20] ss:$16 sps:$4 sm:$0xff]   ;;  %v3317_v55 = vshrl.u32 %v313_v52, 7  ;;  %vm2240_vm3 = vcmask 523264  }
  0x21   :  { %1102 = vmatprep.subr.bf16.mxu0 %v2690_v21  ;;  %v2696_v23 = vld [vmem:[%s4050_s7 + $0x24] ss:$16 sps:$4 sm:$0xff]   ;;  %v2700_v24 = vld [vmem:[%s4050_s7 + $0x40] ss:$16 sps:$4 sm:$0xff]   ;;  %v312_v56 = vunpack.c.0.s8 %v311_v54  ;;  %v2785_v0 = vld [vmem:[%s4050_s7 + $0x8] ss:$16 sps:$4 sm:$0xff]  }
  0x22   :  { %1103 = vmatpush1.bf16.msra.mxu0 %v2688_v20  ;;  %v2702_v25 = vld [vmem:[%s4050_s7 + $0x44] ss:$16 sps:$4 sm:$0xff]   ;;  %v2706_v26 = vld [vmem:[%s4050_s7 + $0x60] ss:$16 sps:$4 sm:$0xff]   ;;  %v2793_v2 = vld [vmem:[%s4050_s7 + $0x2c] ss:$16 sps:$4 sm:$0xff]  }
  0x23   :  { %2642 = vmatpush3.bf16.msra.mxu1 %v2684_v18  ;;  %1104 = vmatprep.subr.bf16.mxu0 %v2696_v23  ;;  %v2708_v27 = vld [vmem:[%s4050_s7 + $0x64] ss:$16 sps:$4 sm:$0xff]   ;;  %v2712_v28 = vld [vmem:[%s4050_s7 + $0x80] ss:$16 sps:$4 sm:$0xff]   ;;  %v315_v58 = vsub.s32 %v312_v56, %v3317_v55  ;;  %v2791_v3 = vld [vmem:[%s4050_s7 + $0x28] ss:$16 sps:$4 sm:$0xff]  }
  0x24   :  { %1143 = vmatprep.subr.bf16.mxu1 %v2687_v19  ;;  %v2714_v29 = vld [vmem:[%s4050_s7 + $0x84] ss:$16 sps:$4 sm:$0xff]   ;;  %v2718_v30 = vld [vmem:[%s4050_s7 + $0xa0] ss:$16 sps:$4 sm:$0xff]   ;;  %v2799_v4 = vld [vmem:[%s4050_s7 + $0x4c] ss:$16 sps:$4 sm:$0xff]  }
  0x25   :  { %v2720_v31 = vld [vmem:[%s4050_s7 + $0xa4] ss:$16 sps:$4 sm:$0xff]   ;;  %v2724_v32 = vld [vmem:[%s4050_s7 + $0xc0] ss:$16 sps:$4 sm:$0xff]   ;;  %v2797_v5 = vld [vmem:[%s4050_s7 + $0x48] ss:$16 sps:$4 sm:$0xff]  }
  0x26   :  { %1105 = vmatpush1.bf16.msra.mxu0 %v2694_v22  ;;  %v2726_v33 = vld [vmem:[%s4050_s7 + $0xc4] ss:$16 sps:$4 sm:$0xff]   ;;  %v2730_v34 = vld [vmem:[%s4050_s7 + $0xe0] ss:$16 sps:$4 sm:$0xff]   ;;  %v2805_v6 = vld [vmem:[%s4050_s7 + $0x6c] ss:$16 sps:$4 sm:$0xff]  }
  0x27   :  { %1106 = vmatprep.subr.bf16.mxu0 %v2702_v25  ;;  %v2732_v35 = vld [vmem:[%s4050_s7 + $0xe4] ss:$16 sps:$4 sm:$0xff]   ;;  %v2736_v36 = vld [vmem:[%s4050_s7 + $0x100] ss:$16 sps:$4 sm:$0xff]   ;;  %v2803_v7 = vld [vmem:[%s4050_s7 + $0x68] ss:$16 sps:$4 sm:$0xff]  }
  0x28   :  { %v2738_v37 = vld [vmem:[%s4050_s7 + $0x104] ss:$16 sps:$4 sm:$0xff]   ;;  %v2742_v38 = vld [vmem:[%s4050_s7 + $0x120] ss:$16 sps:$4 sm:$0xff]   ;;  %v2811_v8 = vld [vmem:[%s4050_s7 + $0x8c] ss:$16 sps:$4 sm:$0xff]  }
  0x29   :  { %v2744_v39 = vld [vmem:[%s4050_s7 + $0x124] ss:$16 sps:$4 sm:$0xff]   ;;  %v2748_v40 = vld [vmem:[%s4050_s7 + $0x140] ss:$16 sps:$4 sm:$0xff]   ;;  %v2809_v9 = vld [vmem:[%s4050_s7 + $0x88] ss:$16 sps:$4 sm:$0xff]  }
  0x2a   :  { %1107 = vmatpush1.bf16.msra.mxu0 %v2700_v24  ;;  %v2750_v41 = vld [vmem:[%s4050_s7 + $0x144] ss:$16 sps:$4 sm:$0xff]   ;;  %v2754_v42 = vld [vmem:[%s4050_s7 + $0x160] ss:$16 sps:$4 sm:$0xff]   ;;  %v2817_v10 = vld [vmem:[%s4050_s7 + $0xac] ss:$16 sps:$4 sm:$0xff]  }
  0x2b   :  { %1108 = vmatprep.subr.bf16.mxu0 %v2708_v27  ;;  %v2756_v43 = vld [vmem:[%s4050_s7 + $0x164] ss:$16 sps:$4 sm:$0xff]   ;;  %v2760_v44 = vld [vmem:[%s4050_s7 + $0x180] ss:$16 sps:$4 sm:$0xff]   ;;  %v2815_v11 = vld [vmem:[%s4050_s7 + $0xa8] ss:$16 sps:$4 sm:$0xff]  }
  0x2c   :  { %v2762_v45 = vld [vmem:[%s4050_s7 + $0x184] ss:$16 sps:$4 sm:$0xff]   ;;  %v2766_v46 = vld [vmem:[%s4050_s7 + $0x1a0] ss:$16 sps:$4 sm:$0xff]   ;;  %v2823_v12 = vld [vmem:[%s4050_s7 + $0xcc] ss:$16 sps:$4 sm:$0xff]  }
  0x2d   :  { %v2768_v47 = vld [vmem:[%s4050_s7 + $0x1a4] ss:$16 sps:$4 sm:$0xff]   ;;  %v2772_v48 = vld [vmem:[%s4050_s7 + $0x1c0] ss:$16 sps:$4 sm:$0xff]   ;;  %v2821_v13 = vld [vmem:[%s4050_s7 + $0xc8] ss:$16 sps:$4 sm:$0xff]  }
  0x2e   :  { %1109 = vmatpush1.bf16.msra.mxu0 %v2706_v26  ;;  %v2774_v49 = vld [vmem:[%s4050_s7 + $0x1c4] ss:$16 sps:$4 sm:$0xff]   ;;  %v2778_v50 = vld [vmem:[%s4050_s7 + $0x1e0] ss:$16 sps:$4 sm:$0xff]   ;;  %v2829_v14 = vld [vmem:[%s4050_s7 + $0xec] ss:$16 sps:$4 sm:$0xff]  }
  0x2f   :  { %1110 = vmatprep.subr.bf16.mxu0 %v2714_v29  ;;  %v2780_v51 = vld [vmem:[%s4050_s7 + $0x1e4] ss:$16 sps:$4 sm:$0xff]   ;;  %v2827_v15 = vld [vmem:[%s4050_s7 + $0xe8] ss:$16 sps:$4 sm:$0xff]   ;;  %v2835_v16 = vld [vmem:[%s4050_s7 + $0x10c] ss:$16 sps:$4 sm:$0xff]  }
  0x30   :  { %v307_v59 = vld [vmem:[%s4044_s1] sm:$0xff]  ;;  %v2833_v17 = vld [vmem:[%s4050_s7 + $0x108] ss:$16 sps:$4 sm:$0xff]   ;;  %v2841_v18 = vld [vmem:[%s4050_s7 + $0x12c] ss:$16 sps:$4 sm:$0xff]   ;;  %vm2284_vm4 = vcmask 33792  }
  0x31   :  { %v316_v60 = vrot.slane %v307_v59, %v315_v58  ;;  %v2839_v19 = vld [vmem:[%s4050_s7 + $0x128] ss:$16 sps:$4 sm:$0xff]   ;;  %v2847_v20 = vld [vmem:[%s4050_s7 + $0x14c] ss:$16 sps:$4 sm:$0xff]   ;;  %v309_v21 = vcombine.high %v307_v59, %v307_v59  ;;  %v2300_v27 = vld [vmem:[%s4046_s3] ss:$0 sm:$0xff] }
  0x32   :  { %1111 = vmatpush1.bf16.msra.mxu0 %v2712_v28  ;;  %v2845_v22 = vld [vmem:[%s4050_s7 + $0x148] ss:$16 sps:$4 sm:$0xff]   ;;  %v2853_v23 = vld [vmem:[%s4050_s7 + $0x16c] ss:$16 sps:$4 sm:$0xff]   ;;  %v2709_v52 = vld [vmem:[%s4050_s7 + $0x280] ss:$16 sps:$4 sm:$0xff]  }
  0x33   :  { %1112 = vmatprep.subr.bf16.mxu0 %v2720_v31  ;;  %v324_v61 = vcombine.high %v316_v60, %v316_v60  ;;  %v3326_v62 = vpack.c.bf16 %v316_v60, %v316_v60  ;;  %v3395_v24 = vrot.slane %v309_v21, %v315_v58  ;;  %v2851_v25 = vld [vmem:[%s4050_s7 + $0x168] ss:$16 sps:$4 sm:$0xff]   ;;  %v2859_v26 = vld [vmem:[%s4050_s7 + $0x18c] ss:$16 sps:$4 sm:$0xff]   ;;  %v2717_v53 = vld [vmem:[%s4050_s7 + $0x2a4] ss:$16 sps:$4 sm:$0xff]  }
  0x34   :  { %v2715_v54 = vld [vmem:[%s4050_s7 + $0x2a0] ss:$16 sps:$4 sm:$0xff]   ;;  %v2723_v56 = vld [vmem:[%s4050_s7 + $0x2c4] ss:$16 sps:$4 sm:$0xff]   ;;  %v2800_v21 = vld [vmem:[%s4050_s7 + $0x268] ss:$16 sps:$4 sm:$0xff]  }
  0x35   :  { %v331_v63 = vpack.c.bf16 %v324_v61, %v324_v61  ;;  %v325_v29 = vcombine.high %v3395_v24, %v3395_v24  ;;  %v2729_v58 = vld [vmem:[%s4050_s7 + $0x2e4] ss:$16 sps:$4 sm:$0xff]   ;;  %v2727_v59 = vld [vmem:[%s4050_s7 + $0x2e0] ss:$16 sps:$4 sm:$0xff]  }
  0x36   :  { %1113 = vmatpush1.bf16.msra.mxu0 %v2718_v30  ;;  %v2857_v30 = vld [vmem:[%s4050_s7 + $0x188] ss:$16 sps:$4 sm:$0xff]   ;;  %v2735_v60 = vld [vmem:[%s4050_s7 + $0x304] ss:$16 sps:$4 sm:$0xff]   ;;  %v2733_v61 = vld [vmem:[%s4050_s7 + $0x300] ss:$16 sps:$4 sm:$0xff]  }
  0x37   :  { %1114 = vmatprep.subr.bf16.mxu0 %v2726_v33  ;;  %1134 = vmatprep.mubr.bf16.mxu0 %v331_v63  ;;  %v2865_v33 = vld [vmem:[%s4050_s7 + $0x1ac] ss:$16 sps:$4 sm:$0xff]  }
  0x3a   :  { %1115 = vmatpush1.bf16.msra.mxu0 %v2724_v32 }
  0x3b   :  { %1116 = vmatprep.subr.bf16.mxu0 %v2732_v35 }
  0x3e   :  { %1117 = vmatpush1.bf16.msra.mxu0 %v2730_v34 }
  0x3f   :  { %1118 = vmatprep.subr.bf16.mxu0 %v2738_v37  ;;  %v2685_v37 = vld [vmem:[%s4050_s7 + $0x200] ss:$16 sps:$4 sm:$0xff]  }
  0x42   :  { %1119 = vmatpush1.bf16.msra.mxu0 %v2736_v36 }
  0x43   :  { %1120 = vmatprep.subr.bf16.mxu0 %v2744_v39 }
  0x46   :  { %1121 = vmatpush1.bf16.msra.mxu0 %v2742_v38  ;;  %v3417_v38 = vpack.c.bf16 %v325_v29, %v325_v29  ;;  %v2824_v29 = vld [vmem:[%s4050_s7 + $0x2e8] ss:$16 sps:$4 sm:$0xff]  }
  0x47   :  { %1122 = vmatprep.subr.bf16.mxu0 %v2750_v41  ;;  %v2863_v41 = vld [vmem:[%s4050_s7 + $0x1a8] ss:$16 sps:$4 sm:$0xff]  }
  0x4a   :  { %1123 = vmatpush1.bf16.msra.mxu0 %v2748_v40  ;;  %v2693_v40 = vld [vmem:[%s4050_s7 + $0x224] ss:$16 sps:$4 sm:$0xff]  }
  0x4b   :  { %1124 = vmatprep.subr.bf16.mxu0 %v2756_v43  ;;  %v2691_v43 = vld [vmem:[%s4050_s7 + $0x220] ss:$16 sps:$4 sm:$0xff]  }
  0x4e   :  { %1125 = vmatpush1.bf16.msra.mxu0 %v2754_v42  ;;  %v2871_v42 = vld [vmem:[%s4050_s7 + $0x1cc] ss:$16 sps:$4 sm:$0xff]  }
  0x4f   :  { %1126 = vmatprep.subr.bf16.mxu0 %v2762_v45  ;;  %v2869_v45 = vld [vmem:[%s4050_s7 + $0x1c8] ss:$16 sps:$4 sm:$0xff]  }
  0x52   :  { %1127 = vmatpush1.bf16.msra.mxu0 %v2760_v44  ;;  %v2699_v44 = vld [vmem:[%s4050_s7 + $0x244] ss:$16 sps:$4 sm:$0xff]  }
  0x53   :  { %1128 = vmatprep.subr.bf16.mxu0 %v2768_v47  ;;  %v2697_v47 = vld [vmem:[%s4050_s7 + $0x240] ss:$16 sps:$4 sm:$0xff]  }
  0x56   :  { %1129 = vmatpush1.bf16.msra.mxu0 %v2766_v46  ;;  %v2877_v46 = vld [vmem:[%s4050_s7 + $0x1ec] ss:$16 sps:$4 sm:$0xff]  }
  0x57   :  { %1130 = vmatprep.subr.bf16.mxu0 %v2774_v49  ;;  %v2875_v49 = vld [vmem:[%s4050_s7 + $0x1e8] ss:$16 sps:$4 sm:$0xff]  }
  0x5a   :  { %1131 = vmatpush1.bf16.msra.mxu0 %v2772_v48  ;;  %v2705_v48 = vld [vmem:[%s4050_s7 + $0x264] ss:$16 sps:$4 sm:$0xff]  }
  0x5b   :  { %1132 = vmatprep.subr.bf16.mxu0 %v2780_v51  ;;  %v2711_v51 = vld [vmem:[%s4050_s7 + $0x284] ss:$16 sps:$4 sm:$0xff]  }
  0x5e   :  { %1133 = vmatpush1.bf16.msra.mxu0 %v2778_v50  ;;  %v2703_v50 = vld [vmem:[%s4050_s7 + $0x260] ss:$16 sps:$4 sm:$0xff]  }
  0x5f   :  { %1184 = vmatprep.subr.bf16.mxu0 %v2787_v57  ;;  %v2721_v57 = vld [vmem:[%s4050_s7 + $0x2c0] ss:$16 sps:$4 sm:$0xff]  }
  0x61   :  { %1135 = vmatmul.mubr.bf16.vlgmr.msra.gmra.mrb[4].mxu0 %v3326_v62 }
  0x62   :  { %1185 = vmatpush1.bf16.msra.mxu0 %v2785_v0  ;;  %1216 = vmatprep.mubr.bf16.mxu0 %v331_v63  ;;  %v2739_v63 = vld [vmem:[%s4050_s7 + $0x320] ss:$16 sps:$4 sm:$0xff]   ;;  %v2747_v0 = vld [vmem:[%s4050_s7 + $0x344] ss:$16 sps:$4 sm:$0xff]  }
  0x63   :  { %1186 = vmatprep.subr.bf16.mxu0 %v2793_v2  ;;  %v2745_v2 = vld [vmem:[%s4050_s7 + $0x340] ss:$16 sps:$4 sm:$0xff]  }
  0x66   :  { %1187 = vmatpush1.bf16.msra.mxu0 %v2791_v3  ;;  %v2753_v3 = vld [vmem:[%s4050_s7 + $0x364] ss:$16 sps:$4 sm:$0xff]  }
  0x67   :  { %1188 = vmatprep.subr.bf16.mxu0 %v2799_v4  ;;  %v2751_v4 = vld [vmem:[%s4050_s7 + $0x360] ss:$16 sps:$4 sm:$0xff]  }
  0x6a   :  { %1189 = vmatpush1.bf16.msra.mxu0 %v2797_v5  ;;  %v2759_v5 = vld [vmem:[%s4050_s7 + $0x384] ss:$16 sps:$4 sm:$0xff]  }
  0x6b   :  { %1190 = vmatprep.subr.bf16.mxu0 %v2805_v6  ;;  %v2757_v6 = vld [vmem:[%s4050_s7 + $0x380] ss:$16 sps:$4 sm:$0xff]  }
  0x6e   :  { %1191 = vmatpush1.bf16.msra.mxu0 %v2803_v7  ;;  %v2765_v7 = vld [vmem:[%s4050_s7 + $0x3a4] ss:$16 sps:$4 sm:$0xff]  }
  0x6f   :  { %1192 = vmatprep.subr.bf16.mxu0 %v2811_v8  ;;  %v2763_v8 = vld [vmem:[%s4050_s7 + $0x3a0] ss:$16 sps:$4 sm:$0xff]  }
  0x72   :  { %1193 = vmatpush1.bf16.msra.mxu0 %v2809_v9  ;;  %v2771_v9 = vld [vmem:[%s4050_s7 + $0x3c4] ss:$16 sps:$4 sm:$0xff]  }
  0x73   :  { %1194 = vmatprep.subr.bf16.mxu0 %v2817_v10  ;;  %v2769_v10 = vld [vmem:[%s4050_s7 + $0x3c0] ss:$16 sps:$4 sm:$0xff]  }
  0x76   :  { %1195 = vmatpush1.bf16.msra.mxu0 %v2815_v11  ;;  %v2777_v11 = vld [vmem:[%s4050_s7 + $0x3e4] ss:$16 sps:$4 sm:$0xff]  }
  0x77   :  { %1196 = vmatprep.subr.bf16.mxu0 %v2823_v12  ;;  %v2775_v12 = vld [vmem:[%s4050_s7 + $0x3e0] ss:$16 sps:$4 sm:$0xff]  }
  0x7a   :  { %1197 = vmatpush1.bf16.msra.mxu0 %v2821_v13  ;;  %v2784_v13 = vld [vmem:[%s4050_s7 + $0x20c] ss:$16 sps:$4 sm:$0xff]  }
  0x7b   :  { %1198 = vmatprep.subr.bf16.mxu0 %v2829_v14  ;;  %v3531_v14 = vpack.c.bf16 %v3395_v24, %v3395_v24  ;;  %v2814_v24 = vld [vmem:[%s4050_s7 + $0x2ac] ss:$16 sps:$4 sm:$0xff]  }
  0x7e   :  { %1199 = vmatpush1.bf16.msra.mxu0 %v2827_v15  ;;  %v2782_v15 = vld [vmem:[%s4050_s7 + $0x208] ss:$16 sps:$4 sm:$0xff]  }
  0x7f   :  { %1200 = vmatprep.subr.bf16.mxu0 %v2835_v16  ;;  %v2790_v16 = vld [vmem:[%s4050_s7 + $0x22c] ss:$16 sps:$4 sm:$0xff]  }
  0x82   :  { %1201 = vmatpush1.bf16.msra.mxu0 %v2833_v17  ;;  %v2788_v17 = vld [vmem:[%s4050_s7 + $0x228] ss:$16 sps:$4 sm:$0xff]  }
  0x83   :  { %1202 = vmatprep.subr.bf16.mxu0 %v2841_v18  ;;  %v2796_v18 = vld [vmem:[%s4050_s7 + $0x24c] ss:$16 sps:$4 sm:$0xff]  }
  0x86   :  { %1203 = vmatpush1.bf16.msra.mxu0 %v2839_v19  ;;  %v2794_v19 = vld [vmem:[%s4050_s7 + $0x248] ss:$16 sps:$4 sm:$0xff]  }
  0x87   :  { %1204 = vmatprep.subr.bf16.mxu0 %v2847_v20  ;;  %v2802_v20 = vld [vmem:[%s4050_s7 + $0x26c] ss:$16 sps:$4 sm:$0xff]  }
  0x8a   :  { %1205 = vmatpush1.bf16.msra.mxu0 %v2845_v22  ;;  %v2808_v22 = vld [vmem:[%s4050_s7 + $0x28c] ss:$16 sps:$4 sm:$0xff]  }
  0x8b   :  { %1206 = vmatprep.subr.bf16.mxu0 %v2853_v23  ;;  %v2806_v23 = vld [vmem:[%s4050_s7 + $0x288] ss:$16 sps:$4 sm:$0xff]  }
  0x8e   :  { %1207 = vmatpush1.bf16.msra.mxu0 %v2851_v25  ;;  %v2812_v25 = vld [vmem:[%s4050_s7 + $0x2a8] ss:$16 sps:$4 sm:$0xff]  }
  0x8f   :  { %1208 = vmatprep.subr.bf16.mxu0 %v2859_v26  ;;  %v2820_v26 = vld [vmem:[%s4050_s7 + $0x2cc] ss:$16 sps:$4 sm:$0xff]  }
  0x92   :  { %1209 = vmatpush1.bf16.msra.mxu0 %v2857_v30  ;;  %v2832_v30 = vld [vmem:[%s4050_s7 + $0x30c] ss:$16 sps:$4 sm:$0xff]  }
  0x93   :  { %1210 = vmatprep.subr.bf16.mxu0 %v2865_v33  ;;  %v2836_v33 = vld [vmem:[%s4050_s7 + $0x328] ss:$16 sps:$4 sm:$0xff]  }
  0x96   :  { %1211 = vmatpush1.bf16.msra.mxu0 %v2863_v41  ;;  %v2860_v41 = vld [vmem:[%s4050_s7 + $0x3a8] ss:$16 sps:$4 sm:$0xff]  }
  0x97   :  { %1212 = vmatprep.subr.bf16.mxu0 %v2871_v42  ;;  %v2868_v42 = vld [vmem:[%s4050_s7 + $0x3cc] ss:$16 sps:$4 sm:$0xff]  }
  0x9a   :  { %1213 = vmatpush1.bf16.msra.mxu0 %v2869_v45  ;;  %v2872_v45 = vld [vmem:[%s4050_s7 + $0x3e8] ss:$16 sps:$4 sm:$0xff]  }
  0x9b   :  { %1214 = vmatprep.subr.bf16.mxu0 %v2877_v46  ;;  %v2880_v46 = vld [vmem:[%s4049_s6 + $0x4] ss:$16 sps:$4 sm:$0xff]  }
  0x9e   :  { %1215 = vmatpush1.bf16.msra.mxu0 %v2875_v49  ;;  %v2881_v49 = vld [vmem:[%s4049_s6 + $0x20] ss:$16 sps:$4 sm:$0xff]  }
  0xa1   :  { %1217 = vmatmul.mubr.bf16.vlgmr.msra.gmra.mrb[8].mxu0 %v3326_v62  ;;  %v2741_v62 = vld [vmem:[%s4050_s7 + $0x324] ss:$16 sps:$4 sm:$0xff]  }
  0xf0   :  { %v155_v28 = vpop.f32.mrb[0].mxu0 }
  0xf1   :  { %v156_v31 = vadd.f32 %v2300_v27, %v155_v28  ;;  %v2625_v32 = vpop.f32.mrb[1].mxu0  ;;  %v2818_v27 = vld [vmem:[%s4050_s7 + $0x2c8] ss:$16 sps:$4 sm:$0xff]   ;;  %v2826_v28 = vld [vmem:[%s4050_s7 + $0x2ec] ss:$16 sps:$4 sm:$0xff]  }
  0xf2   :  { %v158_v34 = vpop.f32.mrb[2].mxu0  ;;  %v2838_v32 = vld [vmem:[%s4050_s7 + $0x32c] ss:$16 sps:$4 sm:$0xff]  }
  0xf3   :  { %v161_v35 = vmax.f32 %v156_v31, 0.0  ;;  %v2626_v36 = vpop.f32.mrb[3].mxu0  ;;  %v2830_v31 = vld [vmem:[%s4050_s7 + $0x308] ss:$16 sps:$4 sm:$0xff]   ;;  %v2844_v34 = vld [vmem:[%s4050_s7 + $0x34c] ss:$16 sps:$4 sm:$0xff]  }
  0xf4   :  { %v2850_v36 = vld [vmem:[%s4050_s7 + $0x36c] ss:$16 sps:$4 sm:$0xff]  }
  0xf5   :  { %v162_v39 = vpack.c.bf16 %v161_v35, %v161_v35  ;;  %v2842_v35 = vld [vmem:[%s4050_s7 + $0x348] ss:$16 sps:$4 sm:$0xff]  }
  0xf7   :  { %2644 = vmatmul.mubr.bf16.vlgmr.msra.gmra.mrb[0].mxu1 %v162_v39  ;;  %v2854_v39 = vld [vmem:[%s4050_s7 + $0x388] ss:$16 sps:$4 sm:$0xff]  }
  0xf8   :  { %1144 = vmatpush1.bf16.msra.mxu1 %v2685_v37  ;;  %1175 = vmatprep.mubr.bf16.mxu1 %v3417_v38  ;;  %v2848_v37 = vld [vmem:[%s4050_s7 + $0x368] ss:$16 sps:$4 sm:$0xff]  }
  0xf9   :  { %1145 = vmatprep.subr.bf16.mxu1 %v2693_v40  ;;  %v2862_v40 = vld [vmem:[%s4050_s7 + $0x3ac] ss:$16 sps:$4 sm:$0xff]  }
  0xfc   :  { %1146 = vmatpush1.bf16.msra.mxu1 %v2691_v43  ;;  %v2866_v43 = vld [vmem:[%s4050_s7 + $0x3c8] ss:$16 sps:$4 sm:$0xff]  }
  0xfd   :  { %1147 = vmatprep.subr.bf16.mxu1 %v2699_v44  ;;  %v2874_v44 = vld [vmem:[%s4050_s7 + $0x3ec] ss:$16 sps:$4 sm:$0xff]  }
 0x100   :  { %1148 = vmatpush1.bf16.msra.mxu1 %v2697_v47  ;;  %v2878_v47 = vld [vmem:[%s4049_s6] ss:$16 sps:$4 sm:$0xff]  }
 0x101   :  { %1149 = vmatprep.subr.bf16.mxu1 %v2705_v48  ;;  %v2883_v48 = vld [vmem:[%s4049_s6 + $0x24] ss:$16 sps:$4 sm:$0xff]  }
 0x104   :  { %1150 = vmatpush1.bf16.msra.mxu1 %v2703_v50  ;;  %v3069_v50 = vmov 0  }
 0x105   :  { %1151 = vmatprep.subr.bf16.mxu1 %v2711_v51  ;;  %v2886_v51 = vld [vmem:[%s4049_s6 + $0x44] ss:$16 sps:$4 sm:$0xff]  }
 0x108   :  { %1152 = vmatpush1.bf16.msra.mxu1 %v2709_v52  ;;  %v2884_v52 = vld [vmem:[%s4049_s6 + $0x40] ss:$16 sps:$4 sm:$0xff]  }
 0x109   :  { %1153 = vmatprep.subr.bf16.mxu1 %v2717_v53  ;;  %v2889_v53 = vld [vmem:[%s4049_s6 + $0x64] ss:$16 sps:$4 sm:$0xff]  }
 0x10c   :  { %1154 = vmatpush1.bf16.msra.mxu1 %v2715_v54  ;;  %v2887_v54 = vld [vmem:[%s4049_s6 + $0x60] ss:$16 sps:$4 sm:$0xff]  }
 0x10d   :  { %1155 = vmatprep.subr.bf16.mxu1 %v2723_v56  ;;  %v2892_v56 = vld [vmem:[%s4049_s6 + $0x84] ss:$16 sps:$4 sm:$0xff]  }
 0x110   :  { %1156 = vmatpush1.bf16.msra.mxu1 %v2721_v57  ;;  %v2890_v57 = vld [vmem:[%s4049_s6 + $0x80] ss:$16 sps:$4 sm:$0xff]  }
 0x111   :  { %1157 = vmatprep.subr.bf16.mxu1 %v2729_v58  ;;  %v2895_v58 = vld [vmem:[%s4049_s6 + $0xa4] ss:$16 sps:$4 sm:$0xff]  }
 0x114   :  { %1158 = vmatpush1.bf16.msra.mxu1 %v2727_v59  ;;  %v2893_v59 = vld [vmem:[%s4049_s6 + $0xa0] ss:$16 sps:$4 sm:$0xff]  }
 0x115   :  { %1159 = vmatprep.subr.bf16.mxu1 %v2735_v60  ;;  %v2898_v60 = vld [vmem:[%s4049_s6 + $0xc4] ss:$16 sps:$4 sm:$0xff]  }
 0x118   :  { %1160 = vmatpush1.bf16.msra.mxu1 %v2733_v61  ;;  %v2896_v61 = vld [vmem:[%s4049_s6 + $0xc0] ss:$16 sps:$4 sm:$0xff]  }
 0x119   :  { %1161 = vmatprep.subr.bf16.mxu1 %v2741_v62  ;;  %v2901_v62 = vld [vmem:[%s4049_s6 + $0xe4] ss:$16 sps:$4 sm:$0xff]  }
 0x11c   :  { %1162 = vmatpush1.bf16.msra.mxu1 %v2739_v63  ;;  %v2926_v63 = vld [vmem:[%s4052_s9] ss:$8 sps:$4 sm:$0xff]  }
 0x11d   :  { %1163 = vmatprep.subr.bf16.mxu1 %v2747_v0  ;;  %v2928_v0 = vld [vmem:[%s4052_s9 + $0x4] ss:$8 sps:$4 sm:$0xff]  }
 0x11e   :  { %1938 = vmatprep.subr.bf16.mxu0 %v2928_v0 }
 0x11f   :  { %1939 = vmatpush1.bf16.msra.mxu0 %v2926_v63 }
 0x120   :  { %1164 = vmatpush1.bf16.msra.mxu1 %v2745_v2  ;;  %v2931_v2 = vld [vmem:[%s4052_s9 + $0x14] ss:$8 sps:$4 sm:$0xff]  }
 0x121   :  { %1165 = vmatprep.subr.bf16.mxu1 %v2753_v3  ;;  %v2899_v3 = vld [vmem:[%s4049_s6 + $0xe0] ss:$16 sps:$4 sm:$0xff]   ;;  %1940 = vmatprep.subr.bf16.mxu0 %v2931_v2 }
 0x124   :  { %1166 = vmatpush1.bf16.msra.mxu1 %v2751_v4  ;;  %v2929_v4 = vld [vmem:[%s4052_s9 + $0x10] ss:$8 sps:$4 sm:$0xff]  }
 0x125   :  { %1167 = vmatprep.subr.bf16.mxu1 %v2759_v5  ;;  %v2904_v5 = vld [vmem:[%s4049_s6 + $0xc] ss:$16 sps:$4 sm:$0xff]   ;;  %1941 = vmatpush1.bf16.msra.mxu0 %v2929_v4 }
 0x126   :  { %v2970_v4 = vld [vmem:[%s4052_s9 + $0xe4] ss:$8 sps:$4 sm:$0xff]  }
 0x128   :  { %1168 = vmatpush1.bf16.msra.mxu1 %v2757_v6  ;;  %v2934_v6 = vld [vmem:[%s4052_s9 + $0x24] ss:$8 sps:$4 sm:$0xff]  }
 0x129   :  { %1169 = vmatprep.subr.bf16.mxu1 %v2765_v7  ;;  %v2932_v7 = vld [vmem:[%s4052_s9 + $0x20] ss:$8 sps:$4 sm:$0xff]   ;;  %1942 = vmatprep.subr.bf16.mxu0 %v2934_v6  ;;  %v2973_v6 = vld [vmem:[%s4052_s9 + $0xf4] ss:$8 sps:$4 sm:$0xff]  }
 0x12a   :  { %1943 = vmatpush1.bf16.msra.mxu0 %v2932_v7  ;;  %v2971_v7 = vld [vmem:[%s4052_s9 + $0xf0] ss:$8 sps:$4 sm:$0xff]  }
 0x12c   :  { %1170 = vmatpush1.bf16.msra.mxu1 %v2763_v8  ;;  %v2937_v8 = vld [vmem:[%s4052_s9 + $0x34] ss:$8 sps:$4 sm:$0xff]  }
 0x12d   :  { %1171 = vmatprep.subr.bf16.mxu1 %v2771_v9  ;;  %1944 = vmatprep.subr.bf16.mxu0 %v2937_v8  ;;  %v2976_v8 = vld [vmem:[%s4052_s9 + $0x104] ss:$8 sps:$4 sm:$0xff]  }
 0x130   :  { %1172 = vmatpush1.bf16.msra.mxu1 %v2769_v10 }
 0x131   :  { %1173 = vmatprep.subr.bf16.mxu1 %v2777_v11  ;;  %v2935_v11 = vld [vmem:[%s4052_s9 + $0x30] ss:$8 sps:$4 sm:$0xff]  }
 0x132   :  { %1945 = vmatpush1.bf16.msra.mxu0 %v2935_v11 }
 0x134   :  { %1174 = vmatpush1.bf16.msra.mxu1 %v2775_v12  ;;  %v3702_v9 = vpop.f32.mrb[4].mxu0 }
 0x135   :  { %1225 = vmatprep.subr.bf16.mxu1 %v2784_v13  ;;  %v3704_v10 = vpop.f32.mrb[5].mxu0  ;;  %v2940_v13 = vld [vmem:[%s4052_s9 + $0x44] ss:$8 sps:$4 sm:$0xff]  }
 0x136   :  { %v1140_v12 = vpop.f32.mrb[6].mxu0  ;;  %1946 = vmatprep.subr.bf16.mxu0 %v2940_v13 }
 0x137   :  { %1176 = vmatmul.mubr.bf16.vlgmr.msra.gmra.mrb[4].mxu1 %v3531_v14 }
 0x138   :  { %1226 = vmatpush1.bf16.msra.mxu1 %v2782_v15  ;;  %1257 = vmatprep.mubr.bf16.mxu1 %v3417_v38  ;;  %v2856_v38 = vld [vmem:[%s4050_s7 + $0x38c] ss:$16 sps:$4 sm:$0xff]   ;;  %v2938_v15 = vld [vmem:[%s4052_s9 + $0x40] ss:$8 sps:$4 sm:$0xff]  }
 0x139   :  { %1227 = vmatprep.subr.bf16.mxu1 %v2790_v16  ;;  %1947 = vmatpush1.bf16.msra.mxu0 %v2938_v15  ;;  %v2309_v16 = vld [vmem:[%s4048_s5] ss:$0 sm:$0xff] }
 0x13a   :  { %v3022_v15 = vld [vmem:[%s4054_s11 + $0x40] sm:$0xff]  }
 0x13c   :  { %1228 = vmatpush1.bf16.msra.mxu1 %v2788_v17 }
 0x13d   :  { %1229 = vmatprep.subr.bf16.mxu1 %v2796_v18  ;;  %v2941_v18 = vld [vmem:[%s4052_s9 + $0x50] ss:$8 sps:$4 sm:$0xff]  }
 0x140   :  { %1230 = vmatpush1.bf16.msra.mxu1 %v2794_v19  ;;  %v2943_v19 = vld [vmem:[%s4052_s9 + $0x54] ss:$8 sps:$4 sm:$0xff]  }
 0x141   :  { %1231 = vmatprep.subr.bf16.mxu1 %v2802_v20  ;;  %1948 = vmatprep.subr.bf16.mxu0 %v2943_v19  ;;  %v3026_v19 = vld [vmem:[%s4054_s11 + $0x50] sm:$0xff]  }
 0x142   :  { %1949 = vmatpush1.bf16.msra.mxu0 %v2941_v18  ;;  %v3025_v18 = vld [vmem:[%s4054_s11 + $0x8] sm:$0xff]  }
 0x144   :  { %1232 = vmatpush1.bf16.msra.mxu1 %v2800_v21 }
 0x145   :  { %1233 = vmatprep.subr.bf16.mxu1 %v2808_v22 }
 0x148   :  { %1234 = vmatpush1.bf16.msra.mxu1 %v2806_v23  ;;  %v2902_v23 = vld [vmem:[%s4049_s6 + $0x8] ss:$16 sps:$4 sm:$0xff]  }
 0x149   :  { %1235 = vmatprep.subr.bf16.mxu1 %v2814_v24  ;;  %v2907_v24 = vld [vmem:[%s4049_s6 + $0x2c] ss:$16 sps:$4 sm:$0xff]  }
 0x14c   :  { %1236 = vmatpush1.bf16.msra.mxu1 %v2812_v25 }
 0x14d   :  { %1237 = vmatprep.subr.bf16.mxu1 %v2820_v26 }
 0x150   :  { %1238 = vmatpush1.bf16.msra.mxu1 %v2818_v27  ;;  %v2944_v27 = vld [vmem:[%s4052_s9 + $0x60] ss:$8 sps:$4 sm:$0xff]  }
 0x151   :  { %1239 = vmatprep.subr.bf16.mxu1 %v2826_v28  ;;  %v2946_v28 = vld [vmem:[%s4052_s9 + $0x64] ss:$8 sps:$4 sm:$0xff]  }
 0x152   :  { %1950 = vmatprep.subr.bf16.mxu0 %v2946_v28  ;;  %v1508_v28 = vld [vmem:[%s4051_s8] sm:$0xf] }
 0x153   :  { %1951 = vmatpush1.bf16.msra.mxu0 %v2944_v27  ;;  %v1512_v27 = vsub.s32 0, %v3317_v55 }
 0x154   :  { %1240 = vmatpush1.bf16.msra.mxu1 %v2824_v29  ;;  %v2949_v29 = vld [vmem:[%s4052_s9 + $0x74] ss:$8 sps:$4 sm:$0xff]  }
 0x155   :  { %1241 = vmatprep.subr.bf16.mxu1 %v2832_v30  ;;  %v2905_v30 = vld [vmem:[%s4049_s6 + $0x28] ss:$16 sps:$4 sm:$0xff]   ;;  %1952 = vmatprep.subr.bf16.mxu0 %v2949_v29  ;;  %v1516_v29 = vsub.s32 1, %v3317_v55 }
 0x158   :  { %1242 = vmatpush1.bf16.msra.mxu1 %v2830_v31  ;;  %v2910_v31 = vld [vmem:[%s4049_s6 + $0x4c] ss:$16 sps:$4 sm:$0xff]  }
 0x159   :  { %1243 = vmatprep.subr.bf16.mxu1 %v2838_v32  ;;  %v2947_v32 = vld [vmem:[%s4052_s9 + $0x70] ss:$8 sps:$4 sm:$0xff]  }
 0x15a   :  { %1953 = vmatpush1.bf16.msra.mxu0 %v2947_v32  ;;  %v1517_v32 = vrot.slane %v1508_v28, %v1516_v29 }
 0x15c   :  { %1244 = vmatpush1.bf16.msra.mxu1 %v2836_v33  ;;  %v2952_v33 = vld [vmem:[%s4052_s9 + $0x84] ss:$8 sps:$4 sm:$0xff]  }
 0x15d   :  { %1245 = vmatprep.subr.bf16.mxu1 %v2844_v34  ;;  %v2908_v34 = vld [vmem:[%s4049_s6 + $0x48] ss:$16 sps:$4 sm:$0xff]   ;;  %1954 = vmatprep.subr.bf16.mxu0 %v2952_v33 }
 0x160   :  { %1246 = vmatpush1.bf16.msra.mxu1 %v2842_v35  ;;  %v2913_v35 = vld [vmem:[%s4049_s6 + $0x6c] ss:$16 sps:$4 sm:$0xff]  }
 0x161   :  { %1247 = vmatprep.subr.bf16.mxu1 %v2850_v36  ;;  %v2950_v36 = vld [vmem:[%s4052_s9 + $0x80] ss:$8 sps:$4 sm:$0xff]  }
 0x162   :  { %1955 = vmatpush1.bf16.msra.mxu0 %v2950_v36 }
 0x164   :  { %1248 = vmatpush1.bf16.msra.mxu1 %v2848_v37  ;;  %v2955_v37 = vld [vmem:[%s4052_s9 + $0x94] ss:$8 sps:$4 sm:$0xff]  }
 0x165   :  { %1249 = vmatprep.subr.bf16.mxu1 %v2856_v38  ;;  %1956 = vmatprep.subr.bf16.mxu0 %v2955_v37 }
 0x168   :  { %1250 = vmatpush1.bf16.msra.mxu1 %v2854_v39  ;;  %v2911_v39 = vld [vmem:[%s4049_s6 + $0x68] ss:$16 sps:$4 sm:$0xff]  }
 0x169   :  { %1251 = vmatprep.subr.bf16.mxu1 %v2862_v40 }
 0x16c   :  { %1252 = vmatpush1.bf16.msra.mxu1 %v2860_v41  ;;  %v2916_v41 = vld [vmem:[%s4049_s6 + $0x8c] ss:$16 sps:$4 sm:$0xff]  }
 0x16d   :  { %1253 = vmatprep.subr.bf16.mxu1 %v2868_v42  ;;  %v2953_v42 = vld [vmem:[%s4052_s9 + $0x90] ss:$8 sps:$4 sm:$0xff]  }
 0x16e   :  { %1957 = vmatpush1.bf16.msra.mxu0 %v2953_v42 }
 0x170   :  { %1254 = vmatpush1.bf16.msra.mxu1 %v2866_v43 }
 0x171   :  { %1255 = vmatprep.subr.bf16.mxu1 %v2874_v44  ;;  %v2958_v44 = vld [vmem:[%s4052_s9 + $0xa4] ss:$8 sps:$4 sm:$0xff]  }
 0x172   :  { %1958 = vmatprep.subr.bf16.mxu0 %v2958_v44 }
 0x174   :  { %1256 = vmatpush1.bf16.msra.mxu1 %v2872_v45 }
 0x175   :  { %1426 = vmatprep.subr.bf16.mxu1 %v2880_v46  ;;  %v2914_v46 = vld [vmem:[%s4049_s6 + $0x88] ss:$16 sps:$4 sm:$0xff]  }
 0x177   :  { %1258 = vmatmul.mubr.bf16.vlgmr.msra.gmra.mrb[8].mxu1 %v3531_v14  ;;  %v1141_v14 = vpop.f32.mrb[7].mxu0 }
 0x178   :  { %1427 = vmatpush1.bf16.msra.mxu1 %v2878_v47  ;;  %1458 = vmatprep.mubr.bf16.mxu1 %v3069_v50  ;;  %v3767_v38 = vpop.f32.mrb[8].mxu0  ;;  %v2919_v47 = vld [vmem:[%s4049_s6 + $0xac] ss:$16 sps:$4 sm:$0xff]  }
 0x179   :  { %1428 = vmatprep.subr.bf16.mxu1 %v2883_v48  ;;  %v1220_v40 = vpop.f32.mrb[9].mxu0  ;;  %v2956_v48 = vld [vmem:[%s4052_s9 + $0xa0] ss:$8 sps:$4 sm:$0xff]  }
 0x17a   :  { %v1222_v43 = vpop.f32.mrb[10].mxu0  ;;  %1959 = vmatpush1.bf16.msra.mxu0 %v2956_v48  ;;  %v2980_v48 = vld [vmem:[%s4052_s9 + $0x120] ss:$8 sps:$4 sm:$0xff]  }
 0x17b   :  { %v1223_v45 = vpop.f32.mrb[11].mxu0  ;;  %v2974_v43 = vld [vmem:[%s4052_s9 + $0x100] ss:$8 sps:$4 sm:$0xff]  }
 0x17c   :  { %1429 = vmatpush1.bf16.msra.mxu1 %v2881_v49  ;;  %v2961_v49 = vld [vmem:[%s4052_s9 + $0xb4] ss:$8 sps:$4 sm:$0xff]  }
 0x17d   :  { %1430 = vmatprep.subr.bf16.mxu1 %v2886_v51  ;;  %v2922_v51 = vld [vmem:[%s4049_s6 + $0xcc] ss:$16 sps:$4 sm:$0xff]   ;;  %1960 = vmatprep.subr.bf16.mxu0 %v2961_v49 }
 0x17e   :  { %v2979_v45 = vld [vmem:[%s4052_s9 + $0x114] ss:$8 sps:$4 sm:$0xff]  }
 0x17f   :  { %v2985_v49 = vld [vmem:[%s4052_s9 + $0x134] ss:$8 sps:$4 sm:$0xff]  }
 0x180   :  { %1431 = vmatpush1.bf16.msra.mxu1 %v2884_v52  ;;  %v2959_v52 = vld [vmem:[%s4052_s9 + $0xb0] ss:$8 sps:$4 sm:$0xff]  }
 0x181   :  { %1432 = vmatprep.subr.bf16.mxu1 %v2889_v53  ;;  %v2964_v53 = vld [vmem:[%s4052_s9 + $0xc4] ss:$8 sps:$4 sm:$0xff]   ;;  %1961 = vmatpush1.bf16.msra.mxu0 %v2959_v52  ;;  %v2986_v52 = vld [vmem:[%s4052_s9 + $0x140] ss:$8 sps:$4 sm:$0xff]  }
 0x182   :  { %1962 = vmatprep.subr.bf16.mxu0 %v2964_v53  ;;  %v2991_v53 = vld [vmem:[%s4052_s9 + $0x154] ss:$8 sps:$4 sm:$0xff]  }
 0x184   :  { %1433 = vmatpush1.bf16.msra.mxu1 %v2887_v54  ;;  %v2920_v54 = vld [vmem:[%s4049_s6 + $0xc8] ss:$16 sps:$4 sm:$0xff]  }
 0x185   :  { %1434 = vmatprep.subr.bf16.mxu1 %v2892_v56  ;;  %v2925_v56 = vld [vmem:[%s4049_s6 + $0xec] ss:$16 sps:$4 sm:$0xff]  }
 0x188   :  { %1435 = vmatpush1.bf16.msra.mxu1 %v2890_v57  ;;  %v2962_v57 = vld [vmem:[%s4052_s9 + $0xc0] ss:$8 sps:$4 sm:$0xff]  }
 0x189   :  { %1436 = vmatprep.subr.bf16.mxu1 %v2895_v58  ;;  %v2967_v58 = vld [vmem:[%s4052_s9 + $0xd4] ss:$8 sps:$4 sm:$0xff]   ;;  %1963 = vmatpush1.bf16.msra.mxu0 %v2962_v57  ;;  %v1524_v57 = vsub.s32 3, %v3317_v55 }
 0x18a   :  { %1964 = vmatprep.subr.bf16.mxu0 %v2967_v58  ;;  %v2994_v58 = vld [vmem:[%s4052_s9 + $0x164] ss:$8 sps:$4 sm:$0xff]  }
 0x18c   :  { %1437 = vmatpush1.bf16.msra.mxu1 %v2893_v59  ;;  %v2923_v59 = vld [vmem:[%s4049_s6 + $0xe8] ss:$16 sps:$4 sm:$0xff]  }
 0x18d   :  { %1438 = vmatprep.subr.bf16.mxu1 %v2898_v60  ;;  %v2965_v60 = vld [vmem:[%s4052_s9 + $0xd0] ss:$8 sps:$4 sm:$0xff]  }
 0x18e   :  { %1965 = vmatpush1.bf16.msra.mxu0 %v2965_v60 }
 0x18f   :  { %1966 = vmatprep.subr.bf16.mxu0 %v2970_v4 }
 0x190   :  { %1439 = vmatpush1.bf16.msra.mxu1 %v2896_v61 }
 0x191   :  { %1440 = vmatprep.subr.bf16.mxu1 %v2901_v62 }
 0x194   :  { %1441 = vmatpush1.bf16.msra.mxu1 %v2899_v3 }
 0x195   :  { %1467 = vmatprep.subr.bf16.mxu1 %v2904_v5  ;;  %v2968_v5 = vld [vmem:[%s4052_s9 + $0xe0] ss:$8 sps:$4 sm:$0xff]  }
 0x196   :  { %1967 = vmatpush1.bf16.msra.mxu0 %v2968_v5 }
 0x197   :  { %1968 = vmatprep.subr.bf16.mxu0 %v2973_v6 }
 0x19a   :  { %1969 = vmatpush1.bf16.msra.mxu0 %v2971_v7 }
 0x19b   :  { %1979 = vmatprep.subr.bf16.mxu0 %v2976_v8  ;;  %v2995_v8 = vld [vmem:[%s4052_s9 + $0x170] ss:$8 sps:$4 sm:$0xff]  }
 0x1ca   :  { %v268_v17 = vpop.f32.mrb[0].mxu1 }
 0x1cb   :  { %v269_v20 = vadd.f32 %v2309_v16, %v268_v17  ;;  %v2645_v21 = vpop.f32.mrb[1].mxu1  ;;  %v3023_v16 = vld [vmem:[%s4054_s11] sm:$0xff]   ;;  %v3024_v17 = vld [vmem:[%s4054_s11 + $0x48] sm:$0xff]  }
 0x1cc   :  { %v271_v22 = vpop.f32.mrb[2].mxu1  ;;  %v3028_v21 = vld [vmem:[%s4054_s11 + $0x58] sm:$0xff]  }
 0x1cd   :  { %v3730_v25 = vpack.c.bf16 %v269_v20, %v269_v20  ;;  %v2646_v26 = vpop.f32.mrb[3].mxu1  ;;  %v3027_v20 = vld [vmem:[%s4054_s11 + $0x10] sm:$0xff]   ;;  %v3029_v22 = vld [vmem:[%s4054_s11 + $0x18] sm:$0xff]  }
 0x1ce   :  { %v3033_v26 = vld [vmem:[%s4054_s11 + $0x28] sm:$0xff]  }
 0x1cf   :  { %1459 = vmatmul.mubr.bf16.vlgmr.msra.gmra.mrb[12].mxu1 %v3730_v25 }
 0x1d0   :  { %1468 = vmatpush1.bf16.msra.mxu1 %v2902_v23  ;;  %1499 = vmatprep.mubr.bf16.mxu1 %v3069_v50  ;;  %v2917_v50 = vld [vmem:[%s4049_s6 + $0xa8] ss:$16 sps:$4 sm:$0xff]   ;;  %v3030_v23 = vld [vmem:[%s4054_s11 + $0x60] sm:$0xff]  }
 0x1d1   :  { %1469 = vmatprep.subr.bf16.mxu1 %v2907_v24  ;;  %v3031_v24 = vld [vmem:[%s4054_s11 + $0x20] sm:$0xff]  }
 0x1d4   :  { %1470 = vmatpush1.bf16.msra.mxu1 %v2905_v30  ;;  %v1513_v30 = vrot.slane %v1508_v28, %v1512_v27 }
 0x1d5   :  { %1471 = vmatprep.subr.bf16.mxu1 %v2910_v31 }
 0x1d8   :  { %1472 = vmatpush1.bf16.msra.mxu1 %v2908_v34 }
 0x1d9   :  { %1473 = vmatprep.subr.bf16.mxu1 %v2913_v35 }
 0x1dc   :  { %1474 = vmatpush1.bf16.msra.mxu1 %v2911_v39 }
 0x1dd   :  { %1475 = vmatprep.subr.bf16.mxu1 %v2916_v41 }
 0x1e0   :  { %1476 = vmatpush1.bf16.msra.mxu1 %v2914_v46  ;;  %v2977_v46 = vld [vmem:[%s4052_s9 + $0x110] ss:$8 sps:$4 sm:$0xff]  }
 0x1e1   :  { %1477 = vmatprep.subr.bf16.mxu1 %v2919_v47  ;;  %v2982_v47 = vld [vmem:[%s4052_s9 + $0x124] ss:$8 sps:$4 sm:$0xff]  }
 0x1e4   :  { %1478 = vmatpush1.bf16.msra.mxu1 %v2917_v50  ;;  %v2983_v50 = vld [vmem:[%s4052_s9 + $0x130] ss:$8 sps:$4 sm:$0xff]  }
 0x1e5   :  { %1479 = vmatprep.subr.bf16.mxu1 %v2922_v51  ;;  %v2988_v51 = vld [vmem:[%s4052_s9 + $0x144] ss:$8 sps:$4 sm:$0xff]  }
 0x1e8   :  { %1480 = vmatpush1.bf16.msra.mxu1 %v2920_v54  ;;  %v1520_v54 = vsub.s32 2, %v3317_v55  ;;  %v3039_v55 = vld [vmem:[%s4056_s13 + $0x8] sm:$0xff]  }
 0x1e9   :  { %1481 = vmatprep.subr.bf16.mxu1 %v2925_v56  ;;  %v2989_v56 = vld [vmem:[%s4052_s9 + $0x150] ss:$8 sps:$4 sm:$0xff]  }
 0x1ec   :  { %1482 = vmatpush1.bf16.msra.mxu1 %v2923_v59  ;;  %v1521_v59 = vrot.slane %v1508_v28, %v1520_v54 }
 0x1ed   :  { %2582 = vmatprep.subr.bf16.mxu1 %v3022_v15  ;;  %v3006_v15 = vld [vmem:[%s4052_s9 + $0x1a4] ss:$8 sps:$4 sm:$0xff]  }
 0x1ef   :  { %1500 = vmatmul.mubr.bf16.vlgmr.msra.gmra.mrb[16].mxu1 %v3730_v25  ;;  %v3032_v25 = vld [vmem:[%s4054_s11 + $0x68] sm:$0xff]  }
 0x1f0   :  { %2583 = vmatpush3.bf16.msra.mxu1 %v3023_v16  ;;  %v3004_v16 = vld [vmem:[%s4052_s9 + $0x1a0] ss:$8 sps:$4 sm:$0xff]  }
 0x1f1   :  { %2584 = vmatprep.subr.bf16.mxu1 %v3024_v17  ;;  %v3009_v17 = vld [vmem:[%s4052_s9 + $0x1b4] ss:$8 sps:$4 sm:$0xff]  }
 0x1f4   :  { %2585 = vmatpush3.bf16.msra.mxu1 %v3025_v18  ;;  %v3007_v18 = vld [vmem:[%s4052_s9 + $0x1b0] ss:$8 sps:$4 sm:$0xff]  }
 0x1f5   :  { %2586 = vmatprep.subr.bf16.mxu1 %v3026_v19  ;;  %v3012_v19 = vld [vmem:[%s4052_s9 + $0x1c4] ss:$8 sps:$4 sm:$0xff]  }
 0x1f8   :  { %2587 = vmatpush3.bf16.msra.mxu1 %v3027_v20  ;;  %v3010_v20 = vld [vmem:[%s4052_s9 + $0x1c0] ss:$8 sps:$4 sm:$0xff]  }
 0x1f9   :  { %2588 = vmatprep.subr.bf16.mxu1 %v3028_v21  ;;  %v3015_v21 = vld [vmem:[%s4052_s9 + $0x1d4] ss:$8 sps:$4 sm:$0xff]  }
 0x1fc   :  { %2589 = vmatpush3.bf16.msra.mxu1 %v3029_v22  ;;  %v3013_v22 = vld [vmem:[%s4052_s9 + $0x1d0] ss:$8 sps:$4 sm:$0xff]  }
 0x1fd   :  { %2590 = vmatprep.subr.bf16.mxu1 %v3030_v23  ;;  %v3018_v23 = vld [vmem:[%s4052_s9 + $0x1e4] ss:$8 sps:$4 sm:$0xff]  }
 0x200   :  { %2591 = vmatpush3.bf16.msra.mxu1 %v3031_v24  ;;  %v3016_v24 = vld [vmem:[%s4052_s9 + $0x1e0] ss:$8 sps:$4 sm:$0xff]  }
 0x201   :  { %2592 = vmatprep.subr.bf16.mxu1 %v3032_v25  ;;  %v3021_v25 = vld [vmem:[%s4052_s9 + $0x1f4] ss:$8 sps:$4 sm:$0xff]  }
 0x204   :  { %2593 = vmatpush3.bf16.msra.mxu1 %v3033_v26  ;;  %v3019_v26 = vld [vmem:[%s4052_s9 + $0x1f0] ss:$8 sps:$4 sm:$0xff]  }
 0x20a   :  { %v1177_v61 = vpop.f32.mrb[4].mxu1 }
 0x20b   :  { %v1179_v62 = vpop.f32.mrb[5].mxu1  ;;  %v1178_v63 = vadd.f32 %v1177_v61, %v3702_v9  ;;  %v1525_v61 = vrot.slane %v1508_v28, %v1524_v57 }
 0x20c   :  { %v1181_v0 = vpop.f32.mrb[6].mxu1  ;;  %v1180_v2 = vadd.f32 %v1179_v62, %v3704_v10  ;;  %v2992_v62 = vld [vmem:[%s4052_s9 + $0x160] ss:$8 sps:$4 sm:$0xff]  }
 0x20d   :  { %v1182_v3 = vpop.f32.mrb[7].mxu1 }
 0x24a   :  { %v1259_v9 = vpop.f32.mrb[8].mxu1 }
 0x24b   :  { %v1261_v10 = vpop.f32.mrb[9].mxu1  ;;  %v3842_v11 = vadd.f32 %v1259_v9, %v3767_v38  ;;  %v3000_v9 = vld [vmem:[%s4052_s9 + $0x184] ss:$8 sps:$4 sm:$0xff]  }
 0x24c   :  { %v1263_v12 = vpop.f32.mrb[10].mxu1  ;;  %v3844_v13 = vadd.f32 %v1261_v10, %v1220_v40 }
 0x24d   :  { %v1264_v14 = vpop.f32.mrb[11].mxu1  ;;  %v2998_v12 = vld [vmem:[%s4052_s9 + $0x180] ss:$8 sps:$4 sm:$0xff]  }
 0x24e   :  { %v3001_v14 = vld [vmem:[%s4052_s9 + $0x190] ss:$8 sps:$4 sm:$0xff]  }
 0x2a2   :  { %v1460_v31 = vpop.f32.mrb[12].mxu1 }
 0x2a3   :  { %v1461_v33 = vadd.f32 %v1460_v31, %v1178_v63  ;;  %v1462_v34 = vpop.f32.mrb[13].mxu1  ;;  %v3034_v31 = vld [vmem:[%s4054_s11 + $0x70] sm:$0xff]  }
 0x2a4   :  { %v1463_v35 = vadd.f32 %v1462_v34, %v1180_v2  ;;  %v1464_v36 = vpop.f32.mrb[14].mxu1  ;;  %v2997_v2 = vld [vmem:[%s4052_s9 + $0x174] ss:$8 sps:$4 sm:$0xff]   ;;  %2594 = vmatprep.subr.bf16.mxu1 %v3034_v31 }
 0x2a5   :  { %v1530_v37 = vadd.f32 %v1513_v30, %v1461_v33  ;;  %v1465_v38 = vpop.f32.mrb[15].mxu1  ;;  %v3036_v33 = vld [vmem:[%s4054_s11 + $0x78] sm:$0xff]  }
 0x2a6   :  { %v1531_v39 = vadd.f32 %v1517_v32, %v1463_v35  ;;  %v3035_v32 = vld [vmem:[%s4054_s11 + $0x30] sm:$0xff]   ;;  %v3037_v34 = vld [vmem:[%s4054_s11 + $0x38] sm:$0xff]   ;;  %v1606_v35 = vld [vmem:[%s4053_s10] sm:$0x3] }
 0x2a7   :  { %v1534_v40 = vmax.f32 %v1530_v37, 0.0  ;;  %2595 = vmatpush3.bf16.msra.mxu1 %v3035_v32  ;;  %v1611_v36 = vrot.slane %v1606_v35, %v1512_v27  ;;  %v1615_v37 = vrot.slane %v1606_v35, %v1516_v29  ;;  %v3040_v27 = vld [vmem:[%s4056_s13 + $0x10] sm:$0xff]   ;;  %v3041_v29 = vld [vmem:[%s4056_s13 + $0x18] sm:$0xff]  }
 0x2a8   :  { %v1535_v41 = vmax.f32 %v1531_v39, 0.0  ;;  %2596 = vmatprep.subr.bf16.mxu1 %v3036_v33 }
 0x2a9   :  { %v1538_v44 = vpack.c.bf16 %v1534_v40, %v1534_v40 }
 0x2aa   :  { %v1539_v42 = vpack.c.bf16 %v1535_v41, %v1535_v41 }
 0x2ab   :  { %2597 = vmatpush3.bf16.msra.mxu1 %v3037_v34 }
 0x2ac   :  { %1970 = vmatprep.mubr.bf16.mxu0 %v1539_v42  ;;  %2647 = vmatprep.subr.bf16.mxu1 %v3066_v1 }
 0x2ad   :  { %1971 = vmatmul.mubr.bf16.vlgmr.msra.gmra.mrb[12].mxu0 %v1538_v44 }
 0x2ae   :  { %1980 = vmatpush1.bf16.msra.mxu0 %v2974_v43 }
 0x2af   :  { %1981 = vmatprep.subr.bf16.mxu0 %v2979_v45 }
 0x2b2   :  { %1982 = vmatpush1.bf16.msra.mxu0 %v2977_v46 }
 0x2b3   :  { %1983 = vmatprep.subr.bf16.mxu0 %v2982_v47  ;;  %v3038_v47 = vld [vmem:[%s4056_s13] sm:$0xff]   ;;  %s3070_s13 = smov [#allocation2]  }
 0x2b4   :  { %s2292_s19 = sshll.u32 %s3070_s13, 4  ;;  %s2293_s19 = int_to_ptr.vmem [resolvable:$true] %s2292_s19 }
 0x2b5   :  { %p3047_p1 = scmp.lt.s32.totalorder %s2293_s19, %s2293_s19 }
 0x2b6   :  { %1984 = vmatpush1.bf16.msra.mxu0 %v2980_v48 }
 0x2b7   :  { %1985 = vmatprep.subr.bf16.mxu0 %v2985_v49 }
 0x2ba   :  { %1986 = vmatpush1.bf16.msra.mxu0 %v2983_v50  ;;  %v2542_v50 = vld [vmem:[%s4055_s12] ss:$0 sm:$0xff]  ;;  %s3042_s12 = scalar_lea.vmem %s2293_s19, 32 }
 0x2bb   :  { %1987 = vmatprep.subr.bf16.mxu0 %v2988_v51  ;;  %p3043_p0 = scmp.ne.s32.totalorder %s2293_s19, %s3042_s12  ;;  %p3048_p2 = scmp.lt.s32.totalorder %s3042_s12, %s3042_s12 }
 0x2bd   :  { %p3049_p3 = por %p3048_p2, %p3047_p1 }
 0x2be   :  { %1988 = vmatpush1.bf16.msra.mxu0 %v2986_v52 }
 0x2bf   :  { %1989 = vmatprep.subr.bf16.mxu0 %v2991_v53  ;;  %p3050_p4 = pnand %p3049_p3, %p3043_p0 }
 0x2c2   :  { %v1501_v60 = vpop.f32.mrb[16].mxu1  ;;  %1990 = vmatpush1.bf16.msra.mxu0 %v2989_v56 }
 0x2c3   :  { %v1502_v63 = vadd.f32 %v1501_v60, %v3842_v11  ;;  %v1503_v0 = vpop.f32.mrb[17].mxu1  ;;  %1991 = vmatprep.subr.bf16.mxu0 %v2994_v58 }
 0x2c4   :  { %v1504_v3 = vadd.f32 %v1503_v0, %v3844_v13  ;;  %v1505_v4 = vpop.f32.mrb[18].mxu1  ;;  %v3003_v13 = vld [vmem:[%s4052_s9 + $0x194] ss:$8 sps:$4 sm:$0xff]  }
 0x2c5   :  { %v1532_v5 = vadd.f32 %v1521_v59, %v1502_v63  ;;  %v1506_v6 = vpop.f32.mrb[19].mxu1 }
 0x2c6   :  { %v1533_v7 = vadd.f32 %v1525_v61, %v1504_v3  ;;  %1992 = vmatpush1.bf16.msra.mxu0 %v2992_v62 }
 0x2c7   :  { %1993 = vmatprep.subr.bf16.mxu0 %v2997_v2  ;;  %v1536_v28 = vmax.f32 %v1532_v5, 0.0 }
 0x2c8   :  { %v1537_v10 = vmax.f32 %v1533_v7, 0.0 }
 0x2c9   :  { %v1540_v30 = vpack.c.bf16 %v1536_v28, %v1536_v28 }
 0x2ca   :  { %v1541_v11 = vpack.c.bf16 %v1537_v10, %v1537_v10  ;;  %1994 = vmatpush1.bf16.msra.mxu0 %v2995_v8 }
 0x2cb   :  { %1995 = vmatprep.subr.bf16.mxu0 %v3000_v9 }
 0x2cc   :  { %2011 = vmatprep.mubr.bf16.mxu0 %v1541_v11 }
 0x2ce   :  { %1996 = vmatpush1.bf16.msra.mxu0 %v2998_v12 }
 0x2cf   :  { %1997 = vmatprep.subr.bf16.mxu0 %v3003_v13 }
 0x2d2   :  { %1998 = vmatpush1.bf16.msra.mxu0 %v3001_v14 }
 0x2d3   :  { %1999 = vmatprep.subr.bf16.mxu0 %v3006_v15 }
 0x2d6   :  { %2000 = vmatpush1.bf16.msra.mxu0 %v3004_v16 }
 0x2d7   :  { %2001 = vmatprep.subr.bf16.mxu0 %v3009_v17 }
 0x2da   :  { %2002 = vmatpush1.bf16.msra.mxu0 %v3007_v18 }
 0x2db   :  { %2003 = vmatprep.subr.bf16.mxu0 %v3012_v19 }
 0x2de   :  { %2004 = vmatpush1.bf16.msra.mxu0 %v3010_v20 }
 0x2df   :  { %2005 = vmatprep.subr.bf16.mxu0 %v3015_v21 }
 0x2e2   :  { %2006 = vmatpush1.bf16.msra.mxu0 %v3013_v22 }
 0x2e3   :  { %2007 = vmatprep.subr.bf16.mxu0 %v3018_v23 }
 0x2e6   :  { %2008 = vmatpush1.bf16.msra.mxu0 %v3016_v24 }
 0x2e7   :  { %2009 = vmatprep.subr.bf16.mxu0 %v3021_v25 }
 0x2ea   :  { %2010 = vmatpush1.bf16.msra.mxu0 %v3019_v26 }
 0x2ed   :  { %2012 = vmatmul.mubr.bf16.vlgmr.msra.gmra.mrb[12].mxu0 %v1540_v30 }
 0x3c0   :  { %v2013_v38 = vpop.f32.mrb[12].mxu0 }
 0x3c1   :  { %v2659_v39 = vadd.f32 %v2013_v38, %v1611_v36  ;;  %v2015_v40 = vpop.f32.mrb[13].mxu0 }
 0x3c2   :  { %v2660_v41 = vadd.f32 %v2015_v40, %v1615_v37  ;;  %v2017_v42 = vpop.f32.mrb[14].mxu0 }
 0x3c3   :  { %v2020_v43 = vmax.f32 %v2659_v39, 0.0  ;;  %v2018_v44 = vpop.f32.mrb[15].mxu0 }
 0x3c4   :  { %v2021_v45 = vmax.f32 %v2660_v41, 0.0 }
 0x3c5   :  { %v2022_v48 = vpack.c.bf16 %v2020_v43, %v2020_v43 }
 0x3c6   :  { %v2023_v46 = vpack.c.bf16 %v2021_v45, %v2021_v45 }
 0x3c8   :  { %2191 = vmatprep.mubr.bf16.mxu1 %v2023_v46 }
 0x3c9   :  { %2192 = vmatmul.mubr.bf16.vlgmr.msra.gmra.mrb[20].mxu1 %v2022_v48 }
 0x3ca   :  { %2648 = vmatpush3.bf16.msra.mxu1 %v3038_v47  ;;  %2655 = vmatprep.mubr.msk.bf16.mxu1 %vm3067_vm0, %v3066_v1 }
 0x3cb   :  { %2649 = vmatprep.subr.bf16.mxu1 %v3066_v1 }
 0x3ce   :  { %2650 = vmatpush3.bf16.msra.mxu1 %v3039_v55 }
 0x3cf   :  { %2651 = vmatprep.subr.bf16.mxu1 %v3066_v1 }
 0x3d2   :  { %2652 = vmatpush3.bf16.msra.mxu1 %v3040_v27 }
 0x3d3   :  { %2653 = vmatprep.subr.bf16.mxu1 %v3066_v1  ;;  %v2559_v1 = vld [vmem:[%s4057_s14] ss:$0 sm:$0xff] }
 0x3d6   :  { %2654 = vmatpush3.bf16.msra.mxu1 %v3041_v29 }
 0x49c   :  { %v2598_v49 = vpop.f32.mrb[20].mxu1 }
 0x49d   :  { %v2599_v51 = vpop.f32.mrb[21].mxu1 }
 0x49e   :  { %v2600_v52 = vadd.f32 %v2599_v51, %v2598_v49  ;;  %v2601_v53 = vpop.f32.mrb[22].mxu1 }
 0x49f   :  { %v2602_v54 = vpop.f32.mrb[23].mxu1 }
 0x4a0   :  { %v2194_v56 = vadd.f32 %v2600_v52, %v2542_v50 }
 0x4a2   :  { %v2199_v57 = vmax.f32 %v2194_v56, 0.0 }
 0x4a4   :  { %v2200_v58 = vpack.c.bf16 %v2199_v57, %v2199_v57 }
 0x4a6   :  { %2656 = vmatmul.mubr.msk.bf16.vlgmr.msra.gmra.mrb[24].mxu1 %vm2240_vm3, %v2200_v58 }
 0x579   :  { %v2278_v59 = vpop.f32.mrb[24].mxu1 }
 0x57a   :  { %v2279_v60 = vadd.f32 %v2559_v1, %v2278_v59  ;;  %v2657_v61 = vpop.f32.mrb[25].mxu1 }
 0x57b   :  { %v2281_v62 = vpop.f32.mrb[26].mxu1 }
 0x57c   :  { %v2658_v63 = vpop.f32.mrb[27].mxu1  ;;  %2285 = vst.msk [vmem:[#allocation2] sm:$0x3] %vm2284_vm4, %v2279_v60 }
 0x57d   :  { %3053 = shalt.err (!%p3050_p4)
}
 0x57e   :  { %s3054_s14 = scalar_lea.hbm %s4058_s15, 32 }
 0x57f   :  { %p3055_p5 = scmp.ne.s32.totalorder %s4058_s15, %s3054_s14  ;;  %p3058_p6 = scmp.lt.u32.totalorder %s3054_s14, %s4058_s15 }
 0x581   :  { %p3060_p7 = pnand %p3058_p6, %p3055_p5 }
 0x583   :  { %3063 = shalt.err (!%p3060_p7)
}
 0x584   :  { %2295 = dma.vmem_to_hbm [thread:$0]  %s2293_s19, 32, %s4058_s15, [#allocation3]  }
 0x585   :  { %3064 = dma.done.wait [#allocation3], 32  }
 0x586   :  { %3065 = vsyncadd [#allocation3], 4294967264 }
 0x587   :  { %2299 = vsyncpa [#allocation3], 1 }

</bundles_post_ra>
